<compile_context>
chip_gen: v7x
topology: tpu7x:2x2x1
jax: 0.10.0
libtpu: 0.0.40
codegen_flags: <defaults>
</compile_context>

<pallas_src>
import functools
import math

import jax
import jax.numpy as jnp
from jax.experimental import pallas as pl
from jax.experimental.pallas import tpu as pltpu

# ----------------------------- configuration --------------------------------
IMAGE_SIZE = 16
PATCH = 4
HIDDEN = 32
NUM_LAYERS = 2
MLP_DIM = 64
NUM_HEADS = 4
NUM_CLASSES = 10

GRID_SIDE = IMAGE_SIZE // PATCH                   # 4
NUM_PATCHES = GRID_SIDE ** 2                      # 16
SEQ = NUM_PATCHES + 1                             # 17 (class token + patches)
SEQ_PAD = ((SEQ + 7) // 8) * 8                    # 24: sublane-aligned sequence
HEAD_DIM = HIDDEN // NUM_HEADS                    # 8
PATCH_DIM = 3 * PATCH * PATCH                     # 48
EPS = 1e-6
INV_SCALE = 1.0 / math.sqrt(HIDDEN / NUM_HEADS)   # 1 / sqrt(head_dim)


# ------------------------------- helpers ------------------------------------
def _layernorm(x, gamma, beta):
    mean = jnp.mean(x, axis=-1, keepdims=True)
    var = jnp.mean(jnp.square(x - mean), axis=-1, keepdims=True)
    return (x - mean) * jax.lax.rsqrt(var + EPS) * gamma + beta


def _erf(x):
    # Abramowitz & Stegun 7.1.26 rational approximation, max abs error 1.5e-7
    # (~f32 eps). Used because lax.erf lowering in Mosaic is not guaranteed.
    p = 0.3275911
    a1, a2, a3, a4, a5 = (0.254829592, -0.284496736, 1.421413741,
                          -1.453152027, 1.061405429)
    ax = jnp.abs(x)
    t = 1.0 / (1.0 + p * ax)
    poly = ((((a5 * t + a4) * t + a3) * t + a2) * t + a1) * t
    y = 1.0 - poly * jnp.exp(-ax * ax)
    return jnp.where(x >= 0, y, -y)


def _gelu_exact(x):
    # Exact (erf-based) GELU == torch.nn.GELU() default.
    return 0.5 * x * (1.0 + _erf(x * (1.0 / math.sqrt(2.0))))


def _batch_tiling(batch, max_tile=32):
    """Return (batch_tile, num_grid_steps).

    Prefer >= 2 grid steps (so v7x can shard across both TensorCores) while
    folding as many batch elements per step as possible (grows matmul M)."""
    if batch == 1:
        return 1, 1
    for bt in range(min(batch // 2, max_tile), 0, -1):
        if batch % bt == 0 and (batch // bt) % 2 == 0:
            return bt, batch // bt
    for bt in range(min(batch, max_tile), 0, -1):
        if batch % bt == 0:
            return bt, batch // bt
    return 1, batch


# --------------------------- fused forward kernel ---------------------------
def _vit_fused_kernel(
        patches_ref, proj_w_ref, proj_b_ref, base_ref,
        ln1g_ref, ln1b_ref, wqkv_ref, ln2g_ref, ln2b_ref,
        w1_ref, b1_ref, w2_ref, b2_ref,
        fin_g_ref, fin_b_ref, head_w_ref, head_b_ref,
        o_ref, xbuf_ref, *, batch_tile):
    bt = batch_tile
    rows = bt * SEQ_PAD

    # --- patch projection for every batch row of this tile in one matmul ---
    proj = jnp.dot(patches_ref[0], proj_w_ref[...],
                   preferred_element_type=jnp.float32) + proj_b_ref[...]
    proj = proj.reshape(bt, NUM_PATCHES, HIDDEN)          # NUM_PATCHES % 8 == 0

    # --- assemble tokens: row 0 = cls+pos0, rows 1..16 = patches+pos, rest 0 -
    xbuf_ref[...] = jnp.broadcast_to(base_ref[...], (bt, SEQ_PAD, HIDDEN))
    xbuf_ref[:, 1:1 + NUM_PATCHES, :] += proj
    x = xbuf_ref[...].reshape(rows, HIDDEN)               # (bt*SEQ_PAD, H)

    # key-position bias: padded key rows are masked out of every softmax
    key_idx = jax.lax.broadcasted_iota(jnp.int32, (1, 1, SEQ_PAD), 2)
    key_bias = jnp.where(key_idx < SEQ, 0.0, -1e30).astype(jnp.float32)

    for l in range(NUM_LAYERS):                           # static unroll
        # ---- attention sub-block: x + MHSA(LN1(x)) (no out-proj, no bias) ----
        h = _layernorm(x, ln1g_ref[l], ln1b_ref[l])
        qkv = jnp.dot(h, wqkv_ref[l],
                      preferred_element_type=jnp.float32)  # (rows, 3H)

        def gather_heads(col0):
            # (heads*bt, SEQ_PAD, HEAD_DIM): heads & batch folded into one
            # batch dim so attention is 2 batched einsums instead of 8 tiny dots.
            return jnp.concatenate(
                [qkv[:, col0 + hh * HEAD_DIM: col0 + (hh + 1) * HEAD_DIM]
                     .reshape(bt, SEQ_PAD, HEAD_DIM)
                 for hh in range(NUM_HEADS)], axis=0)

        qh = gather_heads(0)
        kh = gather_heads(HIDDEN)
        vh = gather_heads(2 * HIDDEN)

        s = jnp.einsum("bqd,bkd->bqk", qh, kh,
                       preferred_element_type=jnp.float32) * INV_SCALE
        s = s + key_bias
        s = s - jnp.max(s, axis=-1, keepdims=True)
        e = jnp.exp(s)
        attn = e * pl.reciprocal(jnp.sum(e, axis=-1, keepdims=True), approx=True)
        ctx = jnp.einsum("bqk,bkd->bqd", attn, vh,
                         preferred_element_type=jnp.float32)
        attn_out = jnp.concatenate(
            [ctx[hh * bt:(hh + 1) * bt] for hh in range(NUM_HEADS)], axis=-1)
        x = x + attn_out.reshape(rows, HIDDEN)

        # ---- MLP sub-block: x + W2 @ GELU(W1 @ LN2(x) + b1) + b2 ----
        h2 = _layernorm(x, ln2g_ref[l], ln2b_ref[l])
        m = jnp.dot(h2, w1_ref[l], preferred_element_type=jnp.float32) + b1_ref[l]
        m = _gelu_exact(m)
        x = x + jnp.dot(m, w2_ref[l],
                        preferred_element_type=jnp.float32) + b2_ref[l]

    # ---- final LayerNorm + classifier head on the class-token rows only ----
    cls = x.reshape(bt, SEQ_PAD, HIDDEN)[:, 0, :]          # (bt, H)
    cls = _layernorm(cls, fin_g_ref[...], fin_b_ref[...])
    o_ref[0] = (jnp.dot(cls, head_w_ref[...],
                        preferred_element_type=jnp.float32) + head_b_ref[...])


def vit_forward(images, params):
    B = images.shape[0]
    bt, num_tiles = _batch_tiling(B)

    # Patch extraction (glue): NCHW -> (B, Np, 3*P*P) flattened in (c, ph, pw)
    # order, then tiled along the grid axis.
    g = GRID_SIDE
    patches = images.reshape(B, 3, g, PATCH, g, PATCH)
    patches = patches.transpose(0, 2, 4, 1, 3, 5).reshape(B, NUM_PATCHES, PATCH_DIM)
    patches = patches.reshape(num_tiles, bt * NUM_PATCHES, PATCH_DIM)

    # class token + position embeddings folded into one padded base token map
    base = jnp.concatenate(
        [params["class_token"] + params["pos_emb"][:, :1],
         params["pos_emb"][:, 1:]], axis=1)                       # (1, SEQ, H)
    base = jnp.pad(base, ((0, 0), (0, SEQ_PAD - SEQ), (0, 0)))    # (1, SEQ_PAD, H)

    kernel = functools.partial(_vit_fused_kernel, batch_tile=bt)
    full = lambda t: (0, 0)            # noqa: E731  (untiled 2-D weights)
    full3 = lambda t: (0, 0, 0)        # noqa: E731  (untiled 3-D weights)

    out = pl.pallas_call(
        kernel,
        out_shape=jax.ShapeDtypeStruct((num_tiles, bt, NUM_CLASSES), jnp.float32),
        grid=(num_tiles,),
        in_specs=[
            pl.BlockSpec((1, bt * NUM_PATCHES, PATCH_DIM), lambda t: (t, 0, 0)),
            pl.BlockSpec((PATCH_DIM, HIDDEN), full),                    # proj_w
            pl.BlockSpec((1, HIDDEN), full),                            # proj_b
            pl.BlockSpec((1, SEQ_PAD, HIDDEN), full3),                  # base
            pl.BlockSpec((NUM_LAYERS, 1, HIDDEN), full3),               # ln1_g
            pl.BlockSpec((NUM_LAYERS, 1, HIDDEN), full3),               # ln1_b
            pl.BlockSpec((NUM_LAYERS, HIDDEN, 3 * HIDDEN), full3),      # wqkv
            pl.BlockSpec((NUM_LAYERS, 1, HIDDEN), full3),               # ln2_g
            pl.BlockSpec((NUM_LAYERS, 1, HIDDEN), full3),               # ln2_b
            pl.BlockSpec((NUM_LAYERS, HIDDEN, MLP_DIM), full3),         # w1
            pl.BlockSpec((NUM_LAYERS, 1, MLP_DIM), full3),              # b1
            pl.BlockSpec((NUM_LAYERS, MLP_DIM, HIDDEN), full3),         # w2
            pl.BlockSpec((NUM_LAYERS, 1, HIDDEN), full3),               # b2
            pl.BlockSpec((1, HIDDEN), full),                            # final ln g
            pl.BlockSpec((1, HIDDEN), full),                            # final ln b
            pl.BlockSpec((HIDDEN, NUM_CLASSES), full),                  # head w
            pl.BlockSpec((1, NUM_CLASSES), full),                       # head b
        ],
        out_specs=pl.BlockSpec((1, bt, NUM_CLASSES), lambda t: (t, 0, 0)),
        scratch_shapes=[pltpu.VMEM((bt, SEQ_PAD, HIDDEN), jnp.float32)],
        compiler_params=pltpu.CompilerParams(dimension_semantics=("parallel",)),
    )(patches, params["proj_w"], params["proj_b"], base,
      params["ln1_g"], params["ln1_b"], params["wqkv"],
      params["ln2_g"], params["ln2_b"],
      params["w1"], params["b1"], params["w2"], params["b2"],
      params["final_ln_g"], params["final_ln_b"],
      params["head_w"], params["head_b"])
    return out.reshape(B, NUM_CLASSES)


# ------------------------------ parameters -----------------------------------
def _xavier_uniform(key, fan_in, fan_out):
    limit = math.sqrt(6.0 / (fan_in + fan_out))
    return jax.random.uniform(key, (fan_in, fan_out), jnp.float32, -limit, limit)


def init_params(key):
    keys = iter(jax.random.split(key, 4 + 5 * NUM_LAYERS))
    p = {}
    # Conv2d(3, D, kernel=stride=P) as a (3*P*P, D) matmul weight
    std = math.sqrt(1.0 / PATCH_DIM)
    p["proj_w"] = (jax.random.truncated_normal(
        next(keys), -2.0, 2.0, (PATCH_DIM, HIDDEN), jnp.float32) * std)
    bound = 1.0 / math.sqrt(PATCH_DIM)
    p["proj_b"] = jax.random.uniform(next(keys), (1, HIDDEN), jnp.float32,
                                     -bound, bound)
    p["class_token"] = jnp.zeros((1, 1, HIDDEN), jnp.float32)
    p["pos_emb"] = jax.random.normal(next(keys), (1, SEQ, HIDDEN),
                                     jnp.float32) * 0.02

    wqkv, w1, b1, w2, b2 = [], [], [], [], []
    for _ in range(NUM_LAYERS):
        wqkv.append(_xavier_uniform(next(keys), HIDDEN, 3 * HIDDEN))
        w1.append(_xavier_uniform(next(keys), HIDDEN, MLP_DIM))
        b1.append(jax.random.normal(next(keys), (1, MLP_DIM), jnp.float32) * 1e-6)
        w2.append(_xavier_uniform(next(keys), MLP_DIM, HIDDEN))
        b2.append(jax.random.normal(next(keys), (1, HIDDEN), jnp.float32) * 1e-6)
    p["wqkv"] = jnp.stack(wqkv)
    p["w1"], p["b1"] = jnp.stack(w1), jnp.stack(b1)
    p["w2"], p["b2"] = jnp.stack(w2), jnp.stack(b2)
    p["ln1_g"] = jnp.ones((NUM_LAYERS, 1, HIDDEN), jnp.float32)
    p["ln1_b"] = jnp.zeros((NUM_LAYERS, 1, HIDDEN), jnp.float32)
    p["ln2_g"] = jnp.ones((NUM_LAYERS, 1, HIDDEN), jnp.float32)
    p["ln2_b"] = jnp.zeros((NUM_LAYERS, 1, HIDDEN), jnp.float32)
    p["final_ln_g"] = jnp.ones((1, HIDDEN), jnp.float32)
    p["final_ln_b"] = jnp.zeros((1, HIDDEN), jnp.float32)
    p["head_w"] = jnp.zeros((HIDDEN, NUM_CLASSES), jnp.float32)  # module init zeroes head
    p["head_b"] = jnp.zeros((1, NUM_CLASSES), jnp.float32)
    return p


# -------------------- pure-JAX reference (for self-check) --------------------
def reference_forward(images, params):
    B = images.shape[0]
    g = GRID_SIDE
    patches = images.reshape(B, 3, g, PATCH, g, PATCH)
    patches = patches.transpose(0, 2, 4, 1, 3, 5).reshape(B, NUM_PATCHES, PATCH_DIM)
    x = patches @ params["proj_w"] + params["proj_b"]
    cls = jnp.broadcast_to(params["class_token"], (B, 1, HIDDEN))
    x = jnp.concatenate([cls, x], axis=1) + params["pos_emb"]

    def ln(v, gamma, beta):
        mu = v.mean(-1, keepdims=True)
        var = ((v - mu) ** 2).mean(-1, keepdims=True)
        return (v - mu) / jnp.sqrt(var + EPS) * gamma + beta

    for l in range(NUM_LAYERS):
        h = ln(x, params["ln1_g"][l], params["ln1_b"][l])
        qkv = h @ params["wqkv"][l]
        q, k, v = jnp.split(qkv, 3, axis=-1)
        split = lambda t: t.reshape(B, SEQ, NUM_HEADS, HEAD_DIM).transpose(0, 2, 1, 3)
        q, k, v = split(q), split(k), split(v)
        s = jnp.einsum("bhqd,bhkd->bhqk", q, k) * INV_SCALE
        a = jax.nn.softmax(s, axis=-1)
        o = jnp.einsum("bhqk,bhkd->bhqd", a, v).transpose(0, 2, 1, 3)
        x = x + o.reshape(B, SEQ, HIDDEN)
        h2 = ln(x, params["ln2_g"][l], params["ln2_b"][l])
        m = h2 @ params["w1"][l] + params["b1"][l]
        m = 0.5 * m * (1.0 + jax.scipy.special.erf(m / jnp.sqrt(2.0)))  # exact GELU
        x = x + m @ params["w2"][l] + params["b2"][l]

    xc = ln(x[:, 0, :], params["final_ln_g"], params["final_ln_b"])
    return xc @ params["head_w"] + params["head_b"]


# ---------------------------------- main -------------------------------------
if __name__ == "__main__":
    key = jax.random.PRNGKey(0)
    pkey, ikey, hk1, hk2 = jax.random.split(key, 4)
    params = init_params(pkey)
    # The module init zeroes the classifier head; use non-zero head weights in
    # the smoke test so the numerical self-check below is non-trivial.
    params["head_w"] = jax.random.normal(hk1, (HIDDEN, NUM_CLASSES), jnp.float32) * 0.2
    params["head_b"] = jax.random.normal(hk2, (1, NUM_CLASSES), jnp.float32) * 0.1

    images = jax.random.normal(ikey, (2, 3, IMAGE_SIZE, IMAGE_SIZE), jnp.float32)

    logits = jax.block_until_ready(jax.jit(vit_forward)(images, params))
    assert logits.shape == (2, NUM_CLASSES), logits.shape
    assert bool(jnp.all(jnp.isfinite(logits)))

    ref = reference_forward(images, params)
    max_err = float(jnp.max(jnp.abs(logits - ref)))
    assert max_err < 1e-2, f"max abs error vs reference: {max_err}"
    print("KERNEL_OK")
</pallas_src>

<mosaic_0001>
module attributes {stable_mosaic.version = 11 : i64} {
  func.func @_vit_fused_kernel(%arg0: i32, %arg1: memref<1x16x48xf32, #tpu.memory_space<vmem>>, %arg2: memref<48x32xf32, #tpu.memory_space<vmem>>, %arg3: memref<1x32xf32, #tpu.memory_space<vmem>>, %arg4: memref<1x24x32xf32, #tpu.memory_space<vmem>>, %arg5: memref<2x1x32xf32, #tpu.memory_space<vmem>>, %arg6: memref<2x1x32xf32, #tpu.memory_space<vmem>>, %arg7: memref<2x32x96xf32, #tpu.memory_space<vmem>>, %arg8: memref<2x1x32xf32, #tpu.memory_space<vmem>>, %arg9: memref<2x1x32xf32, #tpu.memory_space<vmem>>, %arg10: memref<2x32x64xf32, #tpu.memory_space<vmem>>, %arg11: memref<2x1x64xf32, #tpu.memory_space<vmem>>, %arg12: memref<2x64x32xf32, #tpu.memory_space<vmem>>, %arg13: memref<2x1x32xf32, #tpu.memory_space<vmem>>, %arg14: memref<1x32xf32, #tpu.memory_space<vmem>>, %arg15: memref<1x32xf32, #tpu.memory_space<vmem>>, %arg16: memref<32x10xf32, #tpu.memory_space<vmem>>, %arg17: memref<1x10xf32, #tpu.memory_space<vmem>>, %arg18: memref<1x1x10xf32, #tpu.memory_space<vmem>>, %arg19: memref<1x24x32xf32, #tpu.memory_space<vmem>>) attributes {dimension_semantics = [#tpu.dimension_semantics<parallel>], iteration_bounds = array<i64: 2>, scalar_prefetch = 0 : i64, scratch_operands = 1 : i64, tpu.core_type = #tpu.core_type<tc>, window_params = [{transform_indices = @transform_0, window_bounds = array<i64: 1, 16, 48>}, {pipeline_mode = #tpu.pipeline_mode<synchronous>, transform_indices = @transform_1, window_bounds = array<i64: 48, 32>}, {pipeline_mode = #tpu.pipeline_mode<synchronous>, transform_indices = @transform_2, window_bounds = array<i64: 1, 32>}, {pipeline_mode = #tpu.pipeline_mode<synchronous>, transform_indices = @transform_3, window_bounds = array<i64: 1, 24, 32>}, {pipeline_mode = #tpu.pipeline_mode<synchronous>, transform_indices = @transform_4, window_bounds = array<i64: 2, 1, 32>}, {pipeline_mode = #tpu.pipeline_mode<synchronous>, transform_indices = @transform_5, window_bounds = array<i64: 2, 1, 32>}, {pipeline_mode = #tpu.pipeline_mode<synchronous>, transform_indices = @transform_6, window_bounds = array<i64: 2, 32, 96>}, {pipeline_mode = #tpu.pipeline_mode<synchronous>, transform_indices = @transform_7, window_bounds = array<i64: 2, 1, 32>}, {pipeline_mode = #tpu.pipeline_mode<synchronous>, transform_indices = @transform_8, window_bounds = array<i64: 2, 1, 32>}, {pipeline_mode = #tpu.pipeline_mode<synchronous>, transform_indices = @transform_9, window_bounds = array<i64: 2, 32, 64>}, {pipeline_mode = #tpu.pipeline_mode<synchronous>, transform_indices = @transform_10, window_bounds = array<i64: 2, 1, 64>}, {pipeline_mode = #tpu.pipeline_mode<synchronous>, transform_indices = @transform_11, window_bounds = array<i64: 2, 64, 32>}, {pipeline_mode = #tpu.pipeline_mode<synchronous>, transform_indices = @transform_12, window_bounds = array<i64: 2, 1, 32>}, {pipeline_mode = #tpu.pipeline_mode<synchronous>, transform_indices = @transform_13, window_bounds = array<i64: 1, 32>}, {pipeline_mode = #tpu.pipeline_mode<synchronous>, transform_indices = @transform_14, window_bounds = array<i64: 1, 32>}, {pipeline_mode = #tpu.pipeline_mode<synchronous>, transform_indices = @transform_15, window_bounds = array<i64: 32, 10>}, {pipeline_mode = #tpu.pipeline_mode<synchronous>, transform_indices = @transform_16, window_bounds = array<i64: 1, 10>}, {transform_indices = @transform_17, window_bounds = array<i64: 1, 1, 10>}]} {
    %c0 = arith.constant 0 : index
    %c0_0 = arith.constant 0 : index
    %c0_1 = arith.constant 0 : index
    %0 = vector.load %arg1[%c0, %c0_0, %c0_1] : memref<1x16x48xf32, #tpu.memory_space<vmem>>, vector<1x16x48xf32>
    %1 = vector.shape_cast %0 : vector<1x16x48xf32> to vector<16x48xf32>
    %c0_2 = arith.constant 0 : index
    %c0_3 = arith.constant 0 : index
    %2 = vector.load %arg2[%c0_2, %c0_3] : memref<48x32xf32, #tpu.memory_space<vmem>>, vector<48x32xf32>
    %cst = arith.constant dense<0.000000e+00> : vector<16x32xf32>
    %3 = tpu.matmul %1, %2, %cst {dimension_numbers = #tpu.dot_dimension_numbers<[1], [0], [0], [1], [0, 0, 1, 1], [], []>} : vector<16x48xf32>, vector<48x32xf32>, vector<16x32xf32> -> vector<16x32xf32>
    %c0_4 = arith.constant 0 : index
    %c0_5 = arith.constant 0 : index
    %4 = vector.load %arg3[%c0_4, %c0_5] : memref<1x32xf32, #tpu.memory_space<vmem>>, vector<1x32xf32>
    %5 = vector.broadcast %4 : vector<1x32xf32> to vector<16x32xf32>
    %6 = arith.addf %3, %5 : vector<16x32xf32>
    %7 = vector.shape_cast %6 : vector<16x32xf32> to vector<1x16x32xf32>
    %c0_6 = arith.constant 0 : index
    %c0_7 = arith.constant 0 : index
    %c0_8 = arith.constant 0 : index
    %8 = vector.load %arg4[%c0_6, %c0_7, %c0_8] : memref<1x24x32xf32, #tpu.memory_space<vmem>>, vector<1x24x32xf32>
    %c0_9 = arith.constant 0 : index
    %c0_10 = arith.constant 0 : index
    %c0_11 = arith.constant 0 : index
    %9 = vector.load %arg19[%c0_9, %c0_10, %c0_11] : memref<1x24x32xf32, #tpu.memory_space<vmem>>, vector<1x24x32xf32>
    tpu.vector_store %arg19[%c0_9, %c0_10, %c0_11], %8 {strides = array<i32>} : memref<1x24x32xf32, #tpu.memory_space<vmem>>, vector<1x24x32xf32>,
    %c0_12 = arith.constant 0 : index
    %c1 = arith.constant 1 : index
    %c0_13 = arith.constant 0 : index
    %10 = vector.load %arg19[%c0_12, %c1, %c0_13] : memref<1x24x32xf32, #tpu.memory_space<vmem>>, vector<1x16x32xf32>
    %11 = arith.addf %10, %7 : vector<1x16x32xf32>
    %c0_14 = arith.constant 0 : index
    %c1_15 = arith.constant 1 : index
    %c0_16 = arith.constant 0 : index
    %12 = vector.load %arg19[%c0_14, %c1_15, %c0_16] : memref<1x24x32xf32, #tpu.memory_space<vmem>>, vector<1x16x32xf32>
    tpu.vector_store %arg19[%c0_14, %c1_15, %c0_16], %11 {strides = array<i32>} : memref<1x24x32xf32, #tpu.memory_space<vmem>>, vector<1x16x32xf32>,
    %c0_17 = arith.constant 0 : index
    %c0_18 = arith.constant 0 : index
    %c0_19 = arith.constant 0 : index
    %13 = vector.load %arg19[%c0_17, %c0_18, %c0_19] : memref<1x24x32xf32, #tpu.memory_space<vmem>>, vector<1x24x32xf32>
    %14 = vector.shape_cast %13 : vector<1x24x32xf32> to vector<24x32xf32>
    %15 = tpu.iota {dimensions = array<i32: 2>} : vector<1x1x24xi32>
    %c17_i32 = arith.constant 17 : i32
    %16 = vector.broadcast %c17_i32 : i32 to vector<1x1x24xi32>
    %17 = arith.cmpi slt, %15, %16 : vector<1x1x24xi32>
    %cst_20 = arith.constant 0.000000e+00 : f32
    %cst_21 = arith.constant -1.000000e+30 : f32
    %18 = vector.broadcast %cst_20 : f32 to vector<1x1x24xf32>
    %19 = vector.broadcast %cst_21 : f32 to vector<1x1x24xf32>
    %20 = arith.select %17, %18, %19 : vector<1x1x24xi1>, vector<1x1x24xf32>
    %c0_22 = arith.constant 0 : index
    %c0_23 = arith.constant 0 : index
    %c0_24 = arith.constant 0 : index
    %21 = vector.load %arg5[%c0_22, %c0_23, %c0_24] : memref<2x1x32xf32, #tpu.memory_space<vmem>>, vector<1x1x32xf32>
    %22 = vector.shape_cast %21 : vector<1x1x32xf32> to vector<1x32xf32>
    %c0_25 = arith.constant 0 : index
    %c0_26 = arith.constant 0 : index
    %c0_27 = arith.constant 0 : index
    %23 = vector.load %arg6[%c0_25, %c0_26, %c0_27] : memref<2x1x32xf32, #tpu.memory_space<vmem>>, vector<1x1x32xf32>
    %24 = vector.shape_cast %23 : vector<1x1x32xf32> to vector<1x32xf32>
    %cst_28 = arith.constant dense<0.000000e+00> : vector<24xf32>
    %25 = vector.multi_reduction <add>, %14, %cst_28 [1] : vector<24x32xf32> to vector<24xf32>
    %26 = vector.shape_cast %25 : vector<24xf32> to vector<24x1xf32>
    %cst_29 = arith.constant 3.200000e+01 : f32
    %27 = vector.broadcast %cst_29 : f32 to vector<24x1xf32>
    %28 = arith.divf %26, %27 : vector<24x1xf32>
    %29 = vector.broadcast %28 : vector<24x1xf32> to vector<24x32xf32>
    %30 = arith.subf %14, %29 : vector<24x32xf32>
    %31 = arith.mulf %30, %30 : vector<24x32xf32>
    %cst_30 = arith.constant dense<0.000000e+00> : vector<24xf32>
    %32 = vector.multi_reduction <add>, %31, %cst_30 [1] : vector<24x32xf32> to vector<24xf32>
    %33 = vector.shape_cast %32 : vector<24xf32> to vector<24x1xf32>
    %cst_31 = arith.constant 3.200000e+01 : f32
    %34 = vector.broadcast %cst_31 : f32 to vector<24x1xf32>
    %35 = arith.divf %33, %34 : vector<24x1xf32>
    %36 = vector.broadcast %28 : vector<24x1xf32> to vector<24x32xf32>
    %37 = arith.subf %14, %36 : vector<24x32xf32>
    %cst_32 = arith.constant 9.99999997E-7 : f32
    %38 = vector.broadcast %cst_32 : f32 to vector<24x1xf32>
    %39 = arith.addf %35, %38 : vector<24x1xf32>
    %40 = math.rsqrt %39 : vector<24x1xf32>
    %41 = vector.broadcast %40 : vector<24x1xf32> to vector<24x32xf32>
    %42 = arith.mulf %37, %41 : vector<24x32xf32>
    %43 = vector.broadcast %22 : vector<1x32xf32> to vector<24x32xf32>
    %44 = arith.mulf %42, %43 : vector<24x32xf32>
    %45 = vector.broadcast %24 : vector<1x32xf32> to vector<24x32xf32>
    %46 = arith.addf %44, %45 : vector<24x32xf32>
    %c0_33 = arith.constant 0 : index
    %c0_34 = arith.constant 0 : index
    %c0_35 = arith.constant 0 : index
    %47 = vector.load %arg7[%c0_33, %c0_34, %c0_35] : memref<2x32x96xf32, #tpu.memory_space<vmem>>, vector<1x32x96xf32>
    %48 = vector.shape_cast %47 : vector<1x32x96xf32> to vector<32x96xf32>
    %cst_36 = arith.constant dense<0.000000e+00> : vector<24x96xf32>
    %49 = tpu.matmul %46, %48, %cst_36 {dimension_numbers = #tpu.dot_dimension_numbers<[1], [0], [0], [1], [0, 0, 1, 1], [], []>} : vector<24x32xf32>, vector<32x96xf32>, vector<24x96xf32> -> vector<24x96xf32>
    %50 = vector.extract_strided_slice %49 {offsets = [0, 0], sizes = [24, 8], strides = [1, 1]} : vector<24x96xf32> to vector<24x8xf32>
    %51 = vector.shape_cast %50 : vector<24x8xf32> to vector<1x24x8xf32>
    %52 = vector.extract_strided_slice %49 {offsets = [0, 8], sizes = [24, 8], strides = [1, 1]} : vector<24x96xf32> to vector<24x8xf32>
    %53 = vector.shape_cast %52 : vector<24x8xf32> to vector<1x24x8xf32>
    %54 = vector.extract_strided_slice %49 {offsets = [0, 16], sizes = [24, 8], strides = [1, 1]} : vector<24x96xf32> to vector<24x8xf32>
    %55 = vector.shape_cast %54 : vector<24x8xf32> to vector<1x24x8xf32>
    %56 = vector.extract_strided_slice %49 {offsets = [0, 24], sizes = [24, 8], strides = [1, 1]} : vector<24x96xf32> to vector<24x8xf32>
    %57 = vector.shape_cast %56 : vector<24x8xf32> to vector<1x24x8xf32>
    %58 = tpu.concatenate %51, %53, %55, %57 in 0 : vector<1x24x8xf32>, vector<1x24x8xf32>, vector<1x24x8xf32>, vector<1x24x8xf32> -> vector<4x24x8xf32>
    %59 = vector.extract_strided_slice %49 {offsets = [0, 32], sizes = [24, 8], strides = [1, 1]} : vector<24x96xf32> to vector<24x8xf32>
    %60 = vector.shape_cast %59 : vector<24x8xf32> to vector<1x24x8xf32>
    %61 = vector.extract_strided_slice %49 {offsets = [0, 40], sizes = [24, 8], strides = [1, 1]} : vector<24x96xf32> to vector<24x8xf32>
    %62 = vector.shape_cast %61 : vector<24x8xf32> to vector<1x24x8xf32>
    %63 = vector.extract_strided_slice %49 {offsets = [0, 48], sizes = [24, 8], strides = [1, 1]} : vector<24x96xf32> to vector<24x8xf32>
    %64 = vector.shape_cast %63 : vector<24x8xf32> to vector<1x24x8xf32>
    %65 = vector.extract_strided_slice %49 {offsets = [0, 56], sizes = [24, 8], strides = [1, 1]} : vector<24x96xf32> to vector<24x8xf32>
    %66 = vector.shape_cast %65 : vector<24x8xf32> to vector<1x24x8xf32>
    %67 = tpu.concatenate %60, %62, %64, %66 in 0 : vector<1x24x8xf32>, vector<1x24x8xf32>, vector<1x24x8xf32>, vector<1x24x8xf32> -> vector<4x24x8xf32>
    %68 = vector.extract_strided_slice %49 {offsets = [0, 64], sizes = [24, 8], strides = [1, 1]} : vector<24x96xf32> to vector<24x8xf32>
    %69 = vector.shape_cast %68 : vector<24x8xf32> to vector<1x24x8xf32>
    %70 = vector.extract_strided_slice %49 {offsets = [0, 72], sizes = [24, 8], strides = [1, 1]} : vector<24x96xf32> to vector<24x8xf32>
    %71 = vector.shape_cast %70 : vector<24x8xf32> to vector<1x24x8xf32>
    %72 = vector.extract_strided_slice %49 {offsets = [0, 80], sizes = [24, 8], strides = [1, 1]} : vector<24x96xf32> to vector<24x8xf32>
    %73 = vector.shape_cast %72 : vector<24x8xf32> to vector<1x24x8xf32>
    %74 = vector.extract_strided_slice %49 {offsets = [0, 88], sizes = [24, 8], strides = [1, 1]} : vector<24x96xf32> to vector<24x8xf32>
    %75 = vector.shape_cast %74 : vector<24x8xf32> to vector<1x24x8xf32>
    %76 = tpu.concatenate %69, %71, %73, %75 in 0 : vector<1x24x8xf32>, vector<1x24x8xf32>, vector<1x24x8xf32>, vector<1x24x8xf32> -> vector<4x24x8xf32>
    "tpu.trace_start"() <{level = 10 : i32, message = "bqd,bkd->bqk"}> : () -> ()
    %cst_37 = arith.constant dense<0.000000e+00> : vector<4x24x24xf32>
    %77 = tpu.matmul %58, %67, %cst_37 {dimension_numbers = #tpu.dot_dimension_numbers<[2], [2], [1], [1], [0, 0, 0, 1, 1, 1], [0], [0]>} : vector<4x24x8xf32>, vector<4x24x8xf32>, vector<4x24x24xf32> -> vector<4x24x24xf32>
    "tpu.trace_stop"() : () -> ()
    %cst_38 = arith.constant 0.353553385 : f32
    %78 = vector.broadcast %cst_38 : f32 to vector<4x24x24xf32>
    %79 = arith.mulf %77, %78 : vector<4x24x24xf32>
    %80 = vector.broadcast %20 : vector<1x1x24xf32> to vector<4x24x24xf32>
    %81 = arith.addf %79, %80 : vector<4x24x24xf32>
    %cst_39 = arith.constant dense<0xFF800000> : vector<4x24xf32>
    %82 = vector.multi_reduction <maximumf>, %81, %cst_39 [2] : vector<4x24x24xf32> to vector<4x24xf32>
    %83 = vector.shape_cast %82 : vector<4x24xf32> to vector<4x24x1xf32>
    %84 = vector.broadcast %83 : vector<4x24x1xf32> to vector<4x24x24xf32>
    %85 = arith.subf %81, %84 : vector<4x24x24xf32>
    %86 = math.exp %85 : vector<4x24x24xf32>
    %cst_40 = arith.constant dense<0.000000e+00> : vector<4x24xf32>
    %87 = vector.multi_reduction <add>, %86, %cst_40 [2] : vector<4x24x24xf32> to vector<4x24xf32>
    %88 = vector.shape_cast %87 : vector<4x24xf32> to vector<4x24x1xf32>
    %89 = tpu.reciprocal %88 {approx = true} : vector<4x24x1xf32> -> vector<4x24x1xf32>
    %90 = vector.broadcast %89 : vector<4x24x1xf32> to vector<4x24x24xf32>
    %91 = arith.mulf %86, %90 : vector<4x24x24xf32>
    "tpu.trace_start"() <{level = 10 : i32, message = "bqk,bkd->bqd"}> : () -> ()
    %cst_41 = arith.constant dense<0.000000e+00> : vector<4x24x8xf32>
    %92 = tpu.matmul %91, %76, %cst_41 {dimension_numbers = #tpu.dot_dimension_numbers<[2], [1], [1], [2], [0, 0, 0, 1, 1, 2], [0], [0]>} : vector<4x24x24xf32>, vector<4x24x8xf32>, vector<4x24x8xf32> -> vector<4x24x8xf32>
    "tpu.trace_stop"() : () -> ()
    %93 = vector.extract_strided_slice %92 {offsets = [0, 0, 0], sizes = [1, 24, 8], strides = [1, 1, 1]} : vector<4x24x8xf32> to vector<1x24x8xf32>
    %94 = vector.extract_strided_slice %92 {offsets = [1, 0, 0], sizes = [1, 24, 8], strides = [1, 1, 1]} : vector<4x24x8xf32> to vector<1x24x8xf32>
    %95 = vector.extract_strided_slice %92 {offsets = [2, 0, 0], sizes = [1, 24, 8], strides = [1, 1, 1]} : vector<4x24x8xf32> to vector<1x24x8xf32>
    %96 = vector.extract_strided_slice %92 {offsets = [3, 0, 0], sizes = [1, 24, 8], strides = [1, 1, 1]} : vector<4x24x8xf32> to vector<1x24x8xf32>
    %97 = tpu.concatenate %93, %94, %95, %96 in 2 : vector<1x24x8xf32>, vector<1x24x8xf32>, vector<1x24x8xf32>, vector<1x24x8xf32> -> vector<1x24x32xf32>
    %98 = vector.shape_cast %97 : vector<1x24x32xf32> to vector<24x32xf32>
    %99 = arith.addf %14, %98 : vector<24x32xf32>
    %c0_42 = arith.constant 0 : index
    %c0_43 = arith.constant 0 : index
    %c0_44 = arith.constant 0 : index
    %100 = vector.load %arg8[%c0_42, %c0_43, %c0_44] : memref<2x1x32xf32, #tpu.memory_space<vmem>>, vector<1x1x32xf32>
    %101 = vector.shape_cast %100 : vector<1x1x32xf32> to vector<1x32xf32>
    %c0_45 = arith.constant 0 : index
    %c0_46 = arith.constant 0 : index
    %c0_47 = arith.constant 0 : index
    %102 = vector.load %arg9[%c0_45, %c0_46, %c0_47] : memref<2x1x32xf32, #tpu.memory_space<vmem>>, vector<1x1x32xf32>
    %103 = vector.shape_cast %102 : vector<1x1x32xf32> to vector<1x32xf32>
    %cst_48 = arith.constant dense<0.000000e+00> : vector<24xf32>
    %104 = vector.multi_reduction <add>, %99, %cst_48 [1] : vector<24x32xf32> to vector<24xf32>
    %105 = vector.shape_cast %104 : vector<24xf32> to vector<24x1xf32>
    %cst_49 = arith.constant 3.200000e+01 : f32
    %106 = vector.broadcast %cst_49 : f32 to vector<24x1xf32>
    %107 = arith.divf %105, %106 : vector<24x1xf32>
    %108 = vector.broadcast %107 : vector<24x1xf32> to vector<24x32xf32>
    %109 = arith.subf %99, %108 : vector<24x32xf32>
    %110 = arith.mulf %109, %109 : vector<24x32xf32>
    %cst_50 = arith.constant dense<0.000000e+00> : vector<24xf32>
    %111 = vector.multi_reduction <add>, %110, %cst_50 [1] : vector<24x32xf32> to vector<24xf32>
    %112 = vector.shape_cast %111 : vector<24xf32> to vector<24x1xf32>
    %cst_51 = arith.constant 3.200000e+01 : f32
    %113 = vector.broadcast %cst_51 : f32 to vector<24x1xf32>
    %114 = arith.divf %112, %113 : vector<24x1xf32>
    %115 = vector.broadcast %107 : vector<24x1xf32> to vector<24x32xf32>
    %116 = arith.subf %99, %115 : vector<24x32xf32>
    %cst_52 = arith.constant 9.99999997E-7 : f32
    %117 = vector.broadcast %cst_52 : f32 to vector<24x1xf32>
    %118 = arith.addf %114, %117 : vector<24x1xf32>
    %119 = math.rsqrt %118 : vector<24x1xf32>
    %120 = vector.broadcast %119 : vector<24x1xf32> to vector<24x32xf32>
    %121 = arith.mulf %116, %120 : vector<24x32xf32>
    %122 = vector.broadcast %101 : vector<1x32xf32> to vector<24x32xf32>
    %123 = arith.mulf %121, %122 : vector<24x32xf32>
    %124 = vector.broadcast %103 : vector<1x32xf32> to vector<24x32xf32>
    %125 = arith.addf %123, %124 : vector<24x32xf32>
    %c0_53 = arith.constant 0 : index
    %c0_54 = arith.constant 0 : index
    %c0_55 = arith.constant 0 : index
    %126 = vector.load %arg10[%c0_53, %c0_54, %c0_55] : memref<2x32x64xf32, #tpu.memory_space<vmem>>, vector<1x32x64xf32>
    %127 = vector.shape_cast %126 : vector<1x32x64xf32> to vector<32x64xf32>
    %cst_56 = arith.constant dense<0.000000e+00> : vector<24x64xf32>
    %128 = tpu.matmul %125, %127, %cst_56 {dimension_numbers = #tpu.dot_dimension_numbers<[1], [0], [0], [1], [0, 0, 1, 1], [], []>} : vector<24x32xf32>, vector<32x64xf32>, vector<24x64xf32> -> vector<24x64xf32>
    %c0_57 = arith.constant 0 : index
    %c0_58 = arith.constant 0 : index
    %c0_59 = arith.constant 0 : index
    %129 = vector.load %arg11[%c0_57, %c0_58, %c0_59] : memref<2x1x64xf32, #tpu.memory_space<vmem>>, vector<1x1x64xf32>
    %130 = vector.shape_cast %129 : vector<1x1x64xf32> to vector<1x64xf32>
    %131 = vector.broadcast %130 : vector<1x64xf32> to vector<24x64xf32>
    %132 = arith.addf %128, %131 : vector<24x64xf32>
    %cst_60 = arith.constant 5.000000e-01 : f32
    %133 = vector.broadcast %cst_60 : f32 to vector<24x64xf32>
    %134 = arith.mulf %133, %132 : vector<24x64xf32>
    %cst_61 = arith.constant 0.707106769 : f32
    %135 = vector.broadcast %cst_61 : f32 to vector<24x64xf32>
    %136 = arith.mulf %132, %135 : vector<24x64xf32>
    %137 = math.absf %136 : vector<24x64xf32>
    %cst_62 = arith.constant 0.327591091 : f32
    %138 = vector.broadcast %cst_62 : f32 to vector<24x64xf32>
    %139 = arith.mulf %138, %137 : vector<24x64xf32>
    %cst_63 = arith.constant 1.000000e+00 : f32
    %140 = vector.broadcast %cst_63 : f32 to vector<24x64xf32>
    %141 = arith.addf %140, %139 : vector<24x64xf32>
    %cst_64 = arith.constant 1.000000e+00 : f32
    %142 = vector.broadcast %cst_64 : f32 to vector<24x64xf32>
    %143 = arith.divf %142, %141 : vector<24x64xf32>
    %cst_65 = arith.constant 1.06140542 : f32
    %144 = vector.broadcast %cst_65 : f32 to vector<24x64xf32>
    %145 = arith.mulf %144, %143 : vector<24x64xf32>
    %cst_66 = arith.constant -1.45315206 : f32
    %146 = vector.broadcast %cst_66 : f32 to vector<24x64xf32>
    %147 = arith.addf %145, %146 : vector<24x64xf32>
    %148 = arith.mulf %147, %143 : vector<24x64xf32>
    %cst_67 = arith.constant 1.42141378 : f32
    %149 = vector.broadcast %cst_67 : f32 to vector<24x64xf32>
    %150 = arith.addf %148, %149 : vector<24x64xf32>
    %151 = arith.mulf %150, %143 : vector<24x64xf32>
    %cst_68 = arith.constant -0.284496725 : f32
    %152 = vector.broadcast %cst_68 : f32 to vector<24x64xf32>
    %153 = arith.addf %151, %152 : vector<24x64xf32>
    %154 = arith.mulf %153, %143 : vector<24x64xf32>
    %cst_69 = arith.constant 0.254829586 : f32
    %155 = vector.broadcast %cst_69 : f32 to vector<24x64xf32>
    %156 = arith.addf %154, %155 : vector<24x64xf32>
    %157 = arith.mulf %156, %143 : vector<24x64xf32>
    %cst_70 = arith.constant 0.000000e+00 : f32
    %158 = vector.broadcast %cst_70 : f32 to vector<24x64xf32>
    %159 = arith.subf %158, %137 : vector<24x64xf32>
    %160 = arith.mulf %159, %137 : vector<24x64xf32>
    %161 = math.exp %160 : vector<24x64xf32>
    %162 = arith.mulf %157, %161 : vector<24x64xf32>
    %cst_71 = arith.constant 1.000000e+00 : f32
    %163 = vector.broadcast %cst_71 : f32 to vector<24x64xf32>
    %164 = arith.subf %163, %162 : vector<24x64xf32>
    %cst_72 = arith.constant 0.000000e+00 : f32
    %165 = vector.broadcast %cst_72 : f32 to vector<24x64xf32>
    %166 = arith.cmpf oge, %136, %165 : vector<24x64xf32>
    %cst_73 = arith.constant 0.000000e+00 : f32
    %167 = vector.broadcast %cst_73 : f32 to vector<24x64xf32>
    %168 = arith.subf %167, %164 : vector<24x64xf32>
    %169 = arith.select %166, %164, %168 : vector<24x64xi1>, vector<24x64xf32>
    %cst_74 = arith.constant 1.000000e+00 : f32
    %170 = vector.broadcast %cst_74 : f32 to vector<24x64xf32>
    %171 = arith.addf %170, %169 : vector<24x64xf32>
    %172 = arith.mulf %134, %171 : vector<24x64xf32>
    %c0_75 = arith.constant 0 : index
    %c0_76 = arith.constant 0 : index
    %c0_77 = arith.constant 0 : index
    %173 = vector.load %arg12[%c0_75, %c0_76, %c0_77] : memref<2x64x32xf32, #tpu.memory_space<vmem>>, vector<1x64x32xf32>
    %174 = vector.shape_cast %173 : vector<1x64x32xf32> to vector<64x32xf32>
    %cst_78 = arith.constant dense<0.000000e+00> : vector<24x32xf32>
    %175 = tpu.matmul %172, %174, %cst_78 {dimension_numbers = #tpu.dot_dimension_numbers<[1], [0], [0], [1], [0, 0, 1, 1], [], []>} : vector<24x64xf32>, vector<64x32xf32>, vector<24x32xf32> -> vector<24x32xf32>
    %176 = arith.addf %99, %175 : vector<24x32xf32>
    %c0_79 = arith.constant 0 : index
    %c0_80 = arith.constant 0 : index
    %c0_81 = arith.constant 0 : index
    %177 = vector.load %arg13[%c0_79, %c0_80, %c0_81] : memref<2x1x32xf32, #tpu.memory_space<vmem>>, vector<1x1x32xf32>
    %178 = vector.shape_cast %177 : vector<1x1x32xf32> to vector<1x32xf32>
    %179 = vector.broadcast %178 : vector<1x32xf32> to vector<24x32xf32>
    %180 = arith.addf %176, %179 : vector<24x32xf32>
    %c1_82 = arith.constant 1 : index
    %c0_83 = arith.constant 0 : index
    %c0_84 = arith.constant 0 : index
    %181 = vector.load %arg5[%c1_82, %c0_83, %c0_84] : memref<2x1x32xf32, #tpu.memory_space<vmem>>, vector<1x1x32xf32>
    %182 = vector.shape_cast %181 : vector<1x1x32xf32> to vector<1x32xf32>
    %c1_85 = arith.constant 1 : index
    %c0_86 = arith.constant 0 : index
    %c0_87 = arith.constant 0 : index
    %183 = vector.load %arg6[%c1_85, %c0_86, %c0_87] : memref<2x1x32xf32, #tpu.memory_space<vmem>>, vector<1x1x32xf32>
    %184 = vector.shape_cast %183 : vector<1x1x32xf32> to vector<1x32xf32>
    %cst_88 = arith.constant dense<0.000000e+00> : vector<24xf32>
    %185 = vector.multi_reduction <add>, %180, %cst_88 [1] : vector<24x32xf32> to vector<24xf32>
    %186 = vector.shape_cast %185 : vector<24xf32> to vector<24x1xf32>
    %cst_89 = arith.constant 3.200000e+01 : f32
    %187 = vector.broadcast %cst_89 : f32 to vector<24x1xf32>
    %188 = arith.divf %186, %187 : vector<24x1xf32>
    %189 = vector.broadcast %188 : vector<24x1xf32> to vector<24x32xf32>
    %190 = arith.subf %180, %189 : vector<24x32xf32>
    %191 = arith.mulf %190, %190 : vector<24x32xf32>
    %cst_90 = arith.constant dense<0.000000e+00> : vector<24xf32>
    %192 = vector.multi_reduction <add>, %191, %cst_90 [1] : vector<24x32xf32> to vector<24xf32>
    %193 = vector.shape_cast %192 : vector<24xf32> to vector<24x1xf32>
    %cst_91 = arith.constant 3.200000e+01 : f32
    %194 = vector.broadcast %cst_91 : f32 to vector<24x1xf32>
    %195 = arith.divf %193, %194 : vector<24x1xf32>
    %196 = vector.broadcast %188 : vector<24x1xf32> to vector<24x32xf32>
    %197 = arith.subf %180, %196 : vector<24x32xf32>
    %cst_92 = arith.constant 9.99999997E-7 : f32
    %198 = vector.broadcast %cst_92 : f32 to vector<24x1xf32>
    %199 = arith.addf %195, %198 : vector<24x1xf32>
    %200 = math.rsqrt %199 : vector<24x1xf32>
    %201 = vector.broadcast %200 : vector<24x1xf32> to vector<24x32xf32>
    %202 = arith.mulf %197, %201 : vector<24x32xf32>
    %203 = vector.broadcast %182 : vector<1x32xf32> to vector<24x32xf32>
    %204 = arith.mulf %202, %203 : vector<24x32xf32>
    %205 = vector.broadcast %184 : vector<1x32xf32> to vector<24x32xf32>
    %206 = arith.addf %204, %205 : vector<24x32xf32>
    %c1_93 = arith.constant 1 : index
    %c0_94 = arith.constant 0 : index
    %c0_95 = arith.constant 0 : index
    %207 = vector.load %arg7[%c1_93, %c0_94, %c0_95] : memref<2x32x96xf32, #tpu.memory_space<vmem>>, vector<1x32x96xf32>
    %208 = vector.shape_cast %207 : vector<1x32x96xf32> to vector<32x96xf32>
    %cst_96 = arith.constant dense<0.000000e+00> : vector<24x96xf32>
    %209 = tpu.matmul %206, %208, %cst_96 {dimension_numbers = #tpu.dot_dimension_numbers<[1], [0], [0], [1], [0, 0, 1, 1], [], []>} : vector<24x32xf32>, vector<32x96xf32>, vector<24x96xf32> -> vector<24x96xf32>
    %210 = vector.extract_strided_slice %209 {offsets = [0, 0], sizes = [24, 8], strides = [1, 1]} : vector<24x96xf32> to vector<24x8xf32>
    %211 = vector.shape_cast %210 : vector<24x8xf32> to vector<1x24x8xf32>
    %212 = vector.extract_strided_slice %209 {offsets = [0, 8], sizes = [24, 8], strides = [1, 1]} : vector<24x96xf32> to vector<24x8xf32>
    %213 = vector.shape_cast %212 : vector<24x8xf32> to vector<1x24x8xf32>
    %214 = vector.extract_strided_slice %209 {offsets = [0, 16], sizes = [24, 8], strides = [1, 1]} : vector<24x96xf32> to vector<24x8xf32>
    %215 = vector.shape_cast %214 : vector<24x8xf32> to vector<1x24x8xf32>
    %216 = vector.extract_strided_slice %209 {offsets = [0, 24], sizes = [24, 8], strides = [1, 1]} : vector<24x96xf32> to vector<24x8xf32>
    %217 = vector.shape_cast %216 : vector<24x8xf32> to vector<1x24x8xf32>
    %218 = tpu.concatenate %211, %213, %215, %217 in 0 : vector<1x24x8xf32>, vector<1x24x8xf32>, vector<1x24x8xf32>, vector<1x24x8xf32> -> vector<4x24x8xf32>
    %219 = vector.extract_strided_slice %209 {offsets = [0, 32], sizes = [24, 8], strides = [1, 1]} : vector<24x96xf32> to vector<24x8xf32>
    %220 = vector.shape_cast %219 : vector<24x8xf32> to vector<1x24x8xf32>
    %221 = vector.extract_strided_slice %209 {offsets = [0, 40], sizes = [24, 8], strides = [1, 1]} : vector<24x96xf32> to vector<24x8xf32>
    %222 = vector.shape_cast %221 : vector<24x8xf32> to vector<1x24x8xf32>
    %223 = vector.extract_strided_slice %209 {offsets = [0, 48], sizes = [24, 8], strides = [1, 1]} : vector<24x96xf32> to vector<24x8xf32>
    %224 = vector.shape_cast %223 : vector<24x8xf32> to vector<1x24x8xf32>
    %225 = vector.extract_strided_slice %209 {offsets = [0, 56], sizes = [24, 8], strides = [1, 1]} : vector<24x96xf32> to vector<24x8xf32>
    %226 = vector.shape_cast %225 : vector<24x8xf32> to vector<1x24x8xf32>
    %227 = tpu.concatenate %220, %222, %224, %226 in 0 : vector<1x24x8xf32>, vector<1x24x8xf32>, vector<1x24x8xf32>, vector<1x24x8xf32> -> vector<4x24x8xf32>
    %228 = vector.extract_strided_slice %209 {offsets = [0, 64], sizes = [24, 8], strides = [1, 1]} : vector<24x96xf32> to vector<24x8xf32>
    %229 = vector.shape_cast %228 : vector<24x8xf32> to vector<1x24x8xf32>
    %230 = vector.extract_strided_slice %209 {offsets = [0, 72], sizes = [24, 8], strides = [1, 1]} : vector<24x96xf32> to vector<24x8xf32>
    %231 = vector.shape_cast %230 : vector<24x8xf32> to vector<1x24x8xf32>
    %232 = vector.extract_strided_slice %209 {offsets = [0, 80], sizes = [24, 8], strides = [1, 1]} : vector<24x96xf32> to vector<24x8xf32>
    %233 = vector.shape_cast %232 : vector<24x8xf32> to vector<1x24x8xf32>
    %234 = vector.extract_strided_slice %209 {offsets = [0, 88], sizes = [24, 8], strides = [1, 1]} : vector<24x96xf32> to vector<24x8xf32>
    %235 = vector.shape_cast %234 : vector<24x8xf32> to vector<1x24x8xf32>
    %236 = tpu.concatenate %229, %231, %233, %235 in 0 : vector<1x24x8xf32>, vector<1x24x8xf32>, vector<1x24x8xf32>, vector<1x24x8xf32> -> vector<4x24x8xf32>
    "tpu.trace_start"() <{level = 10 : i32, message = "bqd,bkd->bqk"}> : () -> ()
    %cst_97 = arith.constant dense<0.000000e+00> : vector<4x24x24xf32>
    %237 = tpu.matmul %218, %227, %cst_97 {dimension_numbers = #tpu.dot_dimension_numbers<[2], [2], [1], [1], [0, 0, 0, 1, 1, 1], [0], [0]>} : vector<4x24x8xf32>, vector<4x24x8xf32>, vector<4x24x24xf32> -> vector<4x24x24xf32>
    "tpu.trace_stop"() : () -> ()
    %cst_98 = arith.constant 0.353553385 : f32
    %238 = vector.broadcast %cst_98 : f32 to vector<4x24x24xf32>
    %239 = arith.mulf %237, %238 : vector<4x24x24xf32>
    %240 = vector.broadcast %20 : vector<1x1x24xf32> to vector<4x24x24xf32>
    %241 = arith.addf %239, %240 : vector<4x24x24xf32>
    %cst_99 = arith.constant dense<0xFF800000> : vector<4x24xf32>
    %242 = vector.multi_reduction <maximumf>, %241, %cst_99 [2] : vector<4x24x24xf32> to vector<4x24xf32>
    %243 = vector.shape_cast %242 : vector<4x24xf32> to vector<4x24x1xf32>
    %244 = vector.broadcast %243 : vector<4x24x1xf32> to vector<4x24x24xf32>
    %245 = arith.subf %241, %244 : vector<4x24x24xf32>
    %246 = math.exp %245 : vector<4x24x24xf32>
    %cst_100 = arith.constant dense<0.000000e+00> : vector<4x24xf32>
    %247 = vector.multi_reduction <add>, %246, %cst_100 [2] : vector<4x24x24xf32> to vector<4x24xf32>
    %248 = vector.shape_cast %247 : vector<4x24xf32> to vector<4x24x1xf32>
    %249 = tpu.reciprocal %248 {approx = true} : vector<4x24x1xf32> -> vector<4x24x1xf32>
    %250 = vector.broadcast %249 : vector<4x24x1xf32> to vector<4x24x24xf32>
    %251 = arith.mulf %246, %250 : vector<4x24x24xf32>
    "tpu.trace_start"() <{level = 10 : i32, message = "bqk,bkd->bqd"}> : () -> ()
    %cst_101 = arith.constant dense<0.000000e+00> : vector<4x24x8xf32>
    %252 = tpu.matmul %251, %236, %cst_101 {dimension_numbers = #tpu.dot_dimension_numbers<[2], [1], [1], [2], [0, 0, 0, 1, 1, 2], [0], [0]>} : vector<4x24x24xf32>, vector<4x24x8xf32>, vector<4x24x8xf32> -> vector<4x24x8xf32>
    "tpu.trace_stop"() : () -> ()
    %253 = vector.extract_strided_slice %252 {offsets = [0, 0, 0], sizes = [1, 24, 8], strides = [1, 1, 1]} : vector<4x24x8xf32> to vector<1x24x8xf32>
    %254 = vector.extract_strided_slice %252 {offsets = [1, 0, 0], sizes = [1, 24, 8], strides = [1, 1, 1]} : vector<4x24x8xf32> to vector<1x24x8xf32>
    %255 = vector.extract_strided_slice %252 {offsets = [2, 0, 0], sizes = [1, 24, 8], strides = [1, 1, 1]} : vector<4x24x8xf32> to vector<1x24x8xf32>
    %256 = vector.extract_strided_slice %252 {offsets = [3, 0, 0], sizes = [1, 24, 8], strides = [1, 1, 1]} : vector<4x24x8xf32> to vector<1x24x8xf32>
    %257 = tpu.concatenate %253, %254, %255, %256 in 2 : vector<1x24x8xf32>, vector<1x24x8xf32>, vector<1x24x8xf32>, vector<1x24x8xf32> -> vector<1x24x32xf32>
    %258 = vector.shape_cast %257 : vector<1x24x32xf32> to vector<24x32xf32>
    %259 = arith.addf %180, %258 : vector<24x32xf32>
    %c1_102 = arith.constant 1 : index
    %c0_103 = arith.constant 0 : index
    %c0_104 = arith.constant 0 : index
    %260 = vector.load %arg8[%c1_102, %c0_103, %c0_104] : memref<2x1x32xf32, #tpu.memory_space<vmem>>, vector<1x1x32xf32>
    %261 = vector.shape_cast %260 : vector<1x1x32xf32> to vector<1x32xf32>
    %c1_105 = arith.constant 1 : index
    %c0_106 = arith.constant 0 : index
    %c0_107 = arith.constant 0 : index
    %262 = vector.load %arg9[%c1_105, %c0_106, %c0_107] : memref<2x1x32xf32, #tpu.memory_space<vmem>>, vector<1x1x32xf32>
    %263 = vector.shape_cast %262 : vector<1x1x32xf32> to vector<1x32xf32>
    %cst_108 = arith.constant dense<0.000000e+00> : vector<24xf32>
    %264 = vector.multi_reduction <add>, %259, %cst_108 [1] : vector<24x32xf32> to vector<24xf32>
    %265 = vector.shape_cast %264 : vector<24xf32> to vector<24x1xf32>
    %cst_109 = arith.constant 3.200000e+01 : f32
    %266 = vector.broadcast %cst_109 : f32 to vector<24x1xf32>
    %267 = arith.divf %265, %266 : vector<24x1xf32>
    %268 = vector.broadcast %267 : vector<24x1xf32> to vector<24x32xf32>
    %269 = arith.subf %259, %268 : vector<24x32xf32>
    %270 = arith.mulf %269, %269 : vector<24x32xf32>
    %cst_110 = arith.constant dense<0.000000e+00> : vector<24xf32>
    %271 = vector.multi_reduction <add>, %270, %cst_110 [1] : vector<24x32xf32> to vector<24xf32>
    %272 = vector.shape_cast %271 : vector<24xf32> to vector<24x1xf32>
    %cst_111 = arith.constant 3.200000e+01 : f32
    %273 = vector.broadcast %cst_111 : f32 to vector<24x1xf32>
    %274 = arith.divf %272, %273 : vector<24x1xf32>
    %275 = vector.broadcast %267 : vector<24x1xf32> to vector<24x32xf32>
    %276 = arith.subf %259, %275 : vector<24x32xf32>
    %cst_112 = arith.constant 9.99999997E-7 : f32
    %277 = vector.broadcast %cst_112 : f32 to vector<24x1xf32>
    %278 = arith.addf %274, %277 : vector<24x1xf32>
    %279 = math.rsqrt %278 : vector<24x1xf32>
    %280 = vector.broadcast %279 : vector<24x1xf32> to vector<24x32xf32>
    %281 = arith.mulf %276, %280 : vector<24x32xf32>
    %282 = vector.broadcast %261 : vector<1x32xf32> to vector<24x32xf32>
    %283 = arith.mulf %281, %282 : vector<24x32xf32>
    %284 = vector.broadcast %263 : vector<1x32xf32> to vector<24x32xf32>
    %285 = arith.addf %283, %284 : vector<24x32xf32>
    %c1_113 = arith.constant 1 : index
    %c0_114 = arith.constant 0 : index
    %c0_115 = arith.constant 0 : index
    %286 = vector.load %arg10[%c1_113, %c0_114, %c0_115] : memref<2x32x64xf32, #tpu.memory_space<vmem>>, vector<1x32x64xf32>
    %287 = vector.shape_cast %286 : vector<1x32x64xf32> to vector<32x64xf32>
    %cst_116 = arith.constant dense<0.000000e+00> : vector<24x64xf32>
    %288 = tpu.matmul %285, %287, %cst_116 {dimension_numbers = #tpu.dot_dimension_numbers<[1], [0], [0], [1], [0, 0, 1, 1], [], []>} : vector<24x32xf32>, vector<32x64xf32>, vector<24x64xf32> -> vector<24x64xf32>
    %c1_117 = arith.constant 1 : index
    %c0_118 = arith.constant 0 : index
    %c0_119 = arith.constant 0 : index
    %289 = vector.load %arg11[%c1_117, %c0_118, %c0_119] : memref<2x1x64xf32, #tpu.memory_space<vmem>>, vector<1x1x64xf32>
    %290 = vector.shape_cast %289 : vector<1x1x64xf32> to vector<1x64xf32>
    %291 = vector.broadcast %290 : vector<1x64xf32> to vector<24x64xf32>
    %292 = arith.addf %288, %291 : vector<24x64xf32>
    %cst_120 = arith.constant 5.000000e-01 : f32
    %293 = vector.broadcast %cst_120 : f32 to vector<24x64xf32>
    %294 = arith.mulf %293, %292 : vector<24x64xf32>
    %cst_121 = arith.constant 0.707106769 : f32
    %295 = vector.broadcast %cst_121 : f32 to vector<24x64xf32>
    %296 = arith.mulf %292, %295 : vector<24x64xf32>
    %297 = math.absf %296 : vector<24x64xf32>
    %cst_122 = arith.constant 0.327591091 : f32
    %298 = vector.broadcast %cst_122 : f32 to vector<24x64xf32>
    %299 = arith.mulf %298, %297 : vector<24x64xf32>
    %cst_123 = arith.constant 1.000000e+00 : f32
    %300 = vector.broadcast %cst_123 : f32 to vector<24x64xf32>
    %301 = arith.addf %300, %299 : vector<24x64xf32>
    %cst_124 = arith.constant 1.000000e+00 : f32
    %302 = vector.broadcast %cst_124 : f32 to vector<24x64xf32>
    %303 = arith.divf %302, %301 : vector<24x64xf32>
    %cst_125 = arith.constant 1.06140542 : f32
    %304 = vector.broadcast %cst_125 : f32 to vector<24x64xf32>
    %305 = arith.mulf %304, %303 : vector<24x64xf32>
    %cst_126 = arith.constant -1.45315206 : f32
    %306 = vector.broadcast %cst_126 : f32 to vector<24x64xf32>
    %307 = arith.addf %305, %306 : vector<24x64xf32>
    %308 = arith.mulf %307, %303 : vector<24x64xf32>
    %cst_127 = arith.constant 1.42141378 : f32
    %309 = vector.broadcast %cst_127 : f32 to vector<24x64xf32>
    %310 = arith.addf %308, %309 : vector<24x64xf32>
    %311 = arith.mulf %310, %303 : vector<24x64xf32>
    %cst_128 = arith.constant -0.284496725 : f32
    %312 = vector.broadcast %cst_128 : f32 to vector<24x64xf32>
    %313 = arith.addf %311, %312 : vector<24x64xf32>
    %314 = arith.mulf %313, %303 : vector<24x64xf32>
    %cst_129 = arith.constant 0.254829586 : f32
    %315 = vector.broadcast %cst_129 : f32 to vector<24x64xf32>
    %316 = arith.addf %314, %315 : vector<24x64xf32>
    %317 = arith.mulf %316, %303 : vector<24x64xf32>
    %cst_130 = arith.constant 0.000000e+00 : f32
    %318 = vector.broadcast %cst_130 : f32 to vector<24x64xf32>
    %319 = arith.subf %318, %297 : vector<24x64xf32>
    %320 = arith.mulf %319, %297 : vector<24x64xf32>
    %321 = math.exp %320 : vector<24x64xf32>
    %322 = arith.mulf %317, %321 : vector<24x64xf32>
    %cst_131 = arith.constant 1.000000e+00 : f32
    %323 = vector.broadcast %cst_131 : f32 to vector<24x64xf32>
    %324 = arith.subf %323, %322 : vector<24x64xf32>
    %cst_132 = arith.constant 0.000000e+00 : f32
    %325 = vector.broadcast %cst_132 : f32 to vector<24x64xf32>
    %326 = arith.cmpf oge, %296, %325 : vector<24x64xf32>
    %cst_133 = arith.constant 0.000000e+00 : f32
    %327 = vector.broadcast %cst_133 : f32 to vector<24x64xf32>
    %328 = arith.subf %327, %324 : vector<24x64xf32>
    %329 = arith.select %326, %324, %328 : vector<24x64xi1>, vector<24x64xf32>
    %cst_134 = arith.constant 1.000000e+00 : f32
    %330 = vector.broadcast %cst_134 : f32 to vector<24x64xf32>
    %331 = arith.addf %330, %329 : vector<24x64xf32>
    %332 = arith.mulf %294, %331 : vector<24x64xf32>
    %c1_135 = arith.constant 1 : index
    %c0_136 = arith.constant 0 : index
    %c0_137 = arith.constant 0 : index
    %333 = vector.load %arg12[%c1_135, %c0_136, %c0_137] : memref<2x64x32xf32, #tpu.memory_space<vmem>>, vector<1x64x32xf32>
    %334 = vector.shape_cast %333 : vector<1x64x32xf32> to vector<64x32xf32>
    %cst_138 = arith.constant dense<0.000000e+00> : vector<24x32xf32>
    %335 = tpu.matmul %332, %334, %cst_138 {dimension_numbers = #tpu.dot_dimension_numbers<[1], [0], [0], [1], [0, 0, 1, 1], [], []>} : vector<24x64xf32>, vector<64x32xf32>, vector<24x32xf32> -> vector<24x32xf32>
    %336 = arith.addf %259, %335 : vector<24x32xf32>
    %c1_139 = arith.constant 1 : index
    %c0_140 = arith.constant 0 : index
    %c0_141 = arith.constant 0 : index
    %337 = vector.load %arg13[%c1_139, %c0_140, %c0_141] : memref<2x1x32xf32, #tpu.memory_space<vmem>>, vector<1x1x32xf32>
    %338 = vector.shape_cast %337 : vector<1x1x32xf32> to vector<1x32xf32>
    %339 = vector.broadcast %338 : vector<1x32xf32> to vector<24x32xf32>
    %340 = arith.addf %336, %339 : vector<24x32xf32>
    %341 = vector.shape_cast %340 : vector<24x32xf32> to vector<1x24x32xf32>
    %342 = vector.extract_strided_slice %341 {offsets = [0, 0, 0], sizes = [1, 1, 32], strides = [1, 1, 1]} : vector<1x24x32xf32> to vector<1x1x32xf32>
    %343 = vector.shape_cast %342 : vector<1x1x32xf32> to vector<1x32xf32>
    %c0_142 = arith.constant 0 : index
    %c0_143 = arith.constant 0 : index
    %344 = vector.load %arg14[%c0_142, %c0_143] : memref<1x32xf32, #tpu.memory_space<vmem>>, vector<1x32xf32>
    %c0_144 = arith.constant 0 : index
    %c0_145 = arith.constant 0 : index
    %345 = vector.load %arg15[%c0_144, %c0_145] : memref<1x32xf32, #tpu.memory_space<vmem>>, vector<1x32xf32>
    %cst_146 = arith.constant dense<0.000000e+00> : vector<1xf32>
    %346 = vector.multi_reduction <add>, %343, %cst_146 [1] : vector<1x32xf32> to vector<1xf32>
    %347 = vector.shape_cast %346 : vector<1xf32> to vector<1x1xf32>
    %cst_147 = arith.constant 3.200000e+01 : f32
    %348 = vector.broadcast %cst_147 : f32 to vector<1x1xf32>
    %349 = arith.divf %347, %348 : vector<1x1xf32>
    %350 = vector.broadcast %349 : vector<1x1xf32> to vector<1x32xf32>
    %351 = arith.subf %343, %350 : vector<1x32xf32>
    %352 = arith.mulf %351, %351 : vector<1x32xf32>
    %cst_148 = arith.constant dense<0.000000e+00> : vector<1xf32>
    %353 = vector.multi_reduction <add>, %352, %cst_148 [1] : vector<1x32xf32> to vector<1xf32>
    %354 = vector.shape_cast %353 : vector<1xf32> to vector<1x1xf32>
    %cst_149 = arith.constant 3.200000e+01 : f32
    %355 = vector.broadcast %cst_149 : f32 to vector<1x1xf32>
    %356 = arith.divf %354, %355 : vector<1x1xf32>
    %357 = vector.broadcast %349 : vector<1x1xf32> to vector<1x32xf32>
    %358 = arith.subf %343, %357 : vector<1x32xf32>
    %cst_150 = arith.constant 9.99999997E-7 : f32
    %359 = vector.broadcast %cst_150 : f32 to vector<1x1xf32>
    %360 = arith.addf %356, %359 : vector<1x1xf32>
    %361 = math.rsqrt %360 : vector<1x1xf32>
    %362 = vector.broadcast %361 : vector<1x1xf32> to vector<1x32xf32>
    %363 = arith.mulf %358, %362 : vector<1x32xf32>
    %364 = arith.mulf %363, %344 : vector<1x32xf32>
    %365 = arith.addf %364, %345 : vector<1x32xf32>
    %c0_151 = arith.constant 0 : index
    %c0_152 = arith.constant 0 : index
    %366 = vector.load %arg16[%c0_151, %c0_152] : memref<32x10xf32, #tpu.memory_space<vmem>>, vector<32x10xf32>
    %cst_153 = arith.constant dense<0.000000e+00> : vector<1x10xf32>
    %367 = tpu.matmul %365, %366, %cst_153 {dimension_numbers = #tpu.dot_dimension_numbers<[1], [0], [0], [1], [0, 0, 1, 1], [], []>} : vector<1x32xf32>, vector<32x10xf32>, vector<1x10xf32> -> vector<1x10xf32>
    %c0_154 = arith.constant 0 : index
    %c0_155 = arith.constant 0 : index
    %368 = vector.load %arg17[%c0_154, %c0_155] : memref<1x10xf32, #tpu.memory_space<vmem>>, vector<1x10xf32>
    %369 = arith.addf %367, %368 : vector<1x10xf32>
    %c0_156 = arith.constant 0 : index
    %c0_157 = arith.constant 0 : index
    %c0_158 = arith.constant 0 : index
    %370 = vector.load %arg18[%c0_156, %c0_157, %c0_158] : memref<1x1x10xf32, #tpu.memory_space<vmem>>, vector<1x1x10xf32>
    %371 = vector.shape_cast %370 : vector<1x1x10xf32> to vector<1x10xf32>
    %372 = vector.shape_cast %369 : vector<1x10xf32> to vector<1x1x10xf32>
    tpu.vector_store %arg18[%c0_156, %c0_157, %c0_158], %372 {strides = array<i32>} : memref<1x1x10xf32, #tpu.memory_space<vmem>>, vector<1x1x10xf32>,
    return
  }
  func.func @transform_0(%arg0: i32) -> (i32, i32, i32) {
    %c0_i32 = arith.constant 0 : i32
    %c0_i32_0 = arith.constant 0 : i32
    %c0_i32_1 = arith.constant 0 : i32
    return %arg0, %c0_i32, %c0_i32_0 : i32, i32, i32
  }
  func.func @transform_1(%arg0: i32) -> (i32, i32) {
    %c0_i32 = arith.constant 0 : i32
    %c0_i32_0 = arith.constant 0 : i32
    %c0_i32_1 = arith.constant 0 : i32
    return %c0_i32, %c0_i32_0 : i32, i32
  }
  func.func @transform_2(%arg0: i32) -> (i32, i32) {
    %c0_i32 = arith.constant 0 : i32
    %c0_i32_0 = arith.constant 0 : i32
    %c0_i32_1 = arith.constant 0 : i32
    return %c0_i32, %c0_i32_0 : i32, i32
  }
  func.func @transform_3(%arg0: i32) -> (i32, i32, i32) {
    %c0_i32 = arith.constant 0 : i32
    %c0_i32_0 = arith.constant 0 : i32
    %c0_i32_1 = arith.constant 0 : i32
    %c0_i32_2 = arith.constant 0 : i32
    return %c0_i32, %c0_i32_0, %c0_i32_1 : i32, i32, i32
  }
  func.func @transform_4(%arg0: i32) -> (i32, i32, i32) {
    %c0_i32 = arith.constant 0 : i32
    %c0_i32_0 = arith.constant 0 : i32
    %c0_i32_1 = arith.constant 0 : i32
    %c0_i32_2 = arith.constant 0 : i32
    return %c0_i32, %c0_i32_0, %c0_i32_1 : i32, i32, i32
  }
  func.func @transform_5(%arg0: i32) -> (i32, i32, i32) {
    %c0_i32 = arith.constant 0 : i32
    %c0_i32_0 = arith.constant 0 : i32
    %c0_i32_1 = arith.constant 0 : i32
    %c0_i32_2 = arith.constant 0 : i32
    return %c0_i32, %c0_i32_0, %c0_i32_1 : i32, i32, i32
  }
  func.func @transform_6(%arg0: i32) -> (i32, i32, i32) {
    %c0_i32 = arith.constant 0 : i32
    %c0_i32_0 = arith.constant 0 : i32
    %c0_i32_1 = arith.constant 0 : i32
    %c0_i32_2 = arith.constant 0 : i32
    return %c0_i32, %c0_i32_0, %c0_i32_1 : i32, i32, i32
  }
  func.func @transform_7(%arg0: i32) -> (i32, i32, i32) {
    %c0_i32 = arith.constant 0 : i32
    %c0_i32_0 = arith.constant 0 : i32
    %c0_i32_1 = arith.constant 0 : i32
    %c0_i32_2 = arith.constant 0 : i32
    return %c0_i32, %c0_i32_0, %c0_i32_1 : i32, i32, i32
  }
  func.func @transform_8(%arg0: i32) -> (i32, i32, i32) {
    %c0_i32 = arith.constant 0 : i32
    %c0_i32_0 = arith.constant 0 : i32
    %c0_i32_1 = arith.constant 0 : i32
    %c0_i32_2 = arith.constant 0 : i32
    return %c0_i32, %c0_i32_0, %c0_i32_1 : i32, i32, i32
  }
  func.func @transform_9(%arg0: i32) -> (i32, i32, i32) {
    %c0_i32 = arith.constant 0 : i32
    %c0_i32_0 = arith.constant 0 : i32
    %c0_i32_1 = arith.constant 0 : i32
    %c0_i32_2 = arith.constant 0 : i32
    return %c0_i32, %c0_i32_0, %c0_i32_1 : i32, i32, i32
  }
  func.func @transform_10(%arg0: i32) -> (i32, i32, i32) {
    %c0_i32 = arith.constant 0 : i32
    %c0_i32_0 = arith.constant 0 : i32
    %c0_i32_1 = arith.constant 0 : i32
    %c0_i32_2 = arith.constant 0 : i32
    return %c0_i32, %c0_i32_0, %c0_i32_1 : i32, i32, i32
  }
  func.func @transform_11(%arg0: i32) -> (i32, i32, i32) {
    %c0_i32 = arith.constant 0 : i32
    %c0_i32_0 = arith.constant 0 : i32
    %c0_i32_1 = arith.constant 0 : i32
    %c0_i32_2 = arith.constant 0 : i32
    return %c0_i32, %c0_i32_0, %c0_i32_1 : i32, i32, i32
  }
  func.func @transform_12(%arg0: i32) -> (i32, i32, i32) {
    %c0_i32 = arith.constant 0 : i32
    %c0_i32_0 = arith.constant 0 : i32
    %c0_i32_1 = arith.constant 0 : i32
    %c0_i32_2 = arith.constant 0 : i32
    return %c0_i32, %c0_i32_0, %c0_i32_1 : i32, i32, i32
  }
  func.func @transform_13(%arg0: i32) -> (i32, i32) {
    %c0_i32 = arith.constant 0 : i32
    %c0_i32_0 = arith.constant 0 : i32
    %c0_i32_1 = arith.constant 0 : i32
    return %c0_i32, %c0_i32_0 : i32, i32
  }
  func.func @transform_14(%arg0: i32) -> (i32, i32) {
    %c0_i32 = arith.constant 0 : i32
    %c0_i32_0 = arith.constant 0 : i32
    %c0_i32_1 = arith.constant 0 : i32
    return %c0_i32, %c0_i32_0 : i32, i32
  }
  func.func @transform_15(%arg0: i32) -> (i32, i32) {
    %c0_i32 = arith.constant 0 : i32
    %c0_i32_0 = arith.constant 0 : i32
    %c0_i32_1 = arith.constant 0 : i32
    return %c0_i32, %c0_i32_0 : i32, i32
  }
  func.func @transform_16(%arg0: i32) -> (i32, i32) {
    %c0_i32 = arith.constant 0 : i32
    %c0_i32_0 = arith.constant 0 : i32
    %c0_i32_1 = arith.constant 0 : i32
    return %c0_i32, %c0_i32_0 : i32, i32
  }
  func.func @transform_17(%arg0: i32) -> (i32, i32, i32) {
    %c0_i32 = arith.constant 0 : i32
    %c0_i32_0 = arith.constant 0 : i32
    %c0_i32_1 = arith.constant 0 : i32
    return %arg0, %c0_i32, %c0_i32_0 : i32, i32, i32
  }
}

</mosaic_0001>

<bundles_post_ra>
// kernel: vit_forward.1
= control target key start
LH: loop header
LB: loop body
LE: loop exit
PB: predicated region body
PF: predicated region fallthrough
CT: control target
= control target key end

     0   :  { %s6204_s0 = inlined_call_operand.vmem [shape: f32[2,16,48], index: 0, kind: input, shape index: {}]   ;;  %s6205_s1 = inlined_call_operand.vmem [shape: f32[48,32], index: 1, kind: input, shape index: {}]   ;;  %s6206_s2 = inlined_call_operand.vmem [shape: f32[1,32], index: 2, kind: input, shape index: {}]   ;;  %s6207_s3 = inlined_call_operand.vmem [shape: f32[1,24,32], index: 3, kind: input, shape index: {}]   ;;  %s6208_s4 = inlined_call_operand.vmem [shape: f32[2,1,32], index: 4, kind: input, shape index: {}]   ;;  %s6209_s5 = inlined_call_operand.vmem [shape: f32[2,1,32], index: 5, kind: input, shape index: {}]   ;;  %s6210_s6 = inlined_call_operand.vmem [shape: f32[2,32,96], index: 6, kind: input, shape index: {}]   ;;  %s6211_s7 = inlined_call_operand.vmem [shape: f32[2,1,32], index: 7, kind: input, shape index: {}]   ;;  %s6212_s8 = inlined_call_operand.vmem [shape: f32[2,1,32], index: 8, kind: input, shape index: {}]   ;;  %s6213_s9 = inlined_call_operand.vmem [shape: f32[2,32,64], index: 9, kind: input, shape index: {}]   ;;  %s6214_s10 = inlined_call_operand.vmem [shape: f32[2,1,64], index: 10, kind: input, shape index: {}]   ;;  %s6215_s11 = inlined_call_operand.vmem [shape: f32[2,64,32], index: 11, kind: input, shape index: {}]   ;;  %s6216_s12 = inlined_call_operand.vmem [shape: f32[2,1,32], index: 12, kind: input, shape index: {}]   ;;  %s6217_s13 = inlined_call_operand.vmem [shape: f32[1,32], index: 13, kind: input, shape index: {}]   ;;  %s6218_s14 = inlined_call_operand.vmem [shape: f32[1,32], index: 14, kind: input, shape index: {}]   ;;  %s6219_s15 = inlined_call_operand.vmem [shape: f32[32,10], index: 15, kind: input, shape index: {}]   ;;  %s6220_s16 = inlined_call_operand.vmem [shape: f32[1,10], index: 16, kind: input, shape index: {}]   ;;  %s6221_s17 = inlined_call_operand.hbm [shape: f32[2,1,10], index: 17, kind: output, shape index: {}]  }
   0x1   :  { %6240 = sst [smem:[#allocation11_spill]] %s6204_s0 }
   0x2   :  { %6241 = sst [smem:[#allocation12_spill]] %s6205_s1 }
   0x3   :  { %6242 = sst [smem:[#allocation13_spill]] %s6206_s2 }
   0x4   :  { %22 = vsyncpa [#allocation4], 0 }
   0x5   :  { %24 = vsyncpa [#allocation4 + $0x1], 0  ;;  %s5107_s24 = smov 0   ;;  %s5109_s25 = smov 0  }
   0x6   :  { %s5111_s26 = smov 0   ;;  %s5113_s27 = smov 0  }
   0x7 LB: > { %6243 = sst [smem:[#allocation6_spill]] %s4990_s24  ;;  %s5128_s28 = sadd.s32 4294967295, %s5002_s27   ;;  %s5002_s27 = sphi %s5113_s27, %s6263_s27   ;;  %s4998_s26 = sphi %s5111_s26, %s6265_s26   ;;  %s4994_s25 = sphi %s5109_s25, %s6267_s25   ;;  %s4990_s24 = sphi %s5107_s24, %s6266_s24  }
   0x8   : > { %6244 = sst [smem:[#allocation7_spill]] %s4998_s26  ;;  %s3859_s29 = sadd.s32 4294967294, %s5002_s27  }
   0x9   : > { %s5132_s0 = sadd.s32 1, %s5002_s27   ;;  %s399_s30 = sadd.s32 1, %s4998_s26 }
   0xa   : > { %6245 = sst [smem:[#allocation8_spill]] %s5132_s0  ;;  %s396_s18 = ssub.s32 %s5002_s27, %s5132_s0 }
   0xb   : > { %p409_p0 = scmp.ne.s32.totalorder %s4998_s26, %s4994_s25  ;;  %p397_p1 = scmp.eq.s32.totalorder %s396_s18, 0 }
   0xc   : > { %p410_p2 = scmp.eq.s32.totalorder %s5128_s28, 1  ;;  %p415_p3 = scmp.ne.s32.totalorder %s4994_s25, %s4990_s24 }
   0xd   : > { %p416_p4 = scmp.eq.s32.totalorder %s3859_s29, 1  ;;  %p3862_p7 = scmp.ge.s32.totalorder %s5002_s27, 1 }
   0xe   : > { %s5143_s19 = scalar_select %p397_p1, %s4998_s26, %s399_s30  }
   0xf   : > { %p5145_p5 = por %p410_p2, %p409_p0  ;;  %p5149_p6 = por %p416_p4, %p415_p3 }
  0x10   : > { %6246 = sst [smem:[#allocation9_spill]] %s5143_s19  ;;  %p490_p8 = scmp.lt.s32.totalorder %s5002_s27, 3 }
  0x11   : > { %s6248_s20 = scalar_select %p5149_p6, 1, 0 }
  0x12   : > { %p491_p9 = pnand %p3862_p7, %p490_p8 }
  0x13   : > { %6249 = sst [smem:[#allocation10_spill]] %s6248_s20  ;;  %s6250_s23 = sld [smem:[#allocation12_spill]] (!%p491_p9)  ;;  %vm561_vm0 = vcmask (!%p491_p9), 392192   ;;  %v644_v11 = vld [vmem:[%s6207_s3 + $0x8] sm:$0xff] (!%p491_p9)  ;;  %v645_v12 = vld [vmem:[%s6207_s3 + $0x10] sm:$0xff] (!%p491_p9)  ;;  %vm646_vm1 = vcmask (!%p491_p9), 261120  }
  0x14   : > { %494 = sbr.rel (%p491_p9) target bundleno = 5725 (0x165d), region = 88  ;;  %p541_p10 = scmp.lt.s32.totalorder (!%p491_p9), %s5128_s28, 1  ;;  %648 = vst.msk [vmem:[#allocation2 + $0x8] sm:$0xff] (!%p491_p9), %vm646_vm1, %v644_v11  ;;  %649 = vst.msk [vmem:[#allocation2 + $0x10] sm:$0xff] (!%p491_p9), %vm646_vm1, %v645_v12  ;;  %v643_v13 = vld [vmem:[%s6207_s3] sm:$0xff] (!%p491_p9)  ;;  %v724_v45 = vld [vmem:[%s6210_s6 + $0x8] sm:$0xff] (!%p491_p9) }
  0x15   : > { %s6251_s26 = sld [smem:[#allocation11_spill]] (!%p491_p9)  ;;  %647 = vst.msk [vmem:[#allocation2] sm:$0xff] (!%p491_p9), %vm646_vm1, %v643_v13  ;;  %s6252_s2 = sld [smem:[#allocation13_spill]] (!%p491_p9)  ;;  %v723_v44 = vld [vmem:[%s6210_s6] sm:$0xff] (!%p491_p9)  ;;  %v725_v46 = vld [vmem:[%s6210_s6 + $0x10] sm:$0xff] (!%p491_p9)  ;;  %v5004_v47 = vmov (!%p491_p9), 0.0|0.0  }
  0x16   : > { %4552 = vmatprep.subr.bf16.mxu1 (!%p491_p9), %v5004_v47  ;;  %v4553_v48 = vpack.c.bf16 (!%p491_p9), %v724_v45, %v723_v44  ;;  %v726_v49 = vld [vmem:[%s6210_s6 + $0x18] sm:$0xff] (!%p491_p9)  ;;  %vm5005_vm2 = vmmov (!%p491_p9), 0   ;;  %v5006_v50 = vmov (!%p491_p9), 0.0   ;;  %v3868_v62 = vld [vmem:[%s6208_s4] ss:$0 sm:$0xff] (!%p491_p9)  ;;  %s5007_s24 = smov (!%p491_p9), 120  }
  0x17   : > { %4179 = vmatprep.mubr.msk.f32.mxu1 (!%p491_p9), %vm5005_vm2, %v5006_v50  ;;  %v4556_v51 = vpack.c.bf16 (!%p491_p9), %v726_v49, %v725_v46  ;;  %s5008_s20 = smov (!%p491_p9), 112   ;;  %s6238_s21 = smov (!%p491_p9), 104   ;;  %vm843_vm3 = vcmask (!%p491_p9), 64512   ;;  %vm1254_vm6 = vcmask (!%p491_p9), 195584   ;;  %vm1818_vm7 = vcmask (!%p491_p9), 130048  }
  0x18   : > { %4554 = vmatpush3.bf16.msra.mxu1 (!%p491_p9), %v4553_v48  ;;  %s6236_s22 = smov (!%p491_p9), 96   ;;  %vm5300_vm4 = vmpackc.low (!%p491_p9), %vm843_vm3, %vm843_vm3  ;;  %s6228_s30 = smov (!%p491_p9), 24   ;;  %vm2076_vm9 = vcmask (!%p491_p9), 523264   ;;  %vm3695_vm13 = vcmask (!%p491_p9), 253952  }
  0x19   : > { %v548_v0 = vld [vmem:[%s6250_s23] sm:$0xff] (!%p491_p9)  ;;  %v549_v1 = vld [vmem:[%s6250_s23 + $0x8] sm:$0xff] (!%p491_p9)  ;;  %v550_v2 = vld [vmem:[%s6250_s23 + $0x10] sm:$0xff] (!%p491_p9)  ;;  %4555 = vmatprep.subr.bf16.mxu1 (!%p491_p9), %v5004_v47  ;;  %s6230_s18 = smov (!%p491_p9), 16  }
  0x1a   : > { %v4540_v3 = vpack.c.bf16 (!%p491_p9), %v549_v1, %v548_v0  ;;  %v551_v4 = vld [vmem:[%s6250_s23 + $0x18] sm:$0xff] (!%p491_p9)  ;;  %v552_v6 = vld [vmem:[%s6250_s23 + $0x20] sm:$0xff] (!%p491_p9)  ;;  %v553_v7 = vld [vmem:[%s6250_s23 + $0x28] sm:$0xff] (!%p491_p9) }
  0x1b   : > { %v4544_v5 = vpack.c.bf16 %v551_v4, %v550_v2  ;;  %s542_s29 = scalar_select %p541_p10, %s5128_s28, 1  ;;  %v4548_v8 = vpack.c.bf16 %v553_v7, %v552_v6  ;;  %v3865_v14 = vld [vmem:[%s6252_s2] ss:$0 sm:$0xff]  ;;  %v651_v16 = vld [vmem:[#allocation2 + $0x9] sm:$0xff] }
  0x1c   : > { %4541 = vmatprep.subr.bf16.mxu0 %v4540_v3  ;;  %v650_v19 = vld [vmem:[#allocation2 + $0x1] sm:$0xff]  ;;  %4557 = vmatpush3.bf16.msra.mxu1 %v4556_v51  ;;  %v3869_v0 = vld [vmem:[%s6209_s5] ss:$0 sm:$0xff]  ;;  %s3993_s2 = sshll.u32 %s5128_s28, 4  ;;  %s5016_s28 = smov [#allocation3]  }
  0x1d   : > { %4543 = vmatpush3.bf16.msra.mxu0 %v4540_v3  ;;  %s3996_s19 = sshll.u32 %s542_s29, 4  ;;  %4558 = vmatprep.subr.bf16.mxu1 %v5004_v47  ;;  %s6234_s29 = smov 64  }
  0x1e   : > { %4545 = vmatprep.subr.bf16.mxu0 %v4544_v5  ;;  %s545_s0 = scalar_lea.vmem %s6251_s26, %s3996_s19  ;;  %s6232_s19 = smov 8  }
  0x1f   : > { %v546_v9 = vld [vmem:[%s545_s0] sm:$0xff]  ;;  %v547_v10 = vld [vmem:[%s545_s0 + $0x8] sm:$0xff]  ;;  %s6259_s26 = smov 16   ;;  %s6260_s0 = smov 24  }
  0x20   : > { %4168 = vmatprep.mubr.msk.f32.mxu0 %vm561_vm0, %v546_v9 }
  0x21   : > { %4547 = vmatpush3.bf16.msra.mxu0 %v4544_v5 }
  0x22   : > { %4549 = vmatprep.subr.bf16.mxu0 %v4548_v8 }
  0x25   : > { %4551 = vmatpush3.bf16.msra.mxu0 %v4548_v8 }
  0x26   : > { %4562 = vmatprep.subr.bf16.mxu0 %v5004_v47 }
  0x28   : > { %4169 = vmatmul.mubr.msk.f32.vlgmr.msra.gmra.mrb[0].mxu0 %vm561_vm0, %v547_v10  ;;  %vm3789_vm0 = vcmask 73728  }
  0x29   : > { %4209 = vmatprep.mubr.msk.f32.mxu0 %vm5005_vm2, %v5006_v50 }
  0xfb   : > { %v4170_v15 = vpop.f32.mrb[0].mxu0 }
  0xfc   : > { %v640_v17 = vadd.f32 %v4170_v15, %v3865_v14  ;;  %v634_v18 = vpop.f32.mrb[1].mxu0 }
  0xfd   : > { %v635_v20 = vadd.f32 %v3865_v14, %v634_v18 }
  0xfe   : > { %v653_v21 = vadd.f32 %v651_v16, %v640_v17 }
  0xff   : > { %v652_v22 = vadd.f32 %v650_v19, %v635_v20 }
 0x100   : > { %655 = vst.msk [vmem:[#allocation2 + $0x9] sm:$0xff] %vm646_vm1, %v653_v21 }
 0x101   : > { %654 = vst.msk [vmem:[#allocation2 + $0x1] sm:$0xff] %vm646_vm1, %v652_v22 }
 0x107   : > { %v658_v23 = vld [vmem:[#allocation2 + $0x10] sm:$0xff] }
 0x108   : > { %v671_v24 = vsel %vm646_vm1, %v658_v23, 0.0  ;;  %v5196_v25 = vld [vmem:[#allocation2] sm:$0xff]  ;;  %v5200_v27 = vld [vmem:[#allocation2 + $0x8] sm:$0xff] }
 0x109   : > { %672 = vadd.xlane.f32.xlu1 %v671_v24  ;;  %v665_v26 = vsel %vm646_vm1, %v5196_v25, 0.0  ;;  %v668_v28 = vsel %vm646_vm1, %v5200_v27, 0.0 }
 0x10a   : > { %666 = vadd.xlane.f32.xlu0 %v665_v26 }
 0x10e   : > { %669 = vadd.xlane.f32.xlu0 %v668_v28 }
 0x196   : > { %v673_v29 = vpop.xlane.xlu1 %672 }
 0x197   : > { %v677_v30 = vmul.f32 0.03125, %v673_v29  ;;  %v667_v31 = vpop.xlane.xlu0 %666 }
 0x198   : > { %v675_v32 = vmul.f32 0.03125, %v667_v31 }
 0x199   : > { %v680_v33 = vsub.f32 %v658_v23, %v677_v30 }
 0x19a   : > { %v678_v34 = vsub.f32 %v5196_v25, %v675_v32 }
 0x19b   : > { %v670_v35 = vpop.xlane.xlu0 %669  ;;  %v683_v40 = vmul.f32 %v680_v33, %v680_v33 }
 0x19c   : > { %v676_v36 = vmul.f32 0.03125, %v670_v35  ;;  %v681_v37 = vmul.f32 %v678_v34, %v678_v34 }
 0x19d   : > { %v690_v42 = vsel %vm646_vm1, %v683_v40, 0.0 }
 0x19e   : > { %v679_v38 = vsub.f32 %v5200_v27, %v676_v36  ;;  %v684_v39 = vsel %vm646_vm1, %v681_v37, 0.0 }
 0x19f   : > { %685 = vadd.xlane.f32.xlu1 %v684_v39 }
 0x1a0   : > { %v682_v41 = vmul.f32 %v679_v38, %v679_v38 }
 0x1a2   : > { %v687_v43 = vsel %vm646_vm1, %v682_v41, 0.0 }
 0x1a3   : > { %691 = vadd.xlane.f32.xlu1 %v690_v42  ;;  %688 = vadd.xlane.f32.xlu0 %v687_v43 }
 0x22c   : > { %v686_v52 = vpop.xlane.xlu1 %685 }
 0x22d   : > { %v693_v53 = vmul.f32 0.03125, %v686_v52 }
 0x22f   : > { %v696_v54 = vadd.f32 1e-06, %v693_v53 }
 0x230   : > { %v692_v55 = vpop.xlane.xlu1 %691  ;;  %v689_v56 = vpop.xlane.xlu0 %688 }
 0x231   : > { %4793 = vrsqrt.f32 %v696_v54  ;;  %v695_v57 = vmul.f32 0.03125, %v692_v55  ;;  %v694_v58 = vmul.f32 0.03125, %v689_v56 }
 0x233   : > { %v698_v59 = vadd.f32 1e-06, %v695_v57  ;;  %v697_v60 = vadd.f32 1e-06, %v694_v58 }
 0x235   : > { %4795 = vrsqrt.f32 %v698_v59 }
 0x236   : > { %4797 = vrsqrt.f32 %v697_v60 }
 0x23b   : > { %v4794_v61 = vpop.eup %4793 }
 0x23c   : > { %v702_v63 = vmul.f32 %v4794_v61, %v678_v34 }
 0x23e   : > { %v711_v1 = vmul.f32 %v3868_v62, %v702_v63  ;;  %v659_v63 = vlaneseq }
 0x23f   : > { %v4796_v2 = vpop.eup %4795 }
 0x240   : > { %v4798_v3 = vpop.eup %4797  ;;  %v720_v4 = vadd.f32 %v3869_v0, %v711_v1  ;;  %v704_v6 = vmul.f32 %v4796_v2, %v680_v33  ;;  %v5012_v2 = vmov -1e+30  }
 0x241   : > { %v703_v5 = vmul.f32 %v4798_v3, %v679_v38 }
 0x242   : > { %4180 = vmatmul.mubr.msk.f32.vlgmr.msra.gmra.mrb[0].mxu1 %vm646_vm1, %v720_v4  ;;  %v713_v9 = vmul.f32 %v3868_v62, %v704_v6 }
 0x243   : > { %4182 = vmatprep.mubr.msk.f32.mxu1 %vm5005_vm2, %v5006_v50  ;;  %v712_v7 = vmul.f32 %v3868_v62, %v703_v5 }
 0x244   : > { %v722_v10 = vadd.f32 %v3869_v0, %v713_v9 }
 0x245   : > { %v721_v8 = vadd.f32 %v3869_v0, %v712_v7  ;;  %v660_v0 = vand.u32 127, %v659_v63 }
 0x247   : > { %4183 = vmatmul.mubr.msk.f32.gmra.mrb[2].mxu1 %vm646_vm1, %v721_v8  ;;  %vm661_vm5 = vcmp.lt.s32.totalorder %v660_v0, 17 }
 0x248   : > { %4185 = vmatprep.mubr.msk.f32.mxu1 %vm5005_vm2, %v5006_v50  ;;  %v5372_v3 = vsel %vm661_vm5, 0.0, %v5012_v2 }
 0x24b   : > { %4186 = vmatmul.mubr.msk.f32.gmra.mrb[4].mxu1 %vm646_vm1, %v722_v10 }
 0x24c   : > { %4194 = vmatprep.mubr.msk.f32.mxu1 %vm5005_vm2, %v5006_v50 }
 0x315   : > { %v802_v11 = vpop.f32.mrb[0].mxu1 }
 0x316   : > { %v4181_v12 = vpop.f32.mrb[1].mxu1  ;;  %819 = vrot.lane.b32.xlu0 %v802_v11, %s5007_s24 }
 0x31a   : > { %v807_v13 = vpop.f32.mrb[2].mxu1 }
 0x31b   : > { %827 = vrot.lane.b32.xlu0 %v807_v13, %s5008_s20  ;;  %821 = vrot.lane.b32.xlu1 %v807_v13, %s5007_s24  ;;  %v4184_v14 = vpop.f32.mrb[3].mxu1  ;;  %v4713_v15 = vpack.i.bf16 %v807_v13, %v802_v11 }
 0x31e   : > { %v5247_v16 = vpop.f32.mrb[4].mxu1 }
 0x31f   : > { %833 = vrot.lane.b32.xlu0 %v807_v13, %s6238_s21  ;;  %825 = vrot.lane.b32.xlu1 %v802_v11, %s5008_s20  ;;  %v4187_v17 = vpop.f32.mrb[5].mxu1 }
 0x323   : > { %835 = vrot.lane.b32.xlu0 %v5247_v16, %s6238_s21  ;;  %823 = vrot.lane.b32.xlu1 %v5247_v16, %s5007_s24 }
 0x327   : > { %831 = vrot.lane.b32.xlu1 %v802_v11, %s6238_s21 }
 0x32b   : > { %829 = vrot.lane.b32.xlu1 %v5247_v16, %s5008_s20 }
 0x32f   : > { %4714 = vrot.lane.b32.xlu1 %v4713_v15, %s6236_s22 }
 0x333   : > { %841 = vrot.lane.b32.xlu1 %v5247_v16, %s6236_s22 }
 0x388   : > { %v820_v18 = vpop.permute.xlu0 %819 }
 0x38d   : > { %v5261_v19 = vpop.permute.xlu1 %821  ;;  %v5265_v21 = vpop.permute.xlu0 %827 }
 0x38e   : > { %v4718_v20 = vpack.i.bf16 %v5261_v19, %v820_v18 }
 0x390   : > { %4719 = vrot.lane.b32.xlu0 %v4718_v20, %s6236_s22 }
 0x391   : > { %v5267_v22 = vpop.permute.xlu1 %825  ;;  %v5279_v26 = vpop.permute.xlu0 %833 }
 0x392   : > { %v5271_v23 = vpack.i.bf16 %v5265_v21, %v5267_v22 }
 0x394   : > { %4724 = vrot.lane.b32.xlu1 %v5271_v23, %s6236_s22 }
 0x395   : > { %v5275_v24 = vpop.permute.xlu1 %823  ;;  %v5293_v31 = vpop.permute.xlu0 %835 }
 0x396   : > { %940 = vrot.lane.b32.xlu0 %v5275_v24, %s6236_s22 }
 0x399   : > { %v5281_v28 = vpop.permute.xlu1 %831 }
 0x39a   : > { %v5285_v29 = vpack.i.bf16 %v5279_v26, %v5281_v28 }
 0x39c   : > { %4729 = vrot.lane.b32.xlu0 %v5285_v29, %s6236_s22 }
 0x39d   : > { %v5289_v30 = vpop.permute.xlu1 %829 }
 0x39e   : > { %1038 = vrot.lane.b32.xlu1 %v5289_v30, %s6236_s22 }
 0x3a0   : > { %1136 = vrot.lane.b32.xlu0 %v5293_v31, %s6236_s22 }
 0x3a1   : > { %v4715_v32 = vpop.permute.xlu1 %4714 }
 0x3a2   : > { %v4717_v33 = vunpack.i.h.bf16 %v4715_v32  ;;  %v4716_v34 = vunpack.i.l.bf16 %v4715_v32  ;;  %4734 = vrot.lane.b32.xlu1 %v4713_v15, %s6234_s29 }
 0x3a4   : > { %v4559_v36 = vpack.c.bf16 %v4717_v33, %v4716_v34  ;;  %4739 = vrot.lane.b32.xlu0 %v4718_v20, %s6234_s29 }
 0x3a5   : > { %v842_v37 = vpop.permute.xlu1 %841 }
 0x3a6   : > { %4561 = vmatpush3.bf16.xpose.msk.msra.mxu1 %vm5300_vm4, %v4559_v36 }
 0x3a7   : > { %4192 = vmatprep.subr.mxu1 %v5006_v50 }
 0x3ae   : > { %4193 = vmatpush3.xpose.msk.msra.mxu1 %vm843_vm3, %v842_v37 }
 0x3af   : > { %4566 = vmatprep.subr.bf16.mxu1 %v5004_v47 }
 0x3b1   : > { %4195 = vmatmul.mubr.msk.f32.vlgmr.msra.gmra.mrb[6].mxu1 %vm843_vm3, %v802_v11 }
 0x3b2   : > { %4197 = vmatprep.mubr.msk.f32.mxu1 %vm5005_vm2, %v5006_v50 }
 0x3b5   : > { %4198 = vmatmul.mubr.msk.f32.gmra.mrb[8].mxu1 %vm843_vm3, %v807_v13 }
 0x3b6   : > { %4200 = vmatprep.mubr.msk.f32.mxu1 %vm5005_vm2, %v5006_v50 }
 0x3b9   : > { %4201 = vmatmul.mubr.msk.f32.gmra.mrb[10].mxu1 %vm843_vm3, %v5247_v16 }
 0x3ba   : > { %4224 = vmatprep.mubr.msk.f32.mxu1 %vm5005_vm2, %v5006_v50 }
 0x402   : > { %v4720_v38 = vpop.permute.xlu0 %4719 }
 0x403   : > { %v4722_v39 = vunpack.i.h.bf16 %v4720_v38  ;;  %v4721_v40 = vunpack.i.l.bf16 %v4720_v38 }
 0x405   : > { %v4563_v41 = vpack.c.bf16 %v4722_v39, %v4721_v40 }
 0x406   : > { %v4725_v42 = vpop.permute.xlu1 %4724 }
 0x407   : > { %v4727_v43 = vunpack.i.h.bf16 %v4725_v42  ;;  %v4726_v44 = vunpack.i.l.bf16 %v4725_v42  ;;  %4565 = vmatpush3.bf16.xpose.msk.msra.mxu0 %vm5300_vm4, %v4563_v41 }
 0x408   : > { %4207 = vmatprep.subr.mxu0 %v5006_v50  ;;  %v941_v46 = vpop.permute.xlu0 %940 }
 0x409   : > { %v4567_v45 = vpack.c.bf16 %v4727_v43, %v4726_v44 }
 0x40b   : > { %4569 = vmatpush3.bf16.xpose.msk.msra.mxu1 %vm5300_vm4, %v4567_v45 }
 0x40c   : > { %4222 = vmatprep.subr.mxu1 %v5006_v50 }
 0x40e   : > { %v4730_v48 = vpop.permute.xlu0 %4729 }
 0x40f   : > { %v4732_v49 = vunpack.i.h.bf16 %v4730_v48  ;;  %v4731_v51 = vunpack.i.l.bf16 %v4730_v48  ;;  %4208 = vmatpush3.xpose.msk.msra.mxu0 %vm843_vm3, %v941_v46 }
 0x410   : > { %v1039_v52 = vpop.permute.xlu1 %1038  ;;  %4570 = vmatprep.subr.bf16.mxu0 %v5004_v47 }
 0x411   : > { %v4571_v53 = vpack.c.bf16 %v4732_v49, %v4731_v51 }
 0x412   : > { %v1137_v54 = vpop.permute.xlu0 %1136  ;;  %4210 = vmatmul.mubr.msk.f32.vlgmr.msra.gmra.mrb[2].mxu0 %vm843_vm3, %v820_v18 }
 0x413   : > { %4223 = vmatpush3.xpose.msk.msra.mxu1 %vm843_vm3, %v1039_v52  ;;  %4573 = vmatpush3.bf16.xpose.msk.msra.mxu0 %vm5300_vm4, %v4571_v53 }
 0x414   : > { %v4735_v55 = vpop.permute.xlu1 %4734  ;;  %4212 = vmatprep.mubr.msk.f32.mxu0 %vm5005_vm2, %v5006_v50  ;;  %4574 = vmatprep.subr.bf16.mxu1 %v5004_v47 }
 0x415   : > { %v4737_v56 = vunpack.i.h.bf16 %v4735_v55  ;;  %v4736_v57 = vunpack.i.l.bf16 %v4735_v55  ;;  %4237 = vmatprep.subr.mxu0 %v5006_v50 }
 0x416   : > { %4225 = vmatmul.mubr.msk.f32.vlgmr.msra.gmra.mrb[12].mxu1 %vm843_vm3, %v5267_v22  ;;  %v4740_v58 = vpop.permute.xlu0 %4739  ;;  %4213 = vmatmul.mubr.msk.f32.gmra.mrb[4].mxu0 %vm843_vm3, %v5261_v19 }
 0x417   : > { %v4575_v59 = vpack.c.bf16 %v4737_v56, %v4736_v57  ;;  %4215 = vmatprep.mubr.msk.f32.mxu0 %vm5005_vm2, %v5006_v50  ;;  %4227 = vmatprep.mubr.msk.f32.mxu1 %vm5005_vm2, %v5006_v50  ;;  %v4742_v60 = vunpack.i.h.bf16 %v4740_v58  ;;  %v4741_v61 = vunpack.i.l.bf16 %v4740_v58 }
 0x419   : > { %4576 = vmatpush3.bf16.msra.mxu1 %v4575_v59  ;;  %v4578_v62 = vpack.c.bf16 %v4742_v60, %v4741_v61 }
 0x41a   : > { %4216 = vmatmul.mubr.msk.f32.gmra.mrb[6].mxu0 %vm843_vm3, %v5275_v24  ;;  %4228 = vmatmul.mubr.msk.f32.gmra.mrb[14].mxu1 %vm843_vm3, %v5265_v21 }
 0x41b   : > { %4238 = vmatpush3.xpose.msk.msra.mxu0 %vm843_vm3, %v1137_v54  ;;  %4230 = vmatprep.mubr.msk.f32.mxu1 %vm5005_vm2, %v5006_v50 }
 0x41c   : > { %4239 = vmatprep.mubr.msk.f32.mxu0 %vm5005_vm2, %v5006_v50  ;;  %4577 = vmatprep.subr.bf16.mxu0 %v5004_v47 }
 0x41d   : > { %4252 = vmatprep.subr.mxu1 %v5006_v50 }
 0x41e   : > { %4231 = vmatmul.mubr.msk.f32.gmra.mrb[16].mxu1 %vm843_vm3, %v5289_v30  ;;  %4240 = vmatmul.mubr.msk.f32.vlgmr.msra.gmra.mrb[8].mxu0 %vm843_vm3, %v5281_v28 }
 0x41f   : > { %4579 = vmatpush3.bf16.msra.mxu0 %v4578_v62  ;;  %4242 = vmatprep.mubr.msk.f32.mxu0 %vm5005_vm2, %v5006_v50 }
 0x420   : > { %4267 = vmatprep.subr.mxu0 %v5006_v50  ;;  %4254 = vmatprep.mubr.msk.f32.mxu1 %vm5005_vm2, %v5006_v50 }
 0x422   : > { %4243 = vmatmul.mubr.msk.f32.gmra.mrb[10].mxu0 %vm843_vm3, %v5279_v26 }
 0x423   : > { %4245 = vmatprep.mubr.msk.f32.mxu0 %vm5005_vm2, %v5006_v50 }
 0x426   : > { %4246 = vmatmul.mubr.msk.f32.gmra.mrb[12].mxu0 %vm843_vm3, %v5293_v31 }
 0x427   : > { %4269 = vmatprep.mubr.msk.f32.mxu0 %vm5005_vm2, %v5006_v50 }
 0x484   : > { %v922_v1 = vpop.f32.mrb[6].mxu1 }
 0x485   : > { %v1230_v4 = vmul.f32 0.35355338, %v922_v1  ;;  %v4196_v5 = vpop.f32.mrb[7].mxu1 }
 0x487   : > { %v5375_v6 = vadd.f32 %v1230_v4, %v5372_v3 }
 0x488   : > { %v927_v7 = vpop.f32.mrb[8].mxu1 }
 0x489   : > { %v1231_v8 = vmul.f32 0.35355338, %v927_v7  ;;  %v4199_v9 = vpop.f32.mrb[9].mxu1  ;;  %v1255_v10 = vsel %vm1254_vm6, %v5375_v6, -inf }
 0x48a   : > { %1256 = vmax.xlane.f32.xlu1 %v1255_v10 }
 0x48b   : > { %v5380_v11 = vadd.f32 %v1231_v8, %v5372_v3 }
 0x48c   : > { %v932_v12 = vpop.f32.mrb[10].mxu1 }
 0x48d   : > { %v1232_v13 = vmul.f32 0.35355338, %v932_v12  ;;  %v4202_v14 = vpop.f32.mrb[11].mxu1  ;;  %v1258_v15 = vsel %vm1254_vm6, %v5380_v11, -inf }
 0x48e   : > { %1259 = vmax.xlane.f32.xlu0 %v1258_v15 }
 0x48f   : > { %v5385_v17 = vadd.f32 %v1232_v13, %v5372_v3 }
 0x491   : > { %v1261_v18 = vsel %vm1254_vm6, %v5385_v17, -inf }
 0x492   : > { %1262 = vmax.xlane.f32.xlu1 %v1261_v18 }
 0x4e5   : > { %v1020_v19 = vpop.f32.mrb[2].mxu0 }
 0x4e6   : > { %v1233_v20 = vmul.f32 0.35355338, %v1020_v19  ;;  %v4211_v21 = vpop.f32.mrb[3].mxu0 }
 0x4e8   : > { %v5390_v22 = vadd.f32 %v1233_v20, %v5372_v3 }
 0x4e9   : > { %v1025_v26 = vpop.f32.mrb[4].mxu0  ;;  %v1118_v28 = vpop.f32.mrb[12].mxu1 }
 0x4ea   : > { %v1234_v32 = vmul.f32 0.35355338, %v1025_v26  ;;  %v1236_v33 = vmul.f32 0.35355338, %v1118_v28  ;;  %v4214_v34 = vpop.f32.mrb[5].mxu0  ;;  %v4226_v36 = vpop.f32.mrb[13].mxu1 }
 0x4eb   : > { %v1264_v37 = vsel %vm1254_vm6, %v5390_v22, -inf }
 0x4ec   : > { %1265 = vmax.xlane.f32.xlu0 %v1264_v37  ;;  %v5395_v38 = vadd.f32 %v1236_v33, %v5372_v3  ;;  %v5398_v39 = vadd.f32 %v1234_v32, %v5372_v3 }
 0x4ed   : > { %v1030_v40 = vpop.f32.mrb[6].mxu0  ;;  %v1123_v41 = vpop.f32.mrb[14].mxu1 }
 0x4ee   : > { %v1235_v42 = vmul.f32 0.35355338, %v1030_v40  ;;  %v1237_v43 = vmul.f32 0.35355338, %v1123_v41  ;;  %v4217_v44 = vpop.f32.mrb[7].mxu0  ;;  %v4229_v45 = vpop.f32.mrb[15].mxu1 }
 0x4ef   : > { %v1273_v46 = vsel %vm1254_vm6, %v5395_v38, -inf  ;;  %v1267_v48 = vsel %vm1254_vm6, %v5398_v39, -inf }
 0x4f0   : > { %1274 = vmax.xlane.f32.xlu1 %v1273_v46  ;;  %1268 = vmax.xlane.f32.xlu0 %v1267_v48  ;;  %v5405_v49 = vadd.f32 %v1237_v43, %v5372_v3  ;;  %v5408_v51 = vadd.f32 %v1235_v42, %v5372_v3 }
 0x4f1   : > { %v1128_v52 = vpop.f32.mrb[16].mxu1  ;;  %v1216_v53 = vpop.f32.mrb[8].mxu0 }
 0x4f2   : > { %v1238_v54 = vmul.f32 0.35355338, %v1128_v52  ;;  %v1239_v55 = vmul.f32 0.35355338, %v1216_v53  ;;  %v4232_v56 = vpop.f32.mrb[17].mxu1  ;;  %v4241_v57 = vpop.f32.mrb[9].mxu0 }
 0x4f3   : > { %v1276_v58 = vsel %vm1254_vm6, %v5405_v49, -inf  ;;  %v1270_v59 = vsel %vm1254_vm6, %v5408_v51, -inf }
 0x4f4   : > { %1277 = vmax.xlane.f32.xlu1 %v1276_v58  ;;  %1271 = vmax.xlane.f32.xlu0 %v1270_v59  ;;  %v5415_v60 = vadd.f32 %v1238_v54, %v5372_v3  ;;  %v5418_v61 = vadd.f32 %v1239_v55, %v5372_v3 }
 0x4f5   : > { %v1221_v62 = vpop.f32.mrb[10].mxu0 }
 0x4f6   : > { %v1240_v63 = vmul.f32 0.35355338, %v1221_v62  ;;  %v4244_v0 = vpop.f32.mrb[11].mxu0  ;;  %v1279_v1 = vsel %vm1254_vm6, %v5415_v60, -inf  ;;  %v1282_v2 = vsel %vm1254_vm6, %v5418_v61, -inf }
 0x4f8   : > { %1280 = vmax.xlane.f32.xlu1 %v1279_v1  ;;  %1283 = vmax.xlane.f32.xlu0 %v1282_v2  ;;  %v5425_v4 = vadd.f32 %v1240_v63, %v5372_v3 }
 0x4f9   : > { %v1226_v5 = vpop.f32.mrb[12].mxu0 }
 0x4fa   : > { %v1241_v7 = vmul.f32 0.35355338, %v1226_v5  ;;  %v4247_v8 = vpop.f32.mrb[13].mxu0  ;;  %v1285_v9 = vsel %vm1254_vm6, %v5425_v4, -inf }
 0x4fc   : > { %1286 = vmax.xlane.f32.xlu0 %v1285_v9  ;;  %v5430_v10 = vadd.f32 %v1241_v7, %v5372_v3 }
 0x4fe   : > { %v1288_v12 = vsel %vm1254_vm6, %v5430_v10, -inf }
 0x500   : > { %1289 = vmax.xlane.f32.xlu0 %v1288_v12 }
 0x509   : > { %1489 = vrot.lane.b32.xlu1 %v5275_v24, %s6234_s29 }
 0x516   : > { %1391 = vrot.lane.b32.xlu0 %v5247_v16, %s6234_s29 }
 0x517   : > { %v1257_v13 = vpop.xlane.xlu1 %1256 }
 0x518   : > { %v1291_v14 = vsub.f32 %v5375_v6, %v1257_v13 }
 0x51a   : > { %v1303_v15 = vmul.f32 1.442695, %v1291_v14 }
 0x51b   : > { %v1260_v18 = vpop.xlane.xlu0 %1259 }
 0x51c   : > { %v1292_v19 = vsub.f32 %v5380_v11, %v1260_v18  ;;  %4799 = vpow2.f32 %v1303_v15 }
 0x51e   : > { %v1305_v20 = vmul.f32 1.442695, %v1292_v19 }
 0x51f   : > { %v1263_v21 = vpop.xlane.xlu1 %1262 }
 0x520   : > { %v1293_v26 = vsub.f32 %v5385_v17, %v1263_v21  ;;  %4801 = vpow2.f32 %v1305_v20 }
 0x522   : > { %v1307_v28 = vmul.f32 1.442695, %v1293_v26 }
 0x524   : > { %4803 = vpow2.f32 %v1307_v28 }
 0x526   : > { %v5441_v32 = vpop.eup %4799 }
 0x527   : > { %v1327_v16 = vsel %vm1254_vm6, %v5441_v32, 0.0 }
 0x52a   : > { %v5445_v24 = vpop.eup %4801 }
 0x52b   : > { %v1330_v6 = vsel %vm1254_vm6, %v5445_v24, 0.0 }
 0x52d   : > { %1328 = vadd.xlane.f32.xlu1 %v1327_v16 }
 0x52e   : > { %v5449_v11 = vpop.eup %4803 }
 0x52f   : > { %v1333_v17 = vsel %vm1254_vm6, %v5449_v11, 0.0 }
 0x531   : > { %1331 = vadd.xlane.f32.xlu1 %v1330_v6 }
 0x535   : > { %1334 = vadd.xlane.f32.xlu1 %v1333_v17 }
 0x579   : > { %v1266_v33 = vpop.xlane.xlu0 %1265 }
 0x57a   : > { %v1294_v34 = vsub.f32 %v5390_v22, %v1266_v33 }
 0x57c   : > { %v1309_v36 = vmul.f32 1.442695, %v1294_v34 }
 0x57d   : > { %v1275_v37 = vpop.xlane.xlu1 %1274  ;;  %v1269_v40 = vpop.xlane.xlu0 %1268 }
 0x57e   : > { %4805 = vpow2.f32 %v1309_v36  ;;  %v1297_v41 = vsub.f32 %v5395_v38, %v1275_v37  ;;  %v1295_v42 = vsub.f32 %v5398_v39, %v1269_v40 }
 0x580   : > { %v1315_v43 = vmul.f32 1.442695, %v1297_v41  ;;  %v1311_v44 = vmul.f32 1.442695, %v1295_v42 }
 0x581   : > { %v1278_v45 = vpop.xlane.xlu1 %1277  ;;  %v1272_v46 = vpop.xlane.xlu0 %1271 }
 0x582   : > { %4807 = vpow2.f32 %v1315_v43  ;;  %v1298_v48 = vsub.f32 %v5405_v49, %v1278_v45  ;;  %v1296_v52 = vsub.f32 %v5408_v51, %v1272_v46 }
 0x583   : > { %4809 = vpow2.f32 %v1311_v44 }
 0x584   : > { %v1317_v53 = vmul.f32 1.442695, %v1298_v48  ;;  %v1313_v22 = vmul.f32 1.442695, %v1296_v52 }
 0x585   : > { %v1281_v54 = vpop.xlane.xlu1 %1280  ;;  %v1284_v55 = vpop.xlane.xlu0 %1283 }
 0x586   : > { %4811 = vpow2.f32 %v1317_v53  ;;  %v1299_v56 = vsub.f32 %v5415_v60, %v1281_v54  ;;  %v1300_v38 = vsub.f32 %v5418_v61, %v1284_v55 }
 0x587   : > { %4813 = vpow2.f32 %v1313_v22 }
 0x588   : > { %v5460_v39 = vpop.eup %4805  ;;  %v1319_v57 = vmul.f32 1.442695, %v1299_v56  ;;  %v1321_v58 = vmul.f32 1.442695, %v1300_v38 }
 0x589   : > { %v1490_v59 = vpop.permute.xlu1 %1489  ;;  %v1287_v62 = vpop.xlane.xlu0 %1286  ;;  %v1336_v49 = vsel %vm1254_vm6, %v5460_v39, 0.0 }
 0x58a   : > { %4815 = vpow2.f32 %v1319_v57  ;;  %v1301_v51 = vsub.f32 %v5425_v4, %v1287_v62  ;;  %4268 = vmatpush3.msra.mxu0 %v1490_v59  ;;  %1337 = vadd.xlane.f32.xlu0 %v1336_v49 }
 0x58b   : > { %4817 = vpow2.f32 %v1321_v58  ;;  %4583 = vmatprep.subr.bf16.mxu0 %v5004_v47 }
 0x58c   : > { %v5466_v60 = vpop.eup %4807  ;;  %v1323_v61 = vmul.f32 1.442695, %v1301_v51 }
 0x58d   : > { %v5468_v63 = vpop.eup %4809  ;;  %v1290_v0 = vpop.xlane.xlu0 %1289  ;;  %v1345_v1 = vsel %vm1254_vm6, %v5466_v60, 0.0 }
 0x58e   : > { %4819 = vpow2.f32 %v1323_v61  ;;  %v1302_v2 = vsub.f32 %v5430_v10, %v1290_v0  ;;  %1346 = vadd.xlane.f32.xlu1 %v1345_v1  ;;  %v1339_v4 = vsel %vm1254_vm6, %v5468_v63, 0.0 }
 0x58f   : > { %1340 = vadd.xlane.f32.xlu0 %v1339_v4 }
 0x590   : > { %v5475_v5 = vpop.eup %4811  ;;  %v1325_v7 = vmul.f32 1.442695, %v1302_v2 }
 0x591   : > { %v5477_v8 = vpop.eup %4813  ;;  %v1392_v9 = vpop.permute.xlu0 %1391  ;;  %v1348_v12 = vsel %vm1254_vm6, %v5475_v5, 0.0 }
 0x592   : > { %4821 = vpow2.f32 %v1325_v7  ;;  %1349 = vadd.xlane.f32.xlu1 %v1348_v12  ;;  %v1342_v13 = vsel %vm1254_vm6, %v5477_v8, 0.0  ;;  %4253 = vmatpush3.msra.mxu1 %v1392_v9 }
 0x593   : > { %1343 = vadd.xlane.f32.xlu0 %v1342_v13  ;;  %4580 = vmatprep.subr.bf16.mxu1 %v5004_v47 }
 0x594   : > { %v5484_v10 = vpop.eup %4815 }
 0x595   : > { %v5486_v14 = vpop.eup %4817  ;;  %v1351_v15 = vsel %vm1254_vm6, %v5484_v10, 0.0 }
 0x596   : > { %1352 = vadd.xlane.f32.xlu1 %v1351_v15  ;;  %v1354_v18 = vsel %vm1254_vm6, %v5486_v14, 0.0 }
 0x597   : > { %1355 = vadd.xlane.f32.xlu0 %v1354_v18 }
 0x598   : > { %v5492_v19 = vpop.eup %4819 }
 0x599   : > { %v1357_v20 = vsel %vm1254_vm6, %v5492_v19, 0.0 }
 0x59b   : > { %1358 = vadd.xlane.f32.xlu0 %v1357_v20 }
 0x59c   : > { %v5496_v21 = vpop.eup %4821 }
 0x59d   : > { %v1360_v26 = vsel %vm1254_vm6, %v5496_v21, 0.0 }
 0x59f   : > { %1361 = vadd.xlane.f32.xlu0 %v1360_v26 }
 0x5a7   : > { %4749 = vrot.lane.b32.xlu1 %v5285_v29, %s6234_s29 }
 0x5ab   : > { %1587 = vrot.lane.b32.xlu1 %v5289_v30, %s6234_s29 }
 0x5af   : > { %1685 = vrot.lane.b32.xlu1 %v5293_v31, %s6234_s29 }
 0x5b5   : > { %4744 = vrot.lane.b32.xlu0 %v5271_v23, %s6234_s29 }
 0x5ba   : > { %v1329_v28 = vpop.xlane.xlu1 %1328 }
 0x5bb   : > { %4823 = vrcp.f32 %v1329_v28 }
 0x5be   : > { %v1332_v16 = vpop.xlane.xlu1 %1331 }
 0x5bf   : > { %4825 = vrcp.f32 %v1332_v16 }
 0x5c2   : > { %v1335_v6 = vpop.xlane.xlu1 %1334 }
 0x5c3   : > { %4827 = vrcp.f32 %v1335_v6 }
 0x5c5   : > { %v4824_v17 = vpop.eup %4823 }
 0x5c6   : > { %v1375_v33 = vmul.f32 %v4824_v17, %v5441_v32 }
 0x5c8   : > { %4255 = vmatmul.mubr.msk.f32.vlgmr.msra.gmra.mrb[18].mxu1 %vm1254_vm6, %v1375_v33 }
 0x5c9   : > { %v4826_v29 = vpop.eup %4825  ;;  %4257 = vmatprep.mubr.msk.f32.mxu1 %vm5005_vm2, %v5006_v50 }
 0x5ca   : > { %v1376_v30 = vmul.f32 %v4826_v29, %v5445_v24 }
 0x5cc   : > { %4258 = vmatmul.mubr.msk.f32.gmra.mrb[20].mxu1 %vm1254_vm6, %v1376_v30 }
 0x5cd   : > { %v4828_v23 = vpop.eup %4827  ;;  %4260 = vmatprep.mubr.msk.f32.mxu1 %vm5005_vm2, %v5006_v50 }
 0x5ce   : > { %v1377_v31 = vmul.f32 %v4828_v23, %v5449_v11 }
 0x5d0   : > { %4261 = vmatmul.mubr.msk.f32.gmra.mrb[22].mxu1 %vm1254_vm6, %v1377_v31 }
 0x5d1   : > { %4284 = vmatprep.mubr.msk.f32.mxu1 %vm5005_vm2, %v5006_v50 }
 0x617   : > { %v1338_v32 = vpop.xlane.xlu0 %1337 }
 0x618   : > { %4829 = vrcp.f32 %v1338_v32 }
 0x61b   : > { %v1347_v34 = vpop.xlane.xlu1 %1346 }
 0x61c   : > { %v1341_v36 = vpop.xlane.xlu0 %1340 }
 0x61d   : > { %4831 = vrcp.f32 %v1341_v36 }
 0x61f   : > { %v1350_v37 = vpop.xlane.xlu1 %1349 }
 0x620   : > { %v1344_v24 = vpop.xlane.xlu0 %1343 }
 0x621   : > { %4833 = vrcp.f32 %v1344_v24 }
 0x622   : > { %v4830_v40 = vpop.eup %4829 }
 0x623   : > { %v1378_v41 = vmul.f32 %v4830_v40, %v5460_v39  ;;  %v1353_v42 = vpop.xlane.xlu1 %1352 }
 0x624   : > { %v1356_v43 = vpop.xlane.xlu0 %1355 }
 0x625   : > { %4835 = vrcp.f32 %v1356_v43  ;;  %4270 = vmatmul.mubr.msk.f32.vlgmr.msra.gmra.mrb[14].mxu0 %vm1254_vm6, %v1378_v41 }
 0x626   : > { %4272 = vmatprep.mubr.msk.f32.mxu0 %vm5005_vm2, %v5006_v50 }
 0x627   : > { %v4832_v11 = vpop.eup %4831  ;;  %v4750_v44 = vpop.permute.xlu1 %4749 }
 0x628   : > { %v4752_v45 = vunpack.i.h.bf16 %v4750_v44  ;;  %v4751_v46 = vunpack.i.l.bf16 %v4750_v44  ;;  %v1359_v48 = vpop.xlane.xlu0 %1358  ;;  %v1379_v52 = vmul.f32 %v4832_v11, %v5468_v63 }
 0x629   : > { %4837 = vrcp.f32 %v1359_v48 }
 0x62a   : > { %v4584_v53 = vpack.c.bf16 %v4752_v45, %v4751_v46  ;;  %4273 = vmatmul.mubr.msk.f32.gmra.mrb[16].mxu0 %vm1254_vm6, %v1379_v52  ;;  %4839 = vrcp.f32 %v1347_v34 }
 0x62b   : > { %v4834_v22 = vpop.eup %4833  ;;  %v1588_v54 = vpop.permute.xlu1 %1587  ;;  %4275 = vmatprep.mubr.msk.f32.mxu0 %vm5005_vm2, %v5006_v50 }
 0x62c   : > { %v1362_v55 = vpop.xlane.xlu0 %1361  ;;  %4585 = vmatpush3.bf16.msra.mxu0 %v4584_v53  ;;  %v1380_v56 = vmul.f32 %v4834_v22, %v5477_v8 }
 0x62d   : > { %4841 = vrcp.f32 %v1362_v55  ;;  %4297 = vmatprep.subr.mxu0 %v5006_v50 }
 0x62e   : > { %4276 = vmatmul.mubr.msk.f32.gmra.mrb[18].mxu0 %vm1254_vm6, %v1380_v56  ;;  %4843 = vrcp.f32 %v1350_v37 }
 0x62f   : > { %v4836_v38 = vpop.eup %4835  ;;  %v1686_v39 = vpop.permute.xlu1 %1685  ;;  %4299 = vmatprep.mubr.msk.f32.mxu0 %vm5005_vm2, %v5006_v50  ;;  %4845 = vrcp.f32 %v1353_v42 }
 0x630   : > { %v1384_v57 = vmul.f32 %v4836_v38, %v5486_v14  ;;  %v4745_v58 = vpop.permute.xlu0 %4744  ;;  %4298 = vmatpush3.msra.mxu0 %v1686_v39 }
 0x631   : > { %v4747_v59 = vunpack.i.h.bf16 %v4745_v58  ;;  %v4746_v62 = vunpack.i.l.bf16 %v4745_v58  ;;  %4592 = vmatprep.subr.bf16.mxu0 %v5004_v47 }
 0x632   : > { %4300 = vmatmul.mubr.msk.f32.vlgmr.msra.gmra.mrb[20].mxu0 %vm1254_vm6, %v1384_v57 }
 0x633   : > { %v4838_v49 = vpop.eup %4837  ;;  %v4581_v51 = vpack.c.bf16 %v4747_v59, %v4746_v62  ;;  %4302 = vmatprep.mubr.msk.f32.mxu0 %vm5005_vm2, %v5006_v50  ;;  %v4939_v59 = vld [vmem:[#allocation2 + $0x10] sm:$0xff] }
 0x634   : > { %v1385_v61 = vmul.f32 %v4838_v49, %v5492_v19  ;;  %v4840_v63 = vpop.eup %4839 }
 0x635   : > { %4582 = vmatpush3.bf16.msra.mxu1 %v4581_v51  ;;  %v1381_v1 = vmul.f32 %v4840_v63, %v5466_v60 }
 0x636   : > { %4303 = vmatmul.mubr.msk.f32.gmra.mrb[22].mxu0 %vm1254_vm6, %v1385_v61  ;;  %4282 = vmatprep.subr.mxu1 %v5006_v50 }
 0x637   : > { %v4842_v0 = vpop.eup %4841  ;;  %4305 = vmatprep.mubr.msk.f32.mxu0 %vm5005_vm2, %v5006_v50 }
 0x638   : > { %v1386_v2 = vmul.f32 %v4842_v0, %v5496_v21  ;;  %v4844_v4 = vpop.eup %4843 }
 0x639   : > { %4283 = vmatpush3.msra.mxu1 %v1588_v54  ;;  %v1382_v7 = vmul.f32 %v4844_v4, %v5475_v5  ;;  %v4846_v8 = vpop.eup %4845 }
 0x63a   : > { %4285 = vmatmul.mubr.msk.f32.vlgmr.msra.gmra.mrb[24].mxu1 %vm1254_vm6, %v1381_v1  ;;  %4306 = vmatmul.mubr.msk.f32.gmra.mrb[24].mxu0 %vm1254_vm6, %v1386_v2  ;;  %v1383_v60 = vmul.f32 %v4846_v8, %v5484_v10 }
 0x63b   : > { %4287 = vmatprep.mubr.msk.f32.mxu1 %vm5005_vm2, %v5006_v50  ;;  %4586 = vmatprep.subr.bf16.mxu1 %v5004_v47 }
 0x63c   : > { %4341 = vmatprep.mubr.msk.f32.mxu0 %vm5005_vm2, %v5006_v50 }
 0x63e   : > { %4288 = vmatmul.mubr.msk.f32.gmra.mrb[26].mxu1 %vm1254_vm6, %v1382_v7 }
 0x63f   : > { %4290 = vmatprep.mubr.msk.f32.mxu1 %vm5005_vm2, %v5006_v50 }
 0x642   : > { %4291 = vmatmul.mubr.msk.f32.gmra.mrb[28].mxu1 %vm1254_vm6, %v1383_v60 }
 0x643   : > { %4316 = vmatprep.mubr.msk.f32.mxu1 %vm5005_vm2, %v5006_v50 }
 0x69b   : > { %v1471_v9 = vpop.f32.mrb[18].mxu1 }
 0x69c   : > { %v4256_v12 = vpop.f32.mrb[19].mxu1 }
 0x69f   : > { %v1476_v13 = vpop.f32.mrb[20].mxu1 }
 0x6a0   : > { %v4259_v5 = vpop.f32.mrb[21].mxu1 }
 0x6a3   : > { %v1481_v14 = vpop.f32.mrb[22].mxu1 }
 0x6a4   : > { %v4262_v15 = vpop.f32.mrb[23].mxu1 }
 0x6a5   : > { %v1888_v15 = vld [vmem:[%s6213_s9 + $0x8] sm:$0xff] }
 0x6f8   : > { %v1569_v18 = vpop.f32.mrb[14].mxu0 }
 0x6f9   : > { %1782 = vrot.lane.b32.xlu1 %v1569_v18, %s6232_s19  ;;  %v4271_v19 = vpop.f32.mrb[15].mxu0 }
 0x6fa   : > { %v1889_v19 = vld [vmem:[%s6213_s9 + $0x10] sm:$0xff] }
 0x6fd   : > { %v1574_v20 = vpop.f32.mrb[16].mxu0 }
 0x6fe   : > { %v4274_v21 = vpop.f32.mrb[17].mxu0 }
 0x701   : > { %v1579_v26 = vpop.f32.mrb[18].mxu0 }
 0x702   : > { %v4277_v10 = vpop.f32.mrb[19].mxu0 }
 0x705   : > { %v1765_v28 = vpop.f32.mrb[20].mxu0 }
 0x706   : > { %1806 = vrot.lane.b32.xlu1 %v1765_v28, %s6228_s30  ;;  %v4301_v16 = vpop.f32.mrb[21].mxu0 }
 0x709   : > { %v1770_v6 = vpop.f32.mrb[22].mxu0 }
 0x70a   : > { %v4304_v17 = vpop.f32.mrb[23].mxu0 }
 0x70d   : > { %v1667_v33 = vpop.f32.mrb[24].mxu1  ;;  %v1775_v29 = vpop.f32.mrb[24].mxu0 }
 0x70e   : > { %1794 = vrot.lane.b32.xlu0 %v1667_v33, %s6230_s18  ;;  %v4286_v30 = vpop.f32.mrb[25].mxu1  ;;  %v4307_v23 = vpop.f32.mrb[25].mxu0 }
 0x70f   : > { %v3909_v23 = vld [vmem:[%s6211_s7] ss:$0 sm:$0xff] }
 0x711   : > { %v1672_v31 = vpop.f32.mrb[26].mxu1 }
 0x712   : > { %v4289_v32 = vpop.f32.mrb[27].mxu1  ;;  %1784 = vrot.lane.b32.xlu0 %v1574_v20, %s6232_s19  ;;  %1796 = vrot.lane.b32.xlu1 %v1672_v31, %s6230_s18  ;;  %v1890_v20 = vld [vmem:[%s6213_s9 + $0x18] sm:$0xff] }
 0x713   : > { %v4590_v21 = vpack.c.bf16 %v1890_v20, %v1889_v19 }
 0x715   : > { %v1677_v34 = vpop.f32.mrb[28].mxu1 }
 0x716   : > { %v4292_v36 = vpop.f32.mrb[29].mxu1  ;;  %1786 = vrot.lane.b32.xlu1 %v1579_v26, %s6232_s19  ;;  %1808 = vrot.lane.b32.xlu0 %v1770_v6, %s6228_s30 }
 0x71a   : > { %1798 = vrot.lane.b32.xlu0 %v1677_v34, %s6230_s18  ;;  %1810 = vrot.lane.b32.xlu1 %v1775_v29, %s6228_s30  ;;  %v3910_v34 = vld [vmem:[%s6212_s8] ss:$0 sm:$0xff]  ;;  %s6255_s30 = smov 104   ;;  %s6256_s18 = smov 96  }
 0x76b   : > { %v1783_v37 = vpop.permute.xlu1 %1782 }
 0x76c   : > { %v1815_v24 = vsel %vm843_vm3, %v1471_v9, %v1783_v37 }
 0x778   : > { %v1807_v40 = vpop.permute.xlu1 %1806 }
 0x780   : > { %v1795_v41 = vpop.permute.xlu0 %1794 }
 0x781   : > { %v1819_v42 = vsel %vm1818_vm7, %v1815_v24, %v1795_v41 }
 0x782   : > { %v1822_v43 = vsel %vm1254_vm6, %v1819_v42, %v1807_v40 }
 0x783   : > { %v5573_v11 = vadd.f32 %v1822_v43, %v5196_v25 }
 0x784   : > { %v1785_v44 = vpop.permute.xlu0 %1784  ;;  %v1797_v45 = vpop.permute.xlu1 %1796 }
 0x785   : > { %v1816_v46 = vsel %vm843_vm3, %v1476_v13, %v1785_v44  ;;  %v1830_v48 = vsel %vm646_vm1, %v5573_v11, 0.0 }
 0x786   : > { %1831 = vadd.xlane.f32.xlu0 %v1830_v48  ;;  %v1820_v52 = vsel %vm1818_vm7, %v1816_v46, %v1797_v45  ;;  %v2068_v48 = vld [vmem:[%s6215_s11] sm:$0xff] }
 0x788   : > { %v1787_v53 = vpop.permute.xlu1 %1786  ;;  %v1809_v22 = vpop.permute.xlu0 %1808 }
 0x789   : > { %v1823_v54 = vsel %vm1254_vm6, %v1820_v52, %v1809_v22  ;;  %v1817_v25 = vsel %vm843_vm3, %v1481_v14, %v1787_v53  ;;  %v1887_v14 = vld [vmem:[%s6213_s9] sm:$0xff]  ;;  %v2069_v52 = vld [vmem:[%s6215_s11 + $0x8] sm:$0xff]  ;;  %v2070_v22 = vld [vmem:[%s6215_s11 + $0x10] sm:$0xff] }
 0x78a   : > { %v5581_v55 = vadd.f32 %v1823_v54, %v5200_v27  ;;  %v4587_v18 = vpack.c.bf16 %v1888_v15, %v1887_v14  ;;  %v4593_v53 = vpack.c.bf16 %v2069_v52, %v2068_v48  ;;  %v2071_v54 = vld [vmem:[%s6215_s11 + $0x18] sm:$0xff] }
 0x78c   : > { %v1799_v56 = vpop.permute.xlu0 %1798  ;;  %v1811_v38 = vpop.permute.xlu1 %1810  ;;  %v1833_v39 = vsel %vm646_vm1, %v5581_v55, 0.0  ;;  %4588 = vmatpush3.bf16.msra.mxu1 %v4587_v18  ;;  %4594 = vmatpush3.bf16.msra.mxu0 %v4593_v53 }
 0x78d   : > { %v1821_v57 = vsel %vm1818_vm7, %v1817_v25, %v1799_v56  ;;  %1834 = vadd.xlane.f32.xlu1 %v1833_v39  ;;  %4589 = vmatprep.subr.bf16.mxu1 %v5004_v47  ;;  %v4596_v25 = vpack.c.bf16 %v2071_v54, %v2070_v22  ;;  %v2072_v56 = vld [vmem:[%s6215_s11 + $0x20] sm:$0xff] }
 0x78e   : > { %v1824_v58 = vsel %vm1254_vm6, %v1821_v57, %v1811_v38  ;;  %4595 = vmatprep.subr.bf16.mxu0 %v5004_v47  ;;  %v2073_v38 = vld [vmem:[%s6215_s11 + $0x28] sm:$0xff]  ;;  %v2074_v57 = vld [vmem:[%s6215_s11 + $0x30] sm:$0xff] }
 0x78f   : > { %v5588_v62 = vadd.f32 %v4939_v59, %v1824_v58  ;;  %v4599_v39 = vpack.c.bf16 %v2073_v38, %v2072_v56  ;;  %v2075_v58 = vld [vmem:[%s6215_s11 + $0x38] sm:$0xff] }
 0x790   : > { %4591 = vmatpush3.bf16.msra.mxu1 %v4590_v21  ;;  %4597 = vmatpush3.bf16.msra.mxu0 %v4596_v25  ;;  %v4602_v59 = vpack.c.bf16 %v2075_v58, %v2074_v57 }
 0x791   : > { %v1836_v49 = vsel %vm646_vm1, %v5588_v62, 0.0  ;;  %4604 = vmatprep.subr.bf16.mxu1 %v5004_v47  ;;  %4598 = vmatprep.subr.bf16.mxu0 %v5004_v47 }
 0x792   : > { %1837 = vadd.xlane.f32.xlu0 %v1836_v49  ;;  %v3911_v49 = vld [vmem:[%s6214_s10] ss:$0 sm:$0xff] }
 0x794   : > { %4600 = vmatpush3.bf16.msra.mxu0 %v4599_v39 }
 0x795   : > { %4601 = vmatprep.subr.bf16.mxu0 %v5004_v47 }
 0x798   : > { %4603 = vmatpush3.bf16.msra.mxu0 %v4602_v59 }
 0x799   : > { %4610 = vmatprep.subr.bf16.mxu0 %v5004_v47 }
 0x813   : > { %v1832_v27 = vpop.xlane.xlu0 %1831 }
 0x814   : > { %v1839_v51 = vmul.f32 0.03125, %v1832_v27 }
 0x816   : > { %v1842_v61 = vsub.f32 %v5573_v11, %v1839_v51 }
 0x818   : > { %v1845_v63 = vmul.f32 %v1842_v61, %v1842_v61 }
 0x81a   : > { %v1835_v0 = vpop.xlane.xlu1 %1834  ;;  %v1848_v1 = vsel %vm646_vm1, %v1845_v63, 0.0 }
 0x81b   : > { %v1840_v2 = vmul.f32 0.03125, %v1835_v0  ;;  %1849 = vadd.xlane.f32.xlu0 %v1848_v1 }
 0x81d   : > { %v1843_v4 = vsub.f32 %v5581_v55, %v1840_v2 }
 0x81f   : > { %v1838_v7 = vpop.xlane.xlu0 %1837  ;;  %v1846_v8 = vmul.f32 %v1843_v4, %v1843_v4 }
 0x820   : > { %v1841_v60 = vmul.f32 0.03125, %v1838_v7 }
 0x821   : > { %v1851_v9 = vsel %vm646_vm1, %v1846_v8, 0.0 }
 0x822   : > { %v1844_v12 = vsub.f32 %v5588_v62, %v1841_v60  ;;  %1852 = vadd.xlane.f32.xlu0 %v1851_v9 }
 0x824   : > { %v1847_v13 = vmul.f32 %v1844_v12, %v1844_v12 }
 0x826   : > { %v1854_v5 = vsel %vm646_vm1, %v1847_v13, 0.0 }
 0x827   : > { %1855 = vadd.xlane.f32.xlu1 %v1854_v5 }
 0x8a8   : > { %v1850_v26 = vpop.xlane.xlu0 %1849 }
 0x8a9   : > { %v1857_v10 = vmul.f32 0.03125, %v1850_v26 }
 0x8ab   : > { %v1860_v28 = vadd.f32 1e-06, %v1857_v10 }
 0x8ad   : > { %4847 = vrsqrt.f32 %v1860_v28 }
 0x8af   : > { %v1853_v16 = vpop.xlane.xlu0 %1852 }
 0x8b0   : > { %v1858_v6 = vmul.f32 0.03125, %v1853_v16 }
 0x8b2   : > { %v1861_v17 = vadd.f32 1e-06, %v1858_v6 }
 0x8b4   : > { %4849 = vrsqrt.f32 %v1861_v17  ;;  %v1856_v33 = vpop.xlane.xlu1 %1855 }
 0x8b5   : > { %v1859_v29 = vmul.f32 0.03125, %v1856_v33 }
 0x8b7   : > { %v4848_v30 = vpop.eup %4847  ;;  %v1862_v31 = vadd.f32 1e-06, %v1859_v29 }
 0x8b8   : > { %v1866_v32 = vmul.f32 %v4848_v30, %v1842_v61 }
 0x8b9   : > { %4851 = vrsqrt.f32 %v1862_v31 }
 0x8ba   : > { %v1875_v36 = vmul.f32 %v3909_v23, %v1866_v32 }
 0x8bc   : > { %v1884_v37 = vadd.f32 %v3910_v34, %v1875_v36 }
 0x8be   : > { %v4850_v24 = vpop.eup %4849  ;;  %4317 = vmatmul.mubr.msk.f32.vlgmr.msra.gmra.mrb[30].mxu1 %vm646_vm1, %v1884_v37 }
 0x8bf   : > { %4319 = vmatprep.mubr.msk.f32.mxu1 %vm5005_vm2, %v5006_v50  ;;  %v1867_v40 = vmul.f32 %v4850_v24, %v1843_v4 }
 0x8c1   : > { %v1876_v41 = vmul.f32 %v3909_v23, %v1867_v40 }
 0x8c3   : > { %v4852_v42 = vpop.eup %4851  ;;  %v1885_v43 = vadd.f32 %v3910_v34, %v1876_v41 }
 0x8c4   : > { %v1868_v44 = vmul.f32 %v4852_v42, %v1844_v12 }
 0x8c5   : > { %4320 = vmatmul.mubr.msk.f32.gmra.mrb[32].mxu1 %vm646_vm1, %v1885_v43 }
 0x8c6   : > { %4322 = vmatprep.mubr.msk.f32.mxu1 %vm5005_vm2, %v5006_v50  ;;  %v1877_v45 = vmul.f32 %v3909_v23, %v1868_v44 }
 0x8c8   : > { %v1886_v46 = vadd.f32 %v3910_v34, %v1877_v45 }
 0x8ca   : > { %4323 = vmatmul.mubr.msk.f32.gmra.mrb[34].mxu1 %vm646_vm1, %v1886_v46 }
 0x8cb   : > { %4358 = vmatprep.mubr.msk.f32.mxu1 %vm5005_vm2, %v5006_v50 }
 0x991   : > { %v1973_v27 = vpop.f32.mrb[30].mxu1 }
 0x992   : > { %v5658_v51 = vadd.f32 %v3911_v49, %v1973_v27  ;;  %v4318_v61 = vpop.f32.mrb[31].mxu1 }
 0x994   : > { %v5661_v63 = vmul.f32 0.70710677, %v5658_v51 }
 0x996   : > { %v1993_v0 = vand.u32 2147483647, %v5661_v63  ;;  %vm2053_vm8 = vcmp.ge.f32.partialorder %v5661_v63, 0.0 }
 0x998   : > { %v1996_v1 = vmul.f32 0.3275911, %v1993_v0  ;;  %v1978_v2 = vpop.f32.mrb[32].mxu1  ;;  %v2035_v19 = vsub.f32 0.0, %v1993_v0 }
 0x999   : > { %v5664_v4 = vadd.f32 %v3911_v49, %v1978_v2  ;;  %v4321_v7 = vpop.f32.mrb[33].mxu1 }
 0x99a   : > { %v1999_v8 = vadd.f32 1.0, %v1996_v1  ;;  %v2038_v10 = vmul.f32 %v2035_v19, %v1993_v0 }
 0x99b   : > { %v5667_v60 = vmul.f32 0.70710677, %v5664_v4 }
 0x99c   : > { %4853 = vrcp.f32 %v1999_v8  ;;  %v2041_v33 = vmul.f32 1.442695, %v2038_v10 }
 0x99d   : > { %v1994_v9 = vand.u32 2147483647, %v5667_v60  ;;  %v1983_v12 = vpop.f32.mrb[34].mxu1  ;;  %vm2054_vm10 = vcmp.ge.f32.partialorder %v5667_v60, 0.0 }
 0x99e   : > { %v5670_v13 = vadd.f32 %v3911_v49, %v1983_v12  ;;  %v4324_v5 = vpop.f32.mrb[35].mxu1 }
 0x99f   : > { %v1997_v14 = vmul.f32 0.3275911, %v1994_v9  ;;  %v2036_v17 = vsub.f32 0.0, %v1994_v9 }
 0x9a0   : > { %v5673_v15 = vmul.f32 0.70710677, %v5670_v13 }
 0x9a1   : > { %v2000_v18 = vadd.f32 1.0, %v1997_v14  ;;  %v2039_v31 = vmul.f32 %v2036_v17, %v1994_v9  ;;  %v1987_v9 = vmul.f32 0.5, %v5658_v51  ;;  %v1988_v51 = vmul.f32 0.5, %v5664_v4 }
 0x9a2   : > { %v1995_v20 = vand.u32 2147483647, %v5673_v15  ;;  %vm2055_vm11 = vcmp.ge.f32.partialorder %v5673_v15, 0.0  ;;  %v3918_v15 = vld [vmem:[%s6216_s12] ss:$0 sm:$0xff] }
 0x9a3   : > { %4855 = vrcp.f32 %v2000_v18  ;;  %v2043_v40 = vmul.f32 1.442695, %v2039_v31 }
 0x9a4   : > { %v1998_v21 = vmul.f32 0.3275911, %v1995_v20  ;;  %v2037_v34 = vsub.f32 0.0, %v1995_v20 }
 0x9a6   : > { %v4854_v26 = vpop.eup %4853  ;;  %v2001_v28 = vadd.f32 1.0, %v1998_v21  ;;  %v2040_v43 = vmul.f32 %v2037_v34, %v1995_v20 }
 0x9a7   : > { %v2008_v16 = vmul.f32 1.0614054, %v4854_v26 }
 0x9a8   : > { %4857 = vrcp.f32 %v2001_v28  ;;  %v2045_v22 = vmul.f32 1.442695, %v2040_v43 }
 0x9a9   : > { %v2011_v6 = vadd.f32 -1.4531521, %v2008_v16  ;;  %4859 = vpow2.f32 %v2041_v33 }
 0x9aa   : > { %4861 = vpow2.f32 %v2043_v40 }
 0x9ab   : > { %v2014_v29 = vmul.f32 %v4854_v26, %v2011_v6  ;;  %4863 = vpow2.f32 %v2045_v22 }
 0x9ad   : > { %v4856_v30 = vpop.eup %4855  ;;  %v2017_v23 = vadd.f32 1.4214138, %v2014_v29  ;;  %v1989_v29 = vmul.f32 0.5, %v5670_v13 }
 0x9ae   : > { %v2009_v32 = vmul.f32 1.0614054, %v4856_v30 }
 0x9af   : > { %v2020_v36 = vmul.f32 %v4854_v26, %v2017_v23 }
 0x9b0   : > { %v2012_v37 = vadd.f32 -1.4531521, %v2009_v32 }
 0x9b1   : > { %v2023_v24 = vadd.f32 -0.28449672, %v2020_v36 }
 0x9b2   : > { %v4858_v41 = vpop.eup %4857  ;;  %v2015_v42 = vmul.f32 %v4856_v30, %v2012_v37 }
 0x9b3   : > { %v2026_v44 = vmul.f32 %v4854_v26, %v2023_v24  ;;  %v2010_v45 = vmul.f32 1.0614054, %v4858_v41  ;;  %v4860_v56 = vpop.eup %4859 }
 0x9b4   : > { %v2018_v46 = vadd.f32 1.4214138, %v2015_v42  ;;  %v4862_v2 = vpop.eup %4861 }
 0x9b5   : > { %v2029_v48 = vadd.f32 0.2548296, %v2026_v44  ;;  %v2013_v52 = vadd.f32 -1.4531521, %v2010_v45  ;;  %v4864_v21 = vpop.eup %4863 }
 0x9b6   : > { %v2021_v53 = vmul.f32 %v4856_v30, %v2018_v46 }
 0x9b7   : > { %v2032_v54 = vmul.f32 %v4854_v26, %v2029_v48  ;;  %v2016_v25 = vmul.f32 %v4858_v41, %v2013_v52 }
 0x9b8   : > { %v2024_v38 = vadd.f32 -0.28449672, %v2021_v53 }
 0x9b9   : > { %v2047_v39 = vmul.f32 %v4860_v56, %v2032_v54  ;;  %v2019_v57 = vadd.f32 1.4214138, %v2016_v25 }
 0x9ba   : > { %v2027_v58 = vmul.f32 %v4856_v30, %v2024_v38 }
 0x9bb   : > { %v2050_v59 = vsub.f32 1.0, %v2047_v39  ;;  %v2022_v49 = vmul.f32 %v4858_v41, %v2019_v57 }
 0x9bc   : > { %v2030_v27 = vadd.f32 0.2548296, %v2027_v58 }
 0x9bd   : > { %v2056_v61 = vsub.f32 0.0, %v2050_v59  ;;  %v2025_v0 = vadd.f32 -0.28449672, %v2022_v49  ;;  %v3924_v49 = vld [vmem:[%s6210_s6 + $0x28] sm:$0xff] }
 0x9be   : > { %v2033_v1 = vmul.f32 %v4856_v30, %v2030_v27 }
 0x9bf   : > { %v2059_v7 = vsel %vm2053_vm8, %v2050_v59, %v2056_v61  ;;  %v2028_v8 = vmul.f32 %v4858_v41, %v2025_v0  ;;  %v3923_v59 = vld [vmem:[%s6210_s6 + $0x20] sm:$0xff]  ;;  %v3925_v61 = vld [vmem:[%s6210_s6 + $0x30] sm:$0xff]  ;;  %v3926_v0 = vld [vmem:[%s6210_s6 + $0x38] sm:$0xff] }
 0x9c0   : > { %v2062_v12 = vadd.f32 1.0, %v2059_v7  ;;  %v2048_v5 = vmul.f32 %v4862_v2, %v2033_v1  ;;  %v4605_v27 = vpack.c.bf16 %v3924_v49, %v3923_v59  ;;  %v4608_v1 = vpack.c.bf16 %v3926_v0, %v3925_v61 }
 0x9c1   : > { %v2031_v14 = vadd.f32 0.2548296, %v2028_v8 }
 0x9c2   : > { %v2065_v18 = vmul.f32 %v2062_v12, %v1987_v9  ;;  %v2051_v19 = vsub.f32 1.0, %v2048_v5  ;;  %4606 = vmatpush3.bf16.msra.mxu1 %v4605_v27 }
 0x9c3   : > { %v2034_v20 = vmul.f32 %v4858_v41, %v2031_v14  ;;  %4607 = vmatprep.subr.bf16.mxu1 %v5004_v47 }
 0x9c4   : > { %v2057_v26 = vsub.f32 0.0, %v2051_v19  ;;  %4342 = vmatmul.mubr.msk.f32.vlgmr.msra.gmra.mrb[26].mxu0 %vm2076_vm9, %v2065_v18 }
 0x9c5   : > { %v2049_v63 = vmul.f32 %v4864_v21, %v2034_v20  ;;  %4344 = vmatprep.mubr.msk.f32.mxu0 %vm5005_vm2, %v5006_v50  ;;  %v3921_v20 = vld [vmem:[%s6208_s4 + $0x1] ss:$0 sm:$0xff] }
 0x9c6   : > { %v2060_v10 = vsel %vm2054_vm10, %v2051_v19, %v2057_v26  ;;  %4609 = vmatpush3.bf16.msra.mxu1 %v4608_v1 }
 0x9c7   : > { %v2063_v28 = vadd.f32 1.0, %v2060_v10  ;;  %v2052_v16 = vsub.f32 1.0, %v2049_v63  ;;  %4614 = vmatprep.subr.bf16.mxu1 %v5004_v47  ;;  %v3922_v63 = vld [vmem:[%s6209_s5 + $0x1] ss:$0 sm:$0xff] }
 0x9c9   : > { %v2066_v6 = vmul.f32 %v2063_v28, %v1988_v51  ;;  %v2058_v17 = vsub.f32 0.0, %v2052_v16 }
 0x9cb   : > { %v2061_v33 = vsel %vm2055_vm11, %v2052_v16, %v2058_v17  ;;  %4345 = vmatmul.mubr.msk.f32.gmra.mrb[28].mxu0 %vm2076_vm9, %v2066_v6 }
 0x9cc   : > { %v2064_v30 = vadd.f32 1.0, %v2061_v33  ;;  %4347 = vmatprep.mubr.msk.f32.mxu0 %vm5005_vm2, %v5006_v50 }
 0x9ce   : > { %v2067_v60 = vmul.f32 %v2064_v30, %v1989_v29 }
 0x9d0   : > { %4348 = vmatmul.mubr.msk.f32.gmra.mrb[30].mxu0 %vm2076_vm9, %v2067_v60 }
 0x9d1   : > { %4373 = vmatprep.mubr.msk.f32.mxu0 %vm5005_vm2, %v5006_v50 }
 0xa97   : > { %v2152_v4 = vpop.f32.mrb[26].mxu0 }
 0xa98   : > { %v2166_v23 = vadd.f32 %v2152_v4, %v5573_v11  ;;  %v4343_v31 = vpop.f32.mrb[27].mxu0 }
 0xa9a   : > { %v5695_v32 = vadd.f32 %v3918_v15, %v2166_v23 }
 0xa9c   : > { %v2183_v13 = vsel %vm646_vm1, %v5695_v32, 0.0 }
 0xa9d   : > { %2184 = vadd.xlane.f32.xlu0 %v2183_v13 }
 0xa9e   : > { %v2157_v34 = vpop.f32.mrb[28].mxu0 }
 0xa9f   : > { %v2167_v36 = vadd.f32 %v2157_v34, %v5581_v55  ;;  %v4346_v37 = vpop.f32.mrb[29].mxu0 }
 0xaa1   : > { %v5700_v24 = vadd.f32 %v3918_v15, %v2167_v36 }
 0xaa3   : > { %v2162_v40 = vpop.f32.mrb[30].mxu0  ;;  %v2186_v41 = vsel %vm646_vm1, %v5700_v24, 0.0 }
 0xaa4   : > { %v2168_v42 = vadd.f32 %v2162_v40, %v5588_v62  ;;  %2187 = vadd.xlane.f32.xlu1 %v2186_v41  ;;  %v4349_v11 = vpop.f32.mrb[31].mxu0 }
 0xaa6   : > { %v5705_v43 = vadd.f32 %v3918_v15, %v2168_v42 }
 0xaa8   : > { %v2189_v44 = vsel %vm646_vm1, %v5705_v43, 0.0 }
 0xaa9   : > { %2190 = vadd.xlane.f32.xlu0 %v2189_v44 }
 0xb2a   : > { %v2185_v45 = vpop.xlane.xlu0 %2184 }
 0xb2b   : > { %v2192_v46 = vmul.f32 0.03125, %v2185_v45 }
 0xb2d   : > { %v2195_v55 = vsub.f32 %v5695_v32, %v2192_v46 }
 0xb2f   : > { %v2198_v48 = vmul.f32 %v2195_v55, %v2195_v55 }
 0xb31   : > { %v2188_v52 = vpop.xlane.xlu1 %2187  ;;  %v2201_v53 = vsel %vm646_vm1, %v2198_v48, 0.0 }
 0xb32   : > { %v2193_v22 = vmul.f32 0.03125, %v2188_v52  ;;  %2202 = vadd.xlane.f32.xlu1 %v2201_v53 }
 0xb34   : > { %v2196_v62 = vsub.f32 %v5700_v24, %v2193_v22 }
 0xb36   : > { %v2191_v54 = vpop.xlane.xlu0 %2190  ;;  %v2199_v25 = vmul.f32 %v2196_v62, %v2196_v62 }
 0xb37   : > { %v2194_v56 = vmul.f32 0.03125, %v2191_v54 }
 0xb38   : > { %v2204_v38 = vsel %vm646_vm1, %v2199_v25, 0.0 }
 0xb39   : > { %v2197_v39 = vsub.f32 %v5705_v43, %v2194_v56  ;;  %2205 = vadd.xlane.f32.xlu0 %v2204_v38 }
 0xb3b   : > { %v2200_v57 = vmul.f32 %v2197_v39, %v2197_v39 }
 0xb3d   : > { %v2207_v58 = vsel %vm646_vm1, %v2200_v57, 0.0 }
 0xb3e   : > { %2208 = vadd.xlane.f32.xlu1 %v2207_v58 }
 0xbbf   : > { %v2203_v2 = vpop.xlane.xlu1 %2202 }
 0xbc0   : > { %v2210_v7 = vmul.f32 0.03125, %v2203_v2 }
 0xbc2   : > { %v2213_v8 = vadd.f32 1e-06, %v2210_v7 }
 0xbc4   : > { %4865 = vrsqrt.f32 %v2213_v8 }
 0xbc6   : > { %v2206_v9 = vpop.xlane.xlu0 %2205 }
 0xbc7   : > { %v2211_v12 = vmul.f32 0.03125, %v2206_v9 }
 0xbc9   : > { %v2214_v5 = vadd.f32 1e-06, %v2211_v12 }
 0xbcb   : > { %4867 = vrsqrt.f32 %v2214_v5  ;;  %v2209_v14 = vpop.xlane.xlu1 %2208 }
 0xbcc   : > { %v2212_v18 = vmul.f32 0.03125, %v2209_v14 }
 0xbce   : > { %v4866_v19 = vpop.eup %4865  ;;  %v2215_v21 = vadd.f32 1e-06, %v2212_v18 }
 0xbcf   : > { %v2219_v26 = vmul.f32 %v4866_v19, %v2195_v55 }
 0xbd0   : > { %4869 = vrsqrt.f32 %v2215_v21 }
 0xbd1   : > { %v2228_v10 = vmul.f32 %v3921_v20, %v2219_v26 }
 0xbd3   : > { %v2237_v51 = vadd.f32 %v3922_v63, %v2228_v10 }
 0xbd5   : > { %v4868_v28 = vpop.eup %4867  ;;  %4359 = vmatmul.mubr.msk.f32.vlgmr.msra.gmra.mrb[36].mxu1 %vm646_vm1, %v2237_v51 }
 0xbd6   : > { %4361 = vmatprep.mubr.msk.f32.mxu1 %vm5005_vm2, %v5006_v50  ;;  %v2220_v16 = vmul.f32 %v4868_v28, %v2196_v62 }
 0xbd8   : > { %v2229_v6 = vmul.f32 %v3921_v20, %v2220_v16 }
 0xbda   : > { %v4870_v17 = vpop.eup %4869  ;;  %v2238_v33 = vadd.f32 %v3922_v63, %v2229_v6 }
 0xbdb   : > { %v2221_v29 = vmul.f32 %v4870_v17, %v2197_v39 }
 0xbdc   : > { %4362 = vmatmul.mubr.msk.f32.gmra.mrb[38].mxu1 %vm646_vm1, %v2238_v33 }
 0xbdd   : > { %4364 = vmatprep.mubr.msk.f32.mxu1 %vm5005_vm2, %v5006_v50  ;;  %v2230_v30 = vmul.f32 %v3921_v20, %v2221_v29 }
 0xbdf   : > { %v2239_v60 = vadd.f32 %v3922_v63, %v2230_v30 }
 0xbe1   : > { %4365 = vmatmul.mubr.msk.f32.gmra.mrb[40].mxu1 %vm646_vm1, %v2239_v60 }
 0xbe2   : > { %4388 = vmatprep.mubr.msk.f32.mxu1 %vm5005_vm2, %v5006_v50 }
 0xca8   : > { %v2320_v4 = vpop.f32.mrb[36].mxu1 }
 0xca9   : > { %v4360_v15 = vpop.f32.mrb[37].mxu1  ;;  %2337 = vrot.lane.b32.xlu0 %v2320_v4, %s5007_s24 }
 0xcaf   : > { %v2325_v23 = vpop.f32.mrb[38].mxu1 }
 0xcb0   : > { %2345 = vrot.lane.b32.xlu0 %v2325_v23, %s5008_s20  ;;  %2339 = vrot.lane.b32.xlu1 %v2325_v23, %s5007_s24  ;;  %v4363_v31 = vpop.f32.mrb[39].mxu1  ;;  %v5747_v13 = vpack.i.bf16 %v2325_v23, %v2320_v4 }
 0xcb4   : > { %2351 = vrot.lane.b32.xlu0 %v2325_v23, %s6255_s30  ;;  %2343 = vrot.lane.b32.xlu1 %v2320_v4, %s5008_s20  ;;  %v5751_v34 = vpop.f32.mrb[40].mxu1 }
 0xcb5   : > { %v4366_v36 = vpop.f32.mrb[41].mxu1 }
 0xcb8   : > { %2353 = vrot.lane.b32.xlu0 %v5751_v34, %s6255_s30  ;;  %2341 = vrot.lane.b32.xlu1 %v5751_v34, %s5007_s24  ;;  %s6257_s24 = smov 64  }
 0xcbc   : > { %2349 = vrot.lane.b32.xlu1 %v2320_v4, %s6255_s30 }
 0xcc0   : > { %2347 = vrot.lane.b32.xlu1 %v5751_v34, %s5008_s20  ;;  %s6258_s20 = smov 8  }
 0xcc4   : > { %4754 = vrot.lane.b32.xlu1 %v5747_v13, %s6256_s18 }
 0xcc8   : > { %2359 = vrot.lane.b32.xlu1 %v5751_v34, %s6256_s18 }
 0xd1b   : > { %v2338_v37 = vpop.permute.xlu0 %2337 }
 0xd22   : > { %v2340_v40 = vpop.permute.xlu1 %2339  ;;  %v2346_v42 = vpop.permute.xlu0 %2345 }
 0xd23   : > { %v5764_v41 = vpack.i.bf16 %v2340_v40, %v2338_v37 }
 0xd25   : > { %4759 = vrot.lane.b32.xlu0 %v5764_v41, %s6256_s18 }
 0xd26   : > { %v2344_v11 = vpop.permute.xlu1 %2343  ;;  %v5776_v46 = vpop.permute.xlu0 %2351 }
 0xd27   : > { %v5768_v44 = vpack.i.bf16 %v2346_v42, %v2344_v11 }
 0xd29   : > { %4764 = vrot.lane.b32.xlu1 %v5768_v44, %s6256_s18 }
 0xd2a   : > { %v5772_v45 = vpop.permute.xlu1 %2341  ;;  %v5787_v53 = vpop.permute.xlu0 %2353 }
 0xd2b   : > { %2457 = vrot.lane.b32.xlu0 %v5772_v45, %s6256_s18 }
 0xd2e   : > { %v2350_v55 = vpop.permute.xlu1 %2349 }
 0xd2f   : > { %v5779_v48 = vpack.i.bf16 %v5776_v46, %v2350_v55 }
 0xd31   : > { %4769 = vrot.lane.b32.xlu0 %v5779_v48, %s6256_s18 }
 0xd32   : > { %v5783_v52 = vpop.permute.xlu1 %2347 }
 0xd33   : > { %2555 = vrot.lane.b32.xlu1 %v5783_v52, %s6256_s18 }
 0xd35   : > { %2653 = vrot.lane.b32.xlu0 %v5787_v53, %s6256_s18  ;;  %s4944_s18 = sshll.u32 %s5016_s28, 4  ;;  %s4945_s18 = int_to_ptr.vmem [resolvable:$false] %s4944_s18 }
 0xd36   : > { %v4755_v22 = vpop.permute.xlu1 %4754 }
 0xd37   : > { %v4757_v62 = vunpack.i.h.bf16 %v4755_v22  ;;  %v4756_v54 = vunpack.i.l.bf16 %v4755_v22 }
 0xd39   : > { %v4611_v25 = vpack.c.bf16 %v4757_v62, %v4756_v54 }
 0xd3a   : > { %v2360_v56 = vpop.permute.xlu1 %2359 }
 0xd3b   : > { %4613 = vmatpush3.bf16.xpose.msk.msra.mxu0 %vm5300_vm4, %v4611_v25 }
 0xd3c   : > { %4371 = vmatprep.subr.mxu0 %v5006_v50 }
 0xd43   : > { %4372 = vmatpush3.xpose.msk.msra.mxu0 %vm843_vm3, %v2360_v56 }
 0xd44   : > { %4618 = vmatprep.subr.bf16.mxu0 %v5004_v47 }
 0xd46   : > { %4374 = vmatmul.mubr.msk.f32.vlgmr.msra.gmra.mrb[32].mxu0 %vm843_vm3, %v2320_v4 }
 0xd47   : > { %4376 = vmatprep.mubr.msk.f32.mxu0 %vm5005_vm2, %v5006_v50 }
 0xd4a   : > { %4377 = vmatmul.mubr.msk.f32.gmra.mrb[34].mxu0 %vm843_vm3, %v2325_v23 }
 0xd4b   : > { %4379 = vmatprep.mubr.msk.f32.mxu0 %vm5005_vm2, %v5006_v50 }
 0xd4e   : > { %4380 = vmatmul.mubr.msk.f32.gmra.mrb[36].mxu0 %vm843_vm3, %v5751_v34 }
 0xd4f   : > { %4403 = vmatprep.mubr.msk.f32.mxu0 %vm5005_vm2, %v5006_v50 }
 0xd97   : > { %v4760_v38 = vpop.permute.xlu0 %4759 }
 0xd98   : > { %v4762_v39 = vunpack.i.h.bf16 %v4760_v38  ;;  %v4761_v57 = vunpack.i.l.bf16 %v4760_v38 }
 0xd9a   : > { %v4615_v58 = vpack.c.bf16 %v4762_v39, %v4761_v57 }
 0xd9b   : > { %v4765_v59 = vpop.permute.xlu1 %4764 }
 0xd9c   : > { %v4767_v49 = vunpack.i.h.bf16 %v4765_v59  ;;  %v4766_v27 = vunpack.i.l.bf16 %v4765_v59  ;;  %4617 = vmatpush3.bf16.xpose.msk.msra.mxu1 %vm5300_vm4, %v4615_v58 }
 0xd9d   : > { %4386 = vmatprep.subr.mxu1 %v5006_v50  ;;  %v2458_v0 = vpop.permute.xlu0 %2457 }
 0xd9e   : > { %v4619_v61 = vpack.c.bf16 %v4767_v49, %v4766_v27 }
 0xda0   : > { %4621 = vmatpush3.bf16.xpose.msk.msra.mxu0 %vm5300_vm4, %v4619_v61 }
 0xda1   : > { %4401 = vmatprep.subr.mxu0 %v5006_v50 }
 0xda3   : > { %v4770_v1 = vpop.permute.xlu0 %4769 }
 0xda4   : > { %v4772_v2 = vunpack.i.h.bf16 %v4770_v1  ;;  %v4771_v7 = vunpack.i.l.bf16 %v4770_v1  ;;  %4387 = vmatpush3.xpose.msk.msra.mxu1 %vm843_vm3, %v2458_v0 }
 0xda5   : > { %4622 = vmatprep.subr.bf16.mxu1 %v5004_v47  ;;  %v2556_v9 = vpop.permute.xlu1 %2555 }
 0xda6   : > { %v4623_v8 = vpack.c.bf16 %v4772_v2, %v4771_v7 }
 0xda7   : > { %4389 = vmatmul.mubr.msk.f32.vlgmr.msra.gmra.mrb[42].mxu1 %vm843_vm3, %v2338_v37  ;;  %v2654_v12 = vpop.permute.xlu0 %2653 }
 0xda8   : > { %4402 = vmatpush3.xpose.msk.msra.mxu0 %vm843_vm3, %v2556_v9  ;;  %4625 = vmatpush3.bf16.xpose.msk.msra.mxu1 %vm5300_vm4, %v4623_v8 }
 0xda9   : > { %4391 = vmatprep.mubr.msk.f32.mxu1 %vm5005_vm2, %v5006_v50  ;;  %4416 = vmatprep.subr.mxu1 %v5006_v50 }
 0xdaa   : > { %4626 = vmatprep.subr.bf16.mxu0 %v5004_v47 }
 0xdab   : > { %4392 = vmatmul.mubr.msk.f32.gmra.mrb[44].mxu1 %vm843_vm3, %v2340_v40  ;;  %4404 = vmatmul.mubr.msk.f32.vlgmr.msra.gmra.mrb[38].mxu0 %vm843_vm3, %v2344_v11 }
 0xdac   : > { %4394 = vmatprep.mubr.msk.f32.mxu1 %vm5005_vm2, %v5006_v50  ;;  %4406 = vmatprep.mubr.msk.f32.mxu0 %vm5005_vm2, %v5006_v50 }
 0xdaf   : > { %4395 = vmatmul.mubr.msk.f32.gmra.mrb[46].mxu1 %vm843_vm3, %v5772_v45  ;;  %4407 = vmatmul.mubr.msk.f32.gmra.mrb[40].mxu0 %vm843_vm3, %v2346_v42 }
 0xdb0   : > { %4417 = vmatpush3.xpose.msk.msra.mxu1 %vm843_vm3, %v2654_v12  ;;  %4409 = vmatprep.mubr.msk.f32.mxu0 %vm5005_vm2, %v5006_v50 }
 0xdb1   : > { %4418 = vmatprep.mubr.msk.f32.mxu1 %vm5005_vm2, %v5006_v50  ;;  %4629 = vmatprep.subr.bf16.mxu1 %v5004_v47 }
 0xdb3   : > { %4410 = vmatmul.mubr.msk.f32.gmra.mrb[42].mxu0 %vm843_vm3, %v5783_v52  ;;  %4419 = vmatmul.mubr.msk.f32.vlgmr.msra.gmra.mrb[48].mxu1 %vm843_vm3, %v2350_v55 }
 0xdb4   : > { %4421 = vmatprep.mubr.msk.f32.mxu1 %vm5005_vm2, %v5006_v50  ;;  %4433 = vmatprep.mubr.msk.f32.mxu0 %vm5005_vm2, %v5006_v50 }
 0xdb7   : > { %4422 = vmatmul.mubr.msk.f32.gmra.mrb[50].mxu1 %vm843_vm3, %v5776_v46 }
 0xdb8   : > { %4424 = vmatprep.mubr.msk.f32.mxu1 %vm5005_vm2, %v5006_v50 }
 0xdbb   : > { %4425 = vmatmul.mubr.msk.f32.gmra.mrb[52].mxu1 %vm843_vm3, %v5787_v53 }
 0xdbc   : > { %4448 = vmatprep.mubr.msk.f32.mxu1 %vm5005_vm2, %v5006_v50 }
 0xe19   : > { %v2439_v35 = vpop.f32.mrb[32].mxu0 }
 0xe1a   : > { %v2747_v5 = vmul.f32 0.35355338, %v2439_v35  ;;  %v4375_v14 = vpop.f32.mrb[33].mxu0 }
 0xe1c   : > { %v2759_v18 = vadd.f32 %v2747_v5, %v5372_v3 }
 0xe1d   : > { %v2444_v19 = vpop.f32.mrb[34].mxu0 }
 0xe1e   : > { %v2748_v20 = vmul.f32 0.35355338, %v2444_v19  ;;  %v4378_v21 = vpop.f32.mrb[35].mxu0  ;;  %v2771_v26 = vsel %vm1254_vm6, %v2759_v18, -inf }
 0xe1f   : > { %2772 = vmax.xlane.f32.xlu1 %v2771_v26 }
 0xe20   : > { %v2760_v63 = vadd.f32 %v2748_v20, %v5372_v3 }
 0xe21   : > { %v2449_v10 = vpop.f32.mrb[36].mxu0 }
 0xe22   : > { %v2749_v51 = vmul.f32 0.35355338, %v2449_v10  ;;  %v4381_v28 = vpop.f32.mrb[37].mxu0  ;;  %v2774_v16 = vsel %vm1254_vm6, %v2760_v63, -inf }
 0xe23   : > { %2775 = vmax.xlane.f32.xlu0 %v2774_v16 }
 0xe24   : > { %v2761_v6 = vadd.f32 %v2749_v51, %v5372_v3 }
 0xe26   : > { %v2777_v17 = vsel %vm1254_vm6, %v2761_v6, -inf }
 0xe27   : > { %2778 = vmax.xlane.f32.xlu1 %v2777_v17 }
 0xe7a   : > { %v2537_v33 = vpop.f32.mrb[42].mxu1 }
 0xe7b   : > { %v2750_v29 = vmul.f32 0.35355338, %v2537_v33  ;;  %v4390_v30 = vpop.f32.mrb[43].mxu1 }
 0xe7d   : > { %v5859_v60 = vadd.f32 %v2750_v29, %v5372_v3 }
 0xe7e   : > { %v2542_v4 = vpop.f32.mrb[44].mxu1  ;;  %v2635_v15 = vpop.f32.mrb[38].mxu0 }
 0xe7f   : > { %v2751_v23 = vmul.f32 0.35355338, %v2542_v4  ;;  %v2753_v31 = vmul.f32 0.35355338, %v2635_v15  ;;  %v4393_v36 = vpop.f32.mrb[45].mxu1  ;;  %v4405_v37 = vpop.f32.mrb[39].mxu0 }
 0xe80   : > { %v2780_v40 = vsel %vm1254_vm6, %v5859_v60, -inf }
 0xe81   : > { %v5864_v42 = vadd.f32 %v2753_v31, %v5372_v3  ;;  %2781 = vmax.xlane.f32.xlu0 %v2780_v40  ;;  %v2763_v11 = vadd.f32 %v2751_v23, %v5372_v3 }
 0xe82   : > { %v2547_v46 = vpop.f32.mrb[46].mxu1  ;;  %v5867_v55 = vpop.f32.mrb[40].mxu0 }
 0xe83   : > { %v2752_v22 = vmul.f32 0.35355338, %v2547_v46  ;;  %v4396_v62 = vpop.f32.mrb[47].mxu1  ;;  %v4408_v54 = vpop.f32.mrb[41].mxu0  ;;  %v2783_v25 = vsel %vm1254_vm6, %v2763_v11, -inf  ;;  %v2789_v56 = vsel %vm1254_vm6, %v5864_v42, -inf }
 0xe84   : > { %2790 = vmax.xlane.f32.xlu1 %v2789_v56 }
 0xe85   : > { %v2764_v38 = vadd.f32 %v2752_v22, %v5372_v3  ;;  %2784 = vmax.xlane.f32.xlu0 %v2783_v25 }
 0xe86   : > { %v5873_v39 = vpop.f32.mrb[42].mxu0  ;;  %v2733_v57 = vpop.f32.mrb[48].mxu1 }
 0xe87   : > { %v2756_v58 = vmul.f32 0.35355338, %v2733_v57  ;;  %v4411_v59 = vpop.f32.mrb[43].mxu0  ;;  %v4420_v49 = vpop.f32.mrb[49].mxu1  ;;  %v2786_v27 = vsel %vm1254_vm6, %v2764_v38, -inf }
 0xe89   : > { %v2768_v61 = vadd.f32 %v2756_v58, %v5372_v3  ;;  %2787 = vmax.xlane.f32.xlu0 %v2786_v27 }
 0xe8a   : > { %v5877_v0 = vpop.f32.mrb[50].mxu1 }
 0xe8b   : > { %v4423_v1 = vpop.f32.mrb[51].mxu1  ;;  %v2798_v2 = vsel %vm1254_vm6, %v2768_v61, -inf }
 0xe8d   : > { %2799 = vmax.xlane.f32.xlu0 %v2798_v2 }
 0xe8e   : > { %v5880_v7 = vpop.f32.mrb[52].mxu1 }
 0xe8f   : > { %v4426_v8 = vpop.f32.mrb[53].mxu1 }
 0xe95   : > { %4774 = vrot.lane.b32.xlu1 %v5747_v13, %s6257_s24 }
 0xe99   : > { %2907 = vrot.lane.b32.xlu1 %v5751_v34, %s6257_s24 }
 0xe9d   : > { %3005 = vrot.lane.b32.xlu1 %v5772_v45, %s6257_s24 }
 0xea1   : > { %4784 = vrot.lane.b32.xlu1 %v5768_v44, %s6257_s24 }
 0xea3   : > { %4779 = vrot.lane.b32.xlu0 %v5764_v41, %s6257_s24 }
 0xea7   : > { %4789 = vrot.lane.b32.xlu0 %v5779_v48, %s6257_s24 }
 0xeac   : > { %v2773_v9 = vpop.xlane.xlu1 %2772 }
 0xead   : > { %v2807_v12 = vsub.f32 %v2759_v18, %v2773_v9  ;;  %v2754_v9 = vmul.f32 0.35355338, %v5867_v55 }
 0xeaf   : > { %v2819_v5 = vmul.f32 1.442695, %v2807_v12 }
 0xeb0   : > { %v2776_v35 = vpop.xlane.xlu0 %2775 }
 0xeb1   : > { %v2808_v13 = vsub.f32 %v2760_v63, %v2776_v35  ;;  %4871 = vpow2.f32 %v2819_v5  ;;  %v5938_v35 = vadd.f32 %v2754_v9, %v5372_v3  ;;  %v2758_v9 = vmul.f32 0.35355338, %v5880_v7 }
 0xeb3   : > { %v2821_v34 = vmul.f32 1.442695, %v2808_v13 }
 0xeb4   : > { %v2779_v14 = vpop.xlane.xlu1 %2778 }
 0xeb5   : > { %v2809_v19 = vsub.f32 %v2761_v6, %v2779_v14  ;;  %4873 = vpow2.f32 %v2821_v34 }
 0xeb7   : > { %v2823_v45 = vmul.f32 1.442695, %v2809_v19 }
 0xeb9   : > { %4875 = vpow2.f32 %v2823_v45 }
 0xebb   : > { %v5894_v20 = vpop.eup %4871 }
 0xebc   : > { %v2843_v41 = vsel %vm1254_vm6, %v5894_v20, 0.0 }
 0xebf   : > { %v5898_v44 = vpop.eup %4873 }
 0xec0   : > { %v2846_v48 = vsel %vm1254_vm6, %v5898_v44, 0.0 }
 0xec3   : > { %v5902_v18 = vpop.eup %4875 }
 0xec4   : > { %v2849_v21 = vsel %vm1254_vm6, %v5902_v18, 0.0 }
 0xec5   : > { %2844 = vadd.xlane.f32.xlu1 %v2843_v41 }
 0xec9   : > { %2847 = vadd.xlane.f32.xlu1 %v2846_v48 }
 0xecd   : > { %2850 = vadd.xlane.f32.xlu1 %v2849_v21 }
 0xf0e   : > { %v2782_v26 = vpop.xlane.xlu0 %2781 }
 0xf0f   : > { %v2810_v63 = vsub.f32 %v5859_v60, %v2782_v26 }
 0xf11   : > { %v2825_v10 = vmul.f32 1.442695, %v2810_v63  ;;  %v2791_v28 = vpop.xlane.xlu1 %2790 }
 0xf12   : > { %v2785_v51 = vpop.xlane.xlu0 %2784  ;;  %v2813_v6 = vsub.f32 %v5864_v42, %v2791_v28 }
 0xf13   : > { %4877 = vpow2.f32 %v2825_v10  ;;  %v2811_v16 = vsub.f32 %v2763_v11, %v2785_v51 }
 0xf14   : > { %v2831_v33 = vmul.f32 1.442695, %v2813_v6 }
 0xf15   : > { %v2827_v17 = vmul.f32 1.442695, %v2811_v16  ;;  %v4775_v30 = vpop.permute.xlu1 %4774 }
 0xf16   : > { %v2788_v29 = vpop.xlane.xlu0 %2787  ;;  %v4777_v15 = vunpack.i.h.bf16 %v4775_v30  ;;  %v4776_v23 = vunpack.i.l.bf16 %v4775_v30 }
 0xf17   : > { %4879 = vpow2.f32 %v2827_v17  ;;  %v2812_v4 = vsub.f32 %v2764_v38, %v2788_v29 }
 0xf18   : > { %4881 = vpow2.f32 %v2831_v33  ;;  %v4627_v36 = vpack.c.bf16 %v4777_v15, %v4776_v23 }
 0xf19   : > { %v2829_v31 = vmul.f32 1.442695, %v2812_v4  ;;  %v2908_v11 = vpop.permute.xlu1 %2907 }
 0xf1a   : > { %v2800_v37 = vpop.xlane.xlu0 %2799  ;;  %4628 = vmatpush3.bf16.msra.mxu0 %v4627_v36 }
 0xf1b   : > { %4883 = vpow2.f32 %v2829_v31  ;;  %v2816_v60 = vsub.f32 %v2768_v61, %v2800_v37  ;;  %4431 = vmatprep.subr.mxu0 %v5006_v50 }
 0xf1d   : > { %v5909_v40 = vpop.eup %4877  ;;  %v2837_v42 = vmul.f32 1.442695, %v2816_v60  ;;  %v3006_v49 = vpop.permute.xlu1 %3005 }
 0xf1e   : > { %v4780_v46 = vpop.permute.xlu0 %4779  ;;  %v2852_v22 = vsel %vm1254_vm6, %v5909_v40, 0.0  ;;  %4432 = vmatpush3.msra.mxu0 %v2908_v11 }
 0xf1f   : > { %4885 = vpow2.f32 %v2837_v42  ;;  %v4782_v62 = vunpack.i.h.bf16 %v4780_v46  ;;  %v4781_v54 = vunpack.i.l.bf16 %v4780_v46  ;;  %2853 = vadd.xlane.f32.xlu0 %v2852_v22  ;;  %4632 = vmatprep.subr.bf16.mxu0 %v5004_v47 }
 0xf21   : > { %v5914_v25 = vpop.eup %4879  ;;  %v4630_v56 = vpack.c.bf16 %v4782_v62, %v4781_v54  ;;  %v4785_v2 = vpop.permute.xlu1 %4784 }
 0xf22   : > { %v5916_v38 = vpop.eup %4881  ;;  %v2855_v57 = vsel %vm1254_vm6, %v5914_v25, 0.0  ;;  %v4787_v13 = vunpack.i.h.bf16 %v4785_v2  ;;  %v4786_v14 = vunpack.i.l.bf16 %v4785_v2  ;;  %v4790_v48 = vpop.permute.xlu0 %4789 }
 0xf23   : > { %2856 = vadd.xlane.f32.xlu0 %v2855_v57  ;;  %4631 = vmatpush3.bf16.msra.mxu1 %v4630_v56  ;;  %v2861_v58 = vsel %vm1254_vm6, %v5916_v38, 0.0  ;;  %v4792_v10 = vunpack.i.h.bf16 %v4790_v48  ;;  %v4791_v51 = vunpack.i.l.bf16 %v4790_v48 }
 0xf24   : > { %4446 = vmatprep.subr.mxu1 %v5006_v50  ;;  %2862 = vadd.xlane.f32.xlu1 %v2861_v58  ;;  %v4633_v19 = vpack.c.bf16 %v4787_v13, %v4786_v14  ;;  %v2757_v14 = vmul.f32 0.35355338, %v5877_v0 }
 0xf25   : > { %v5923_v59 = vpop.eup %4883  ;;  %v4636_v17 = vpack.c.bf16 %v4792_v10, %v4791_v51 }
 0xf26   : > { %v2858_v27 = vsel %vm1254_vm6, %v5923_v59, 0.0 }
 0xf27   : > { %2859 = vadd.xlane.f32.xlu0 %v2858_v27  ;;  %4447 = vmatpush3.msra.mxu1 %v3006_v49 }
 0xf28   : > { %4635 = vmatprep.subr.bf16.mxu1 %v5004_v47 }
 0xf29   : > { %v5928_v61 = vpop.eup %4885 }
 0xf2a   : > { %v2870_v1 = vsel %vm1254_vm6, %v5928_v61, 0.0 }
 0xf2b   : > { %2871 = vadd.xlane.f32.xlu0 %v2870_v1  ;;  %v2755_v1 = vmul.f32 0.35355338, %v5873_v39  ;;  %v2769_v39 = vadd.f32 %v2757_v14, %v5372_v3 }
 0xf35   : > { %3103 = vrot.lane.b32.xlu1 %v5783_v52, %s6257_s24 }
 0xf41   : > { %3201 = vrot.lane.b32.xlu0 %v5787_v53, %s6257_s24  ;;  %v2792_v53 = vsel %vm1254_vm6, %v5938_v35, -inf  ;;  %s4946_s24 = scalar_lea.vmem %s4945_s18, 32 }
 0xf52   : > { %v2845_v8 = vpop.xlane.xlu1 %2844 }
 0xf53   : > { %4887 = vrcp.f32 %v2845_v8  ;;  %v2767_v8 = vadd.f32 %v2755_v1, %v5372_v3 }
 0xf55   : > { %v2795_v13 = vsel %vm1254_vm6, %v2767_v8, -inf }
 0xf56   : > { %v2848_v12 = vpop.xlane.xlu1 %2847 }
 0xf57   : > { %4889 = vrcp.f32 %v2848_v12 }
 0xf5a   : > { %v2851_v5 = vpop.xlane.xlu1 %2850 }
 0xf5b   : > { %4891 = vrcp.f32 %v2851_v5  ;;  %v2770_v5 = vadd.f32 %v2758_v9, %v5372_v3 }
 0xf5d   : > { %v4888_v34 = vpop.eup %4887 }
 0xf5e   : > { %v2891_v52 = vmul.f32 %v4888_v34, %v5894_v20  ;;  %v2804_v34 = vsel %vm1254_vm6, %v2770_v5, -inf }
 0xf60   : > { %2793 = vmax.xlane.f32.xlu0 %v2792_v53  ;;  %4434 = vmatmul.mubr.msk.f32.vlgmr.msra.gmra.mrb[44].mxu0 %vm1254_vm6, %v2891_v52 }
 0xf61   : > { %v4890_v55 = vpop.eup %4889  ;;  %4634 = vmatpush3.bf16.msra.mxu0 %v4633_v19  ;;  %4436 = vmatprep.mubr.msk.f32.mxu0 %vm5005_vm2, %v5006_v50 }
 0xf62   : > { %v2892_v45 = vmul.f32 %v4890_v55, %v5898_v44  ;;  %4461 = vmatprep.subr.mxu0 %v5006_v50 }
 0xf64   : > { %4437 = vmatmul.mubr.msk.f32.gmra.mrb[46].mxu0 %vm1254_vm6, %v2892_v45 }
 0xf65   : > { %v4892_v41 = vpop.eup %4891  ;;  %4439 = vmatprep.mubr.msk.f32.mxu0 %vm5005_vm2, %v5006_v50 }
 0xf66   : > { %v2893_v20 = vmul.f32 %v4892_v41, %v5902_v18 }
 0xf68   : > { %4440 = vmatmul.mubr.msk.f32.gmra.mrb[48].mxu0 %vm1254_vm6, %v2893_v20 }
 0xf69   : > { %4463 = vmatprep.mubr.msk.f32.mxu0 %vm5005_vm2, %v5006_v50 }
 0xfac   : > { %v2854_v21 = vpop.xlane.xlu0 %2853 }
 0xfad   : > { %4893 = vrcp.f32 %v2854_v21 }
 0xfb0   : > { %v2857_v26 = vpop.xlane.xlu0 %2856 }
 0xfb1   : > { %4895 = vrcp.f32 %v2857_v26  ;;  %v2863_v44 = vpop.xlane.xlu1 %2862 }
 0xfb2   : > { %4897 = vrcp.f32 %v2863_v44 }
 0xfb4   : > { %v2860_v63 = vpop.xlane.xlu0 %2859 }
 0xfb5   : > { %4899 = vrcp.f32 %v2860_v63  ;;  %v3104_v28 = vpop.permute.xlu1 %3103 }
 0xfb6   : > { %4462 = vmatpush3.msra.mxu0 %v3104_v28 }
 0xfb7   : > { %v4894_v16 = vpop.eup %4893  ;;  %4638 = vmatprep.subr.bf16.mxu0 %v5004_v47 }
 0xfb8   : > { %v2894_v18 = vmul.f32 %v4894_v16, %v5909_v40  ;;  %v2872_v6 = vpop.xlane.xlu0 %2871 }
 0xfb9   : > { %4901 = vrcp.f32 %v2872_v6 }
 0xfba   : > { %4449 = vmatmul.mubr.msk.f32.vlgmr.msra.gmra.mrb[54].mxu1 %vm1254_vm6, %v2894_v18 }
 0xfbb   : > { %v4896_v33 = vpop.eup %4895  ;;  %4637 = vmatpush3.bf16.msra.mxu1 %v4636_v17  ;;  %4451 = vmatprep.mubr.msk.f32.mxu1 %vm5005_vm2, %v5006_v50 }
 0xfbc   : > { %v3202_v29 = vpop.permute.xlu0 %3201  ;;  %4476 = vmatprep.subr.mxu1 %v5006_v50  ;;  %v2895_v30 = vmul.f32 %v4896_v33, %v5914_v25  ;;  %v4898_v4 = vpop.eup %4897 }
 0xfbd   : > { %v2897_v15 = vmul.f32 %v4898_v4, %v5916_v38 }
 0xfbe   : > { %4452 = vmatmul.mubr.msk.f32.gmra.mrb[56].mxu1 %vm1254_vm6, %v2895_v30 }
 0xfbf   : > { %v4900_v23 = vpop.eup %4899  ;;  %4477 = vmatpush3.msra.mxu1 %v3202_v29  ;;  %4454 = vmatprep.mubr.msk.f32.mxu1 %vm5005_vm2, %v5006_v50 }
 0xfc0   : > { %4464 = vmatmul.mubr.msk.f32.vlgmr.msra.gmra.mrb[50].mxu0 %vm1254_vm6, %v2897_v15  ;;  %v2896_v31 = vmul.f32 %v4900_v23, %v5923_v59  ;;  %4644 = vmatprep.subr.bf16.mxu1 %v5004_v47 }
 0xfc1   : > { %4466 = vmatprep.mubr.msk.f32.mxu0 %vm5005_vm2, %v5006_v50 }
 0xfc2   : > { %4455 = vmatmul.mubr.msk.f32.gmra.mrb[58].mxu1 %vm1254_vm6, %v2896_v31 }
 0xfc3   : > { %v4902_v36 = vpop.eup %4901  ;;  %4478 = vmatprep.mubr.msk.f32.mxu1 %vm5005_vm2, %v5006_v50 }
 0xfc4   : > { %v2900_v37 = vmul.f32 %v4902_v36, %v5928_v61 }
 0xfc6   : > { %4479 = vmatmul.mubr.msk.f32.vlgmr.msra.gmra.mrb[60].mxu1 %vm1254_vm6, %v2900_v37 }
 0xfc7   : > { %4481 = vmatprep.mubr.msk.f32.mxu1 %vm5005_vm2, %v5006_v50 }
 0xfed   : > { %v2794_v61 = vpop.xlane.xlu0 %2793 }
 0xfee   : > { %v2814_v2 = vsub.f32 %v5938_v35, %v2794_v61  ;;  %v2801_v35 = vsel %vm1254_vm6, %v2769_v39, -inf }
 0xff0   : > { %v2833_v12 = vmul.f32 1.442695, %v2814_v2 }
 0xff2   : > { %4903 = vpow2.f32 %v2833_v12 }
 0xffc   : > { %v4904_v52 = vpop.eup %4903 }
 0xffd   : > { %v2864_v7 = vsel %vm1254_vm6, %v4904_v52, 0.0 }
0x1033   : > { %v2987_v60 = vpop.f32.mrb[44].mxu0 }
0x1034   : > { %v4435_v40 = vpop.f32.mrb[45].mxu0 }
0x1035   : > { %v3970_v40 = vld [vmem:[%s6213_s9 + $0x20] sm:$0xff] }
0x1037   : > { %v5978_v42 = vpop.f32.mrb[46].mxu0 }
0x1038   : > { %v4438_v11 = vpop.f32.mrb[47].mxu0 }
0x1039   : > { %v3971_v11 = vld [vmem:[%s6213_s9 + $0x28] sm:$0xff] }
0x103b   : > { %v5980_v46 = vpop.f32.mrb[48].mxu0 }
0x103c   : > { %v4441_v22 = vpop.f32.mrb[49].mxu0 }
0x103d   : > { %v4639_v22 = vpack.c.bf16 %v3971_v11, %v3970_v40 }
0x103f   : > { %4640 = vmatpush3.bf16.msra.mxu0 %v4639_v22 }
0x1040   : > { %4641 = vmatprep.subr.bf16.mxu0 %v5004_v47 }
0x108d   : > { %v3085_v62 = vpop.f32.mrb[54].mxu1 }
0x108e   : > { %3298 = vrot.lane.b32.xlu1 %v3085_v62, %s6258_s20  ;;  %v4450_v54 = vpop.f32.mrb[55].mxu1  ;;  %v3972_v62 = vld [vmem:[%s6213_s9 + $0x30] sm:$0xff] }
0x108f   : > { %v3973_v54 = vld [vmem:[%s6213_s9 + $0x38] sm:$0xff] }
0x1091   : > { %v5983_v25 = vpop.f32.mrb[56].mxu1 }
0x1092   : > { %v4453_v56 = vpop.f32.mrb[57].mxu1 }
0x1093   : > { %v3183_v38 = vpop.f32.mrb[50].mxu0 }
0x1094   : > { %3310 = vrot.lane.b32.xlu0 %v3183_v38, %s6259_s26  ;;  %v4465_v57 = vpop.f32.mrb[51].mxu0 }
0x1095   : > { %v5986_v58 = vpop.f32.mrb[58].mxu1 }
0x1096   : > { %v4456_v59 = vpop.f32.mrb[59].mxu1 }
0x1099   : > { %v3281_v49 = vpop.f32.mrb[60].mxu1 }
0x109a   : > { %3322 = vrot.lane.b32.xlu1 %v3281_v49, %s6260_s0  ;;  %v4480_v27 = vpop.f32.mrb[61].mxu1 }
0x10b3   : > { %2796 = vmax.xlane.f32.xlu0 %v2795_v13 }
0x10b7   : > { %2805 = vmax.xlane.f32.xlu0 %v2804_v34  ;;  %v6045_v34 = vld [vmem:[%s6211_s7 + $0x1] ss:$0 sm:$0xff] }
0x10be   : > { %2802 = vmax.xlane.f32.xlu1 %v2801_v35  ;;  %v6050_v35 = vld [vmem:[%s6212_s8 + $0x1] ss:$0 sm:$0xff] }
0x10c2   : > { %2865 = vadd.xlane.f32.xlu1 %v2864_v7 }
0x1100   : > { %v3299_v53 = vpop.permute.xlu1 %3298 }
0x1101   : > { %v3331_v55 = vsel %vm843_vm3, %v2987_v60, %v3299_v53 }
0x1106   : > { %v3311_v19 = vpop.permute.xlu0 %3310 }
0x1107   : > { %v3334_v45 = vsel %vm1818_vm7, %v3331_v55, %v3311_v19  ;;  %v3979_v19 = vld [vmem:[%s6215_s11 + $0x40] sm:$0xff]  ;;  %v3980_v55 = vld [vmem:[%s6215_s11 + $0x48] sm:$0xff] }
0x110c   : > { %v3323_v41 = vpop.permute.xlu1 %3322 }
0x110d   : > { %v3337_v0 = vsel %vm1254_vm6, %v3334_v45, %v3323_v41  ;;  %v4645_v41 = vpack.c.bf16 %v3980_v55, %v3979_v19 }
0x110e   : > { %v6004_v20 = vadd.f32 %v3337_v0, %v5695_v32  ;;  %v3981_v0 = vld [vmem:[%s6215_s11 + $0x50] sm:$0xff] }
0x110f   : > { %4646 = vmatpush3.bf16.msra.mxu1 %v4645_v41 }
0x1110   : > { %v3347_v3 = vsel %vm646_vm1, %v6004_v20, 0.0  ;;  %4647 = vmatprep.subr.bf16.mxu1 %v5004_v47 }
0x1111   : > { %3348 = vadd.xlane.f32.xlu0 %v3347_v3  ;;  %v3982_v3 = vld [vmem:[%s6215_s11 + $0x58] sm:$0xff] }
0x1140   : > { %v2797_v48 = vpop.xlane.xlu0 %2796 }
0x1141   : > { %v2815_v21 = vsub.f32 %v2767_v8, %v2797_v48  ;;  %v4648_v48 = vpack.c.bf16 %v3982_v3, %v3981_v0 }
0x1143   : > { %v2835_v26 = vmul.f32 1.442695, %v2815_v21  ;;  %4649 = vmatpush3.bf16.msra.mxu1 %v4648_v48  ;;  %v3983_v21 = vld [vmem:[%s6215_s11 + $0x60] sm:$0xff] }
0x1144   : > { %v2806_v44 = vpop.xlane.xlu0 %2805  ;;  %4650 = vmatprep.subr.bf16.mxu1 %v5004_v47 }
0x1145   : > { %4905 = vpow2.f32 %v2835_v26  ;;  %v2818_v63 = vsub.f32 %v2770_v5, %v2806_v44  ;;  %v3984_v26 = vld [vmem:[%s6215_s11 + $0x68] sm:$0xff] }
0x1146   : > { %v4651_v44 = vpack.c.bf16 %v3984_v26, %v3983_v21 }
0x1147   : > { %v2841_v28 = vmul.f32 1.442695, %v2818_v63 }
0x1148   : > { %4652 = vmatpush3.bf16.msra.mxu1 %v4651_v44 }
0x1149   : > { %4653 = vmatprep.subr.bf16.mxu1 %v5004_v47 }
0x114b   : > { %v2803_v10 = vpop.xlane.xlu1 %2802 }
0x114c   : > { %v2817_v51 = vsub.f32 %v2769_v39, %v2803_v10 }
0x114e   : > { %v2839_v16 = vmul.f32 1.442695, %v2817_v51  ;;  %v3985_v51 = vld [vmem:[%s6215_s11 + $0x70] sm:$0xff] }
0x114f   : > { %v4906_v18 = vpop.eup %4905  ;;  %v2866_v6 = vpop.xlane.xlu1 %2865 }
0x1150   : > { %4907 = vpow2.f32 %v2839_v16  ;;  %v2867_v32 = vsel %vm1254_vm6, %v4906_v18, 0.0 }
0x1151   : > { %4909 = vrcp.f32 %v2866_v6  ;;  %2868 = vadd.xlane.f32.xlu1 %v2867_v32  ;;  %v6092_v32 = vld [vmem:[%s6214_s10 + $0x1] ss:$0 sm:$0xff] }
0x1152   : > { %4911 = vpow2.f32 %v2841_v28  ;;  %v3986_v28 = vld [vmem:[%s6215_s11 + $0x78] sm:$0xff] }
0x1153   : > { %v4654_v16 = vpack.c.bf16 %v3986_v28, %v3985_v51 }
0x1155   : > { %4655 = vmatpush3.bf16.msra.mxu1 %v4654_v16  ;;  %v3991_v16 = vld [vmem:[%s6216_s12 + $0x1] ss:$0 sm:$0xff] }
0x115a   : > { %v4908_v17 = vpop.eup %4907 }
0x115b   : > { %v4910_v33 = vpop.eup %4909  ;;  %v2873_v29 = vsel %vm1254_vm6, %v4908_v17, 0.0 }
0x115c   : > { %v4912_v30 = vpop.eup %4911  ;;  %2874 = vadd.xlane.f32.xlu0 %v2873_v29  ;;  %v2898_v4 = vmul.f32 %v4910_v33, %v4904_v52 }
0x115d   : > { %v2876_v15 = vsel %vm1254_vm6, %v4912_v30, 0.0 }
0x115e   : > { %4467 = vmatmul.mubr.msk.f32.gmra.mrb[52].mxu0 %vm1254_vm6, %v2898_v4 }
0x115f   : > { %4469 = vmatprep.mubr.msk.f32.mxu0 %vm5005_vm2, %v5006_v50 }
0x1160   : > { %2877 = vadd.xlane.f32.xlu0 %v2876_v15 }
0x1176   : > { %3300 = vrot.lane.b32.xlu0 %v5983_v25, %s6258_s20  ;;  %v4642_v25 = vpack.c.bf16 %v3973_v54, %v3972_v62 }
0x1178   : > { %4643 = vmatpush3.bf16.msra.mxu0 %v4642_v25 }
0x1179   : > { %4656 = vmatprep.subr.bf16.mxu0 %v5004_v47 }
0x119e   : > { %v3349_v23 = vpop.xlane.xlu0 %3348 }
0x119f   : > { %v3356_v31 = vmul.f32 0.03125, %v3349_v23 }
0x11a1   : > { %v3359_v36 = vsub.f32 %v6004_v20, %v3356_v31 }
0x11a3   : > { %v3362_v37 = vmul.f32 %v3359_v36, %v3359_v36 }
0x11a5   : > { %v3365_v60 = vsel %vm646_vm1, %v3362_v37, 0.0 }
0x11a6   : > { %3366 = vadd.xlane.f32.xlu1 %v3365_v60 }
0x11de   : > { %v2869_v56 = vpop.xlane.xlu1 %2868 }
0x11df   : > { %4913 = vrcp.f32 %v2869_v56 }
0x11e9   : > { %v4914_v38 = vpop.eup %4913  ;;  %v2875_v57 = vpop.xlane.xlu0 %2874 }
0x11ea   : > { %4915 = vrcp.f32 %v2875_v57  ;;  %v2899_v59 = vmul.f32 %v4914_v38, %v4906_v18 }
0x11ec   : > { %4470 = vmatmul.mubr.msk.f32.gmra.mrb[54].mxu0 %vm1254_vm6, %v2899_v59 }
0x11ed   : > { %v2878_v49 = vpop.xlane.xlu0 %2877  ;;  %4495 = vmatprep.mubr.msk.f32.mxu0 %vm5005_vm2, %v5006_v50 }
0x11ee   : > { %4917 = vrcp.f32 %v2878_v49 }
0x11f1   : > { %v3301_v62 = vpop.permute.xlu0 %3300 }
0x11f2   : > { %v3332_v56 = vsel %vm843_vm3, %v5978_v42, %v3301_v62 }
0x11f4   : > { %v4916_v27 = vpop.eup %4915 }
0x11f5   : > { %v2901_v61 = vmul.f32 %v4916_v27, %v4908_v17 }
0x11f7   : > { %4482 = vmatmul.mubr.msk.f32.gmra.mrb[62].mxu1 %vm1254_vm6, %v2901_v61 }
0x11f8   : > { %v4918_v1 = vpop.eup %4917  ;;  %4484 = vmatprep.mubr.msk.f32.mxu1 %vm5005_vm2, %v5006_v50 }
0x11f9   : > { %v2902_v2 = vmul.f32 %v4918_v1, %v4912_v30 }
0x11fb   : > { %4485 = vmatmul.mubr.msk.f32.gmra.mrb[64].mxu1 %vm1254_vm6, %v2902_v2 }
0x11fc   : > { %4520 = vmatprep.mubr.msk.f32.mxu1 %vm5005_vm2, %v5006_v50 }
0x1231   : > { %v3188_v8 = vpop.f32.mrb[52].mxu0 }
0x1232   : > { %3312 = vrot.lane.b32.xlu1 %v3188_v8, %s6259_s26  ;;  %v4468_v9 = vpop.f32.mrb[53].mxu0 }
0x1233   : > { %v3367_v12 = vpop.xlane.xlu1 %3366 }
0x1234   : > { %v3374_v5 = vmul.f32 0.03125, %v3367_v12 }
0x1236   : > { %v3377_v13 = vadd.f32 1e-06, %v3374_v5 }
0x1238   : > { %4919 = vrsqrt.f32 %v3377_v13 }
0x1242   : > { %v4920_v14 = vpop.eup %4919 }
0x1243   : > { %v3383_v39 = vmul.f32 %v4920_v14, %v3359_v36 }
0x1245   : > { %v3392_v52 = vmul.f32 %v6045_v34, %v3383_v39 }
0x1247   : > { %v3401_v7 = vadd.f32 %v6050_v35, %v3392_v52 }
0x1249   : > { %4496 = vmatmul.mubr.msk.f32.vlgmr.msra.gmra.mrb[56].mxu0 %vm646_vm1, %v3401_v7 }
0x124a   : > { %4498 = vmatprep.mubr.msk.f32.mxu0 %vm5005_vm2, %v5006_v50 }
0x12a4   : > { %v3313_v54 = vpop.permute.xlu1 %3312 }
0x12a5   : > { %v3335_v57 = vsel %vm1818_vm7, %v3332_v56, %v3313_v54 }
0x12bf   : > { %v3193_v53 = vpop.f32.mrb[54].mxu0 }
0x12c0   : > { %3314 = vrot.lane.b32.xlu0 %v3193_v53, %s6259_s26  ;;  %v4471_v45 = vpop.f32.mrb[55].mxu0  ;;  %s539_s26 = sand.u32 1, %s4994_s25  }
0x12c1   : > { %s540_s29 = scalar_lea.vmem [#allocation3], %s539_s26 }
0x12c2   : > { %s3804_s19 = sshll.u32 %s540_s29, 4  ;;  %s6164_s19 = int_to_ptr.vmem [resolvable:$true] %s3804_s19 }
0x12c3   : > { %s4940_s30 = scalar_lea.vmem %s6164_s19, 16  ;;  %p4947_p0 = scmp.lt.s32.totalorder %s6164_s19, %s4945_s18 }
0x12c4   : > { %p4941_p11 = scmp.ne.s32.totalorder %s6164_s19, %s4940_s30  ;;  %p4948_p1 = scmp.lt.s32.totalorder %s4946_s24, %s4940_s30 }
0x12c6   : > { %p4942_p12 = pnand %p4941_p11, %p5145_p5  ;;  %p4949_p2 = por %p4948_p1, %p4947_p0 }
0x12c8   : > { %p4943_p13 = pneg %p4942_p12 }
0x12ca   : > { %v3286_v63 = vpop.f32.mrb[62].mxu1  ;;  %p4950_p3 = pnand %p4949_p2, %p4943_p13 }
0x12cb   : > { %v4483_v10 = vpop.f32.mrb[63].mxu1  ;;  %3324 = vrot.lane.b32.xlu1 %v3286_v63, %s6260_s0 }
0x12ce   : > { %v3291_v18 = vpop.f32.mrb[64].mxu1 }
0x12cf   : > { %v4486_v6 = vpop.f32.mrb[65].mxu1  ;;  %3302 = vrot.lane.b32.xlu1 %v5986_v58, %s6258_s20  ;;  %s6162_s20 = scalar_lea.hbm %s6221_s17, %s3993_s2 }
0x12d3   : > { %3326 = vrot.lane.b32.xlu1 %v3291_v18, %s6260_s0  ;;  %s3792_s0 = scalar_lea.sflag [#allocation4], %s539_s26 }
0x131c   : > { %v3492_v17 = vpop.f32.mrb[56].mxu0 }
0x131d   : > { %v3493_v33 = vadd.f32 %v6092_v32, %v3492_v17  ;;  %v4497_v29 = vpop.f32.mrb[57].mxu0 }
0x131f   : > { %v3509_v30 = vmul.f32 0.70710677, %v3493_v33  ;;  %v3506_v45 = vmul.f32 0.5, %v3493_v33 }
0x1321   : > { %v3512_v4 = vand.u32 2147483647, %v3509_v30  ;;  %vm3572_vm12 = vcmp.ge.f32.partialorder %v3509_v30, 0.0 }
0x1323   : > { %v3515_v15 = vmul.f32 0.3275911, %v3512_v4  ;;  %v3554_v31 = vsub.f32 0.0, %v3512_v4 }
0x1325   : > { %v3518_v23 = vadd.f32 1.0, %v3515_v15  ;;  %v3557_v37 = vmul.f32 %v3554_v31, %v3512_v4 }
0x1327   : > { %4921 = vrcp.f32 %v3518_v23  ;;  %v3560_v40 = vmul.f32 1.442695, %v3557_v37 }
0x1329   : > { %4923 = vpow2.f32 %v3560_v40 }
0x1331   : > { %v4922_v36 = vpop.eup %4921 }
0x1332   : > { %v3527_v58 = vmul.f32 1.0614054, %v4922_v36  ;;  %v3315_v13 = vpop.permute.xlu0 %3314 }
0x1333   : > { %v4924_v5 = vpop.eup %4923 }
0x1334   : > { %v3530_v60 = vadd.f32 -1.4531521, %v3527_v58 }
0x1336   : > { %v3533_v11 = vmul.f32 %v4922_v36, %v3530_v60 }
0x1338   : > { %v3536_v22 = vadd.f32 1.4214138, %v3533_v11 }
0x133a   : > { %v3539_v25 = vmul.f32 %v4922_v36, %v3536_v22 }
0x133c   : > { %v3542_v38 = vadd.f32 -0.28449672, %v3539_v25 }
0x133d   : > { %v3325_v59 = vpop.permute.xlu1 %3324 }
0x133e   : > { %v3545_v49 = vmul.f32 %v4922_v36, %v3542_v38  ;;  %v3338_v27 = vsel %vm1254_vm6, %v3335_v57, %v3325_v59  ;;  %v3711_v57 = vld [vmem:[%s6219_s15] sm:$0xff]  ;;  %v3713_v59 = vld [vmem:[%s6219_s15 + $0x10] sm:$0xff] }
0x133f   : > { %v3341_v61 = vadd.f32 %v3338_v27, %v5700_v24 }
0x1340   : > { %v3548_v1 = vadd.f32 0.2548296, %v3545_v49  ;;  %v3714_v49 = vld [vmem:[%s6219_s15 + $0x18] sm:$0xff] }
0x1341   : > { %v3303_v2 = vpop.permute.xlu1 %3302  ;;  %v3350_v8 = vsel %vm646_vm1, %v3341_v61, 0.0  ;;  %v4660_v27 = vpack.c.bf16 %v3714_v49, %v3713_v59 }
0x1342   : > { %v3551_v9 = vmul.f32 %v4922_v36, %v3548_v1  ;;  %v3333_v12 = vsel %vm843_vm3, %v5980_v46, %v3303_v2  ;;  %3351 = vadd.xlane.f32.xlu0 %v3350_v8 }
0x1343   : > { %v3336_v39 = vsel %vm1818_vm7, %v3333_v12, %v3315_v13 }
0x1344   : > { %v3566_v42 = vmul.f32 %v4924_v5, %v3551_v9 }
0x1345   : > { %v3327_v14 = vpop.permute.xlu1 %3326 }
0x1346   : > { %v3569_v52 = vsub.f32 1.0, %v3566_v42  ;;  %v3339_v7 = vsel %vm1254_vm6, %v3336_v39, %v3327_v14 }
0x1347   : > { %v3342_v24 = vadd.f32 %v3339_v7, %v5705_v43 }
0x1348   : > { %v3575_v53 = vsub.f32 0.0, %v3569_v52 }
0x1349   : > { %v3353_v19 = vsel %vm646_vm1, %v3342_v24, 0.0 }
0x134a   : > { %v3578_v55 = vsel %vm3572_vm12, %v3569_v52, %v3575_v53  ;;  %3354 = vadd.xlane.f32.xlu1 %v3353_v19  ;;  %v3693_v53 = vld [vmem:[%s6217_s13] sm:$0x1] }
0x134b   : > { %v3581_v46 = vadd.f32 1.0, %v3578_v55 }
0x134d   : > { %v3584_v41 = vmul.f32 %v3581_v46, %v3506_v45  ;;  %v3694_v45 = vld [vmem:[%s6218_s14] sm:$0x1] }
0x134f   : > { %4521 = vmatmul.mubr.msk.f32.vlgmr.msra.gmra.mrb[66].mxu1 %vm2076_vm9, %v3584_v41 }
0x1350   : > { %4523 = vmatprep.mubr.msk.f32.mxu1 %vm5005_vm2, %v5006_v50 }
0x13cf   : > { %v3352_v0 = vpop.xlane.xlu0 %3351 }
0x13d0   : > { %v3357_v3 = vmul.f32 0.03125, %v3352_v0 }
0x13d2   : > { %v3360_v48 = vsub.f32 %v3341_v61, %v3357_v3 }
0x13d4   : > { %v3363_v21 = vmul.f32 %v3360_v48, %v3360_v48 }
0x13d6   : > { %v3368_v43 = vsel %vm646_vm1, %v3363_v21, 0.0 }
0x13d7   : > { %v3355_v26 = vpop.xlane.xlu1 %3354  ;;  %3369 = vadd.xlane.f32.xlu0 %v3368_v43 }
0x13d8   : > { %v3358_v44 = vmul.f32 0.03125, %v3355_v26 }
0x13da   : > { %v3361_v63 = vsub.f32 %v3342_v24, %v3358_v44 }
0x13dc   : > { %v3364_v10 = vmul.f32 %v3361_v63, %v3361_v63 }
0x13de   : > { %v3371_v51 = vsel %vm646_vm1, %v3364_v10, 0.0 }
0x13df   : > { %3372 = vadd.xlane.f32.xlu0 %v3371_v51 }
0x1422   : > { %v3671_v28 = vpop.f32.mrb[66].mxu1 }
0x1423   : > { %v3683_v18 = vadd.f32 %v3671_v28, %v6004_v20  ;;  %v4522_v6 = vpop.f32.mrb[67].mxu1 }
0x1425   : > { %v3692_v17 = vadd.f32 %v3991_v16, %v3683_v18 }
0x1427   : > { %v3696_v33 = vsel %vm3695_vm13, %v3692_v17, 0.0 }
0x1428   : > { %3697 = vadd.xlane.f32.xlu0 %v3696_v33 }
0x1464   : > { %v3370_v29 = vpop.xlane.xlu0 %3369 }
0x1465   : > { %v3375_v30 = vmul.f32 0.03125, %v3370_v29 }
0x1467   : > { %v3378_v4 = vadd.f32 1e-06, %v3375_v30 }
0x1469   : > { %4925 = vrsqrt.f32 %v3378_v4 }
0x146c   : > { %v3373_v15 = vpop.xlane.xlu0 %3372 }
0x146d   : > { %v3376_v23 = vmul.f32 0.03125, %v3373_v15 }
0x146f   : > { %v3379_v31 = vadd.f32 1e-06, %v3376_v23 }
0x1471   : > { %4927 = vrsqrt.f32 %v3379_v31 }
0x1473   : > { %v4926_v36 = vpop.eup %4925 }
0x1474   : > { %v3384_v37 = vmul.f32 %v4926_v36, %v3360_v48 }
0x1476   : > { %v3393_v58 = vmul.f32 %v6045_v34, %v3384_v37 }
0x1478   : > { %v3402_v20 = vadd.f32 %v6050_v35, %v3393_v58 }
0x147a   : > { %4499 = vmatmul.mubr.msk.f32.gmra.mrb[58].mxu0 %vm646_vm1, %v3402_v20 }
0x147b   : > { %v4928_v60 = vpop.eup %4927  ;;  %4501 = vmatprep.mubr.msk.f32.mxu0 %vm5005_vm2, %v5006_v50 }
0x147c   : > { %v3385_v40 = vmul.f32 %v4928_v60, %v3361_v63 }
0x147e   : > { %v3394_v11 = vmul.f32 %v6045_v34, %v3385_v40  ;;  %v3712_v34 = vld [vmem:[%s6219_s15 + $0x8] sm:$0xff] }
0x1480   : > { %v3403_v22 = vadd.f32 %v6050_v35, %v3394_v11  ;;  %v4657_v35 = vpack.c.bf16 %v3712_v34, %v3711_v57 }
0x1482   : > { %4502 = vmatmul.mubr.msk.f32.gmra.mrb[60].mxu0 %vm646_vm1, %v3403_v22 }
0x1483   : > { %4537 = vmatprep.mubr.msk.f32.mxu0 %vm5005_vm2, %v5006_v50  ;;  %4658 = vmatpush3.bf16.msra.mxu0 %v4657_v35 }
0x1484   : > { %4659 = vmatprep.subr.bf16.mxu0 %v5004_v47 }
0x1487   : > { %4661 = vmatpush3.bf16.msra.mxu0 %v4660_v27 }
0x14b5   : > { %v3698_v62 = vpop.xlane.xlu0 %3697 }
0x14b6   : > { %v3699_v54 = vmul.f32 0.03125, %v3698_v62 }
0x14b8   : > { %v3700_v25 = vsub.f32 %v3692_v17, %v3699_v54 }
0x14ba   : > { %v3701_v56 = vmul.f32 %v3700_v25, %v3700_v25 }
0x14bc   : > { %v3702_v38 = vsel %vm3695_vm13, %v3701_v56, 0.0 }
0x14bd   : > { %3703 = vadd.xlane.f32.xlu1 %v3702_v38 }
0x154a   : > { %v3704_v61 = vpop.xlane.xlu1 %3703 }
0x154b   : > { %v3705_v1 = vmul.f32 0.03125, %v3704_v61 }
0x154d   : > { %v3706_v2 = vadd.f32 1e-06, %v3705_v1  ;;  %v3497_v8 = vpop.f32.mrb[58].mxu0 }
0x154e   : > { %v3498_v9 = vadd.f32 %v6092_v32, %v3497_v8  ;;  %v4500_v12 = vpop.f32.mrb[59].mxu0 }
0x154f   : > { %4929 = vrsqrt.f32 %v3706_v2  ;;  %v3715_v2 = vld [vmem:[%s6220_s16] sm:$0x1] }
0x1550   : > { %v3510_v5 = vmul.f32 0.70710677, %v3498_v9  ;;  %v3507_v56 = vmul.f32 0.5, %v3498_v9 }
0x1552   : > { %v3513_v47 = vand.u32 2147483647, %v3510_v5  ;;  %vm3573_vm14 = vcmp.ge.f32.partialorder %v3510_v5, 0.0 }
0x1554   : > { %v3516_v42 = vmul.f32 0.3275911, %v3513_v47  ;;  %v3555_v3 = vsub.f32 0.0, %v3513_v47 }
0x1555   : > { %v3502_v13 = vpop.f32.mrb[60].mxu0 }
0x1556   : > { %v3519_v14 = vadd.f32 1.0, %v3516_v42  ;;  %v3503_v39 = vadd.f32 %v6092_v32, %v3502_v13  ;;  %v4503_v52 = vpop.f32.mrb[61].mxu0  ;;  %v3558_v21 = vmul.f32 %v3555_v3, %v3513_v47 }
0x1558   : > { %4931 = vrcp.f32 %v3519_v14  ;;  %v3511_v7 = vmul.f32 0.70710677, %v3503_v39  ;;  %v3562_v44 = vmul.f32 1.442695, %v3558_v21  ;;  %v3508_v27 = vmul.f32 0.5, %v3503_v39 }
0x1559   : > { %v4930_v24 = vpop.eup %4929 }
0x155a   : > { %v3708_v19 = vmul.f32 %v4930_v24, %v3700_v25  ;;  %v3514_v55 = vand.u32 2147483647, %v3511_v7  ;;  %vm3574_vm15 = vcmp.ge.f32.partialorder %v3511_v7, 0.0 }
0x155c   : > { %v3709_v46 = vmul.f32 %v3708_v19, %v3693_v53  ;;  %v3517_v41 = vmul.f32 0.3275911, %v3514_v55  ;;  %v3556_v63 = vsub.f32 0.0, %v3514_v55 }
0x155e   : > { %v3710_v0 = vadd.f32 %v3709_v46, %v3694_v45  ;;  %v3520_v48 = vadd.f32 1.0, %v3517_v41  ;;  %v3559_v16 = vmul.f32 %v3556_v63, %v3514_v55 }
0x1560   : > { %4933 = vrcp.f32 %v3520_v48  ;;  %4538 = vmatmul.mubr.msk.f32.vlgmr.msra.gmra.mrb[62].mxu0 %vm646_vm1, %v3710_v0  ;;  %v3564_v29 = vmul.f32 1.442695, %v3559_v16 }
0x1561   : > { %4935 = vpow2.f32 %v3562_v44 }
0x1562   : > { %v4932_v32 = vpop.eup %4931  ;;  %4937 = vpow2.f32 %v3564_v29 }
0x1563   : > { %v3528_v43 = vmul.f32 1.0614054, %v4932_v32 }
0x1565   : > { %v3531_v26 = vadd.f32 -1.4531521, %v3528_v43 }
0x1567   : > { %v3534_v10 = vmul.f32 %v4932_v32, %v3531_v26 }
0x1569   : > { %v3537_v51 = vadd.f32 1.4214138, %v3534_v10 }
0x156a   : > { %v4934_v28 = vpop.eup %4933 }
0x156b   : > { %v3540_v18 = vmul.f32 %v4932_v32, %v3537_v51  ;;  %v3529_v6 = vmul.f32 1.0614054, %v4934_v28  ;;  %v4936_v37 = vpop.eup %4935 }
0x156c   : > { %v4938_v25 = vpop.eup %4937 }
0x156d   : > { %v3543_v17 = vadd.f32 -0.28449672, %v3540_v18  ;;  %v3532_v33 = vadd.f32 -1.4531521, %v3529_v6 }
0x156f   : > { %v3546_v30 = vmul.f32 %v4932_v32, %v3543_v17  ;;  %v3535_v4 = vmul.f32 %v4934_v28, %v3532_v33 }
0x1571   : > { %v3549_v15 = vadd.f32 0.2548296, %v3546_v30  ;;  %v3538_v23 = vadd.f32 1.4214138, %v3535_v4 }
0x1573   : > { %v3552_v31 = vmul.f32 %v4932_v32, %v3549_v15  ;;  %v3541_v36 = vmul.f32 %v4934_v28, %v3538_v23 }
0x1575   : > { %v3567_v58 = vmul.f32 %v4936_v37, %v3552_v31  ;;  %v3544_v20 = vadd.f32 -0.28449672, %v3541_v36 }
0x1577   : > { %v3570_v60 = vsub.f32 1.0, %v3567_v58  ;;  %v3547_v40 = vmul.f32 %v4934_v28, %v3544_v20 }
0x1579   : > { %v3576_v11 = vsub.f32 0.0, %v3570_v60  ;;  %v3550_v22 = vadd.f32 0.2548296, %v3547_v40 }
0x157b   : > { %v3579_v62 = vsel %vm3573_vm14, %v3570_v60, %v3576_v11  ;;  %v3553_v54 = vmul.f32 %v4934_v28, %v3550_v22 }
0x157c   : > { %v3582_v38 = vadd.f32 1.0, %v3579_v62 }
0x157d   : > { %v3568_v57 = vmul.f32 %v4938_v25, %v3553_v54 }
0x157e   : > { %v3585_v34 = vmul.f32 %v3582_v38, %v3507_v56 }
0x157f   : > { %v3571_v35 = vsub.f32 1.0, %v3568_v57 }
0x1580   : > { %4524 = vmatmul.mubr.msk.f32.gmra.mrb[68].mxu1 %vm2076_vm9, %v3585_v34 }
0x1581   : > { %v3577_v59 = vsub.f32 0.0, %v3571_v35  ;;  %4526 = vmatprep.mubr.msk.f32.mxu1 %vm5005_vm2, %v5006_v50 }
0x1583   : > { %v3580_v49 = vsel %vm3574_vm15, %v3571_v35, %v3577_v59 }
0x1584   : > { %v3583_v61 = vadd.f32 1.0, %v3580_v49 }
0x1586   : > { %v3586_v1 = vmul.f32 %v3583_v61, %v3508_v27 }
0x1588   : > { %4527 = vmatmul.mubr.msk.f32.gmra.mrb[70].mxu1 %vm2076_vm9, %v3586_v1 }
0x1633   : > { %v3785_v8 = vpop.f32.mrb[62].mxu0 }
0x1634   : > { %v3786_v9 = vadd.f32 %v3785_v8, %v3715_v2  ;;  %v4539_v50 = vpop.f32.mrb[63].mxu0 }
0x1636   : > { %3790 = vst.msk [vmem:[%s540_s29] sm:$0x1] %vm3789_vm0, %v3786_v9 }
0x1637   : > { %4953 = shalt.err (!%p4950_p3)
}
0x1638   : > { %s4954_s26 = scalar_lea.hbm %s6162_s20, 16  ;;  %s4958_s21 = scalar_lea.hbm %s6221_s17, 32 }
0x1639   : > { %p4955_p4 = scmp.ne.s32.totalorder %s6162_s20, %s4954_s26  ;;  %p4959_p9 = scmp.lt.u32.totalorder %s6162_s20, %s6221_s17 }
0x163a   : > { %p4960_p10 = scmp.lt.u32.totalorder %s4958_s21, %s4954_s26  ;;  %p4962_p12 = scmp.lt.u32.totalorder %s4954_s26, %s6162_s20 }
0x163b   : > { %p4956_p7 = pnand %p4955_p4, %p5145_p5 }
0x163c   : > { %p4961_p11 = por %p4960_p10, %p4959_p9 }
0x163d   : > { %p4957_p8 = pneg %p4956_p7 }
0x163e   : > { %p4963_p13 = por %p4962_p12, %p4961_p11 }
0x1640   : > { %p4964_p0 = pnand %p4963_p13, %p4957_p8 }
0x1642   : > { %4967 = shalt.err (!%p4964_p0)
}
0x1643   : > { %4662 = dma.vmem_to_hbm [thread:$0]  (%p5145_p5), %s6164_s19, 16, %s6162_s20, %s3792_s0  }
0x1653   : > { %v3676_v12 = vpop.f32.mrb[68].mxu1 }
0x1654   : > { %v4525_v5 = vpop.f32.mrb[69].mxu1 }
0x165b   : > { %v3680_v47 = vpop.f32.mrb[70].mxu1 }
0x165c   : > { %v4528_v42 = vpop.f32.mrb[71].mxu1 }
0x165d PF: > { %s6261_s30 = sld [smem:[#allocation6_spill]]  ;;  %p4668_p1 = scmp.ge.s32.totalorder %s5002_s27, 2 }
0x165f   : > { %p4665_p2 = pnand %p4668_p1, %p5149_p6 }
0x1663   : > { %s3816_s24 = sand.u32 1, %s6261_s30  }
0x1664   : > { %s3817_s26 = scalar_lea.sflag [#allocation4], %s3816_s24 }
0x1665   : > { %4985 = dma.done.wait (!%p4665_p2), %s3817_s26, 16  }
0x1666   : > { %4987 = vsyncadd (!%p4665_p2), %s3817_s26, 4294967280  ;;  %s6263_s27 = sld [smem:[#allocation8_spill]]  ;;  %s6264_s1 = sld [smem:[#allocation7_spill]] }
0x1667   : > { %s6265_s26 = sld [smem:[#allocation9_spill]]  ;;  %s6266_s24 = smov %s4994_s25 }
0x166c   : > { %p27_p5 = scmp.ge.s32.totalorder %s6263_s27, 4   ;;  %s6267_s25 = smov %s6264_s1 }
0x166e   :  { %29 = sbr.rel (!%p27_p5) target bundleno = 7 (0x7), region = 132 }
0x1675   :  { %3821 = vsyncpa [#allocation4], 1 }
0x1676   :  { %3823 = vsyncpa [#allocation4 + $0x1], 1 }

</bundles_post_ra>
